<compile_context>
chip_gen: v7x
topology: tpu7x:2x2x1
jax: 0.10.0
libtpu: 0.0.40
codegen_flags: <defaults>
</compile_context>

<pallas_src>
import math
from functools import partial

import jax
import jax.numpy as jnp
from jax import lax
from jax.experimental import pallas as pl
from jax.experimental.pallas import tpu as pltpu

_INV_SQRT2 = 0.7071067811865476
_MASK_BIAS = -1e9


def _round_up(x, m):
    return ((x + m - 1) // m) * m


def _default_vmem_limit_bytes():
    """~75% of physical VMEM: 48 MiB on v7x (64 MiB), 96 MiB on v5e/v6e (128 MiB)."""
    cap = 64 * 1024 * 1024
    try:
        info = pltpu.get_tpu_info()
        cap = int(getattr(info, "vmem_capacity_bytes", cap)) or cap
    except Exception:
        pass
    return (cap // 4) * 3


_VMEM_LIMIT = _default_vmem_limit_bytes()


# ----------------------------------------------------------------------------
# Kernels
# ----------------------------------------------------------------------------
def _qkv_proj_kernel(x_ref, w_ref, b_ref, o_ref):
    """Fused QKV projection for one (batch, row-tile): bf16 MXU, f32 accum."""
    o_ref[0] = (jnp.dot(x_ref[0], w_ref[...],
                        preferred_element_type=jnp.float32)
                + b_ref[...]).astype(o_ref.dtype)


def _attn_head_kernel(q_ref, k_ref, v_ref, bias_ref, o_ref, *, scale):
    """Dense attention for ONE head and ONE query tile (whole key sequence)."""
    q = q_ref[0]                                   # (tq, Dp)  bf16
    k = k_ref[0]                                   # (Sp, Dp)  bf16
    v = v_ref[0]                                   # (Sp, Dp)  bf16
    # scores: contract over head dim, f32 accumulation on the MXU.
    s = lax.dot_general(q, k, (((1,), (1,)), ((), ())),
                        preferred_element_type=jnp.float32)
    s = s * scale + bias_ref[0]                    # additive key mask (0 / -1e9)
    m = jnp.max(s, axis=-1, keepdims=True)
    p = jnp.exp(s - m)
    p = p / jnp.sum(p, axis=-1, keepdims=True)     # exact softmax denominator
    ctx = jnp.dot(p.astype(jnp.bfloat16), v,
                  preferred_element_type=jnp.float32)
    o_ref[0] = ctx.astype(o_ref.dtype)


def _layernorm(y, g, b, eps):
    mean = jnp.mean(y, axis=-1, keepdims=True)
    yc = y - mean
    var = jnp.mean(yc * yc, axis=-1, keepdims=True)
    return yc * lax.rsqrt(var + eps) * g + b


def _outproj_ffn_kernel(ctx_ref, x_ref, wo_ref, bo_ref, g1_ref, b1_ref,
                        wf1_ref, bf1_ref, wf2_ref, bf2_ref, g2_ref, b2_ref,
                        o_ref, *, eps):
    """Out-proj (all heads at once) + residual + LN1 + FFN + residual + LN2."""
    # Single full-depth output projection across all heads (one MXU pass).
    attn = (jnp.dot(ctx_ref[...], wo_ref[...],
                    preferred_element_type=jnp.float32) + bo_ref[...])
    y = x_ref[...].astype(jnp.float32) + attn
    h1 = _layernorm(y, g1_ref[...], b1_ref[...], eps)           # f32

    f1 = (jnp.dot(h1.astype(jnp.bfloat16), wf1_ref[...],
                  preferred_element_type=jnp.float32) + bf1_ref[...])
    g = 0.5 * f1 * (1.0 + lax.erf(f1 * _INV_SQRT2))             # exact GELU
    f2 = (jnp.dot(g.astype(jnp.bfloat16), wf2_ref[...],
                  preferred_element_type=jnp.float32) + bf2_ref[...])
    z = h1 + f2
    o_ref[...] = _layernorm(z, g2_ref[...], b2_ref[...], eps).astype(o_ref.dtype)


# ----------------------------------------------------------------------------
# Pallas wrappers
# ----------------------------------------------------------------------------
def pallas_qkv_proj(x_bf, wqkv, bqkv, *, ts):
    B, Sp, H = x_bf.shape
    K3 = wqkv.shape[1]
    return pl.pallas_call(
        _qkv_proj_kernel,
        out_shape=jax.ShapeDtypeStruct((B, Sp, K3), jnp.bfloat16),
        grid=(B, Sp // ts),
        in_specs=[
            pl.BlockSpec((1, ts, H), lambda b, i: (b, i, 0)),
            pl.BlockSpec((H, K3), lambda b, i: (0, 0)),
            pl.BlockSpec((1, K3), lambda b, i: (0, 0)),
        ],
        out_specs=pl.BlockSpec((1, ts, K3), lambda b, i: (b, i, 0)),
        compiler_params=pltpu.CompilerParams(
            dimension_semantics=("parallel", "parallel"),
            vmem_limit_bytes=_VMEM_LIMIT),
    )(x_bf, wqkv, bqkv)


def pallas_head_attention(qkv, bias, *, num_head, head_dim, head_dim_padded, tq):
    """grid = (B, num_head, q_tiles); per-head Q/K/V slicing via BlockSpec DMA."""
    B, Sp, K3 = qkv.shape
    nh, Dp = num_head, head_dim_padded

    cost = pl.CostEstimate(
        flops=int(4 * B * nh * Sp * Sp * Dp),
        transcendentals=int(B * nh * Sp * Sp),
        bytes_accessed=int(2 * B * Sp * K3 + 2 * B * Sp * nh * Dp + 4 * B * Sp),
    )
    return pl.pallas_call(
        partial(_attn_head_kernel, scale=1.0 / math.sqrt(head_dim)),
        out_shape=jax.ShapeDtypeStruct((B, Sp, nh * Dp), jnp.bfloat16),
        grid=(B, nh, Sp // tq),
        in_specs=[
            pl.BlockSpec((1, tq, Dp), lambda b, h, qi: (b, qi, h)),          # Q
            pl.BlockSpec((1, Sp, Dp), lambda b, h, qi: (b, 0, num_head + h)),     # K
            pl.BlockSpec((1, Sp, Dp), lambda b, h, qi: (b, 0, 2 * num_head + h)),  # V
            pl.BlockSpec((1, 1, Sp), lambda b, h, qi: (b, 0, 0)),            # bias
        ],
        out_specs=pl.BlockSpec((1, tq, Dp), lambda b, h, qi: (b, qi, h)),
        compiler_params=pltpu.CompilerParams(
            dimension_semantics=("parallel", "parallel", "parallel"),
            vmem_limit_bytes=_VMEM_LIMIT),
        cost_estimate=cost,
    )(qkv, qkv, qkv, bias)


def pallas_outproj_ffn(ctx2d, x2d, wo, bo, g1, b1, wf1, bf1, wf2, bf2, g2, b2,
                       *, eps, tm, out_dtype=jnp.float32):
    # TODO(synk): on v5e, out_dtype=jnp.bfloat16 halves writeback bytes.
    M, Kc = ctx2d.shape
    H = x2d.shape[1]
    F = wf1.shape[1]

    def const(shape):
        nd = len(shape)
        return pl.BlockSpec(shape, lambda i: (0,) * nd)

    cost = pl.CostEstimate(
        flops=int(2 * M * (Kc * H + 2 * H * F)),
        transcendentals=int(M * F),
        bytes_accessed=int(2 * M * (Kc + H) + 4 * M * H
                           + 2 * (Kc * H + 2 * H * F) + 4 * (F + 6 * H)),
    )
    return pl.pallas_call(
        partial(_outproj_ffn_kernel, eps=eps),
        out_shape=jax.ShapeDtypeStruct((M, H), out_dtype),
        grid=(M // tm,),
        in_specs=[
            pl.BlockSpec((tm, Kc), lambda i: (i, 0)),   # attention context rows
            pl.BlockSpec((tm, H), lambda i: (i, 0)),    # residual input rows
            const((Kc, H)),                             # Wo (resident)
            const((1, H)),                              # bo
            const((1, H)), const((1, H)),               # ln1 gamma / beta
            const((H, F)),                              # Wf1 (resident)
            const((1, F)),                              # bf1
            const((F, H)),                              # Wf2 (resident)
            const((1, H)),                              # bf2
            const((1, H)), const((1, H)),               # ln2 gamma / beta
        ],
        out_specs=pl.BlockSpec((tm, H), lambda i: (i, 0)),
        compiler_params=pltpu.CompilerParams(
            dimension_semantics=("parallel",),
            vmem_limit_bytes=_VMEM_LIMIT),
        cost_estimate=cost,
    )(ctx2d, x2d, wo, bo, g1, b1, wf1, bf1, wf2, bf2, g2, b2)


# ----------------------------------------------------------------------------
# Parameter init (deterministic, synthetic).  Head dim is padded to a multiple
# of 128 lanes with zero weight columns/rows, which is mathematically exact
# (padded q/k/v components are 0) and keeps every per-head BlockSpec aligned.
# ----------------------------------------------------------------------------
def init_params(key, hidden_dim, num_head, head_dim, ff_dim):
    Dp = _round_up(head_dim, 128)
    nhDp = num_head * Dp
    keys = jax.random.split(key, 6)

    def w(k, fan_in, fan_out):
        return jax.random.normal(k, (fan_in, fan_out), jnp.float32) * 0.02

    def pad_head_cols(mat):                       # (H, nh*d) -> (H, nh*Dp)
        m = mat.reshape(hidden_dim, num_head, head_dim)
        m = jnp.pad(m, ((0, 0), (0, 0), (0, Dp - head_dim)))
        return m.reshape(hidden_dim, nhDp)

    Wq = pad_head_cols(w(keys[0], hidden_dim, num_head * head_dim))
    Wk = pad_head_cols(w(keys[1], hidden_dim, num_head * head_dim))
    Wv = pad_head_cols(w(keys[2], hidden_dim, num_head * head_dim))

    Wo = w(keys[3], num_head * head_dim, hidden_dim)
    Wo = jnp.pad(Wo.reshape(num_head, head_dim, hidden_dim),
                 ((0, 0), (0, Dp - head_dim), (0, 0))).reshape(nhDp, hidden_dim)

    p = {}
    p["Wqkv"] = jnp.concatenate([Wq, Wk, Wv], axis=1).astype(jnp.bfloat16)
    p["bqkv"] = jnp.zeros((1, 3 * nhDp), jnp.float32)   # pad lanes must stay 0
    p["Wo"] = Wo.astype(jnp.bfloat16)
    p["bo"] = jnp.zeros((1, hidden_dim), jnp.float32)
    p["Wf1"] = w(keys[4], hidden_dim, ff_dim).astype(jnp.bfloat16)
    p["bf1"] = jnp.zeros((1, ff_dim), jnp.float32)
    p["Wf2"] = w(keys[5], ff_dim, hidden_dim).astype(jnp.bfloat16)
    p["bf2"] = jnp.zeros((1, hidden_dim), jnp.float32)
    p["ln1_g"] = jnp.ones((1, hidden_dim), jnp.float32)
    p["ln1_b"] = jnp.zeros((1, hidden_dim), jnp.float32)
    p["ln2_g"] = jnp.ones((1, hidden_dim), jnp.float32)
    p["ln2_b"] = jnp.zeros((1, hidden_dim), jnp.float32)
    return p


# ----------------------------------------------------------------------------
# BigBirdBlock forward (eval mode: dropout = identity)
# ----------------------------------------------------------------------------
def bigbird_block_forward(params, X, band_mask, from_mask, to_mask,
                          blocked_encoder_mask, *, num_head, head_dim,
                          ln_eps=1e-5):
    # TODO(synk): block-sparse (band/global/random) BigBirdSelfAttention path not
    # implemented; band_mask / from_mask / blocked_encoder_mask unused (dense
    # "original_full" fallback, key-mask only).
    del band_mask, from_mask, blocked_encoder_mask
    B, S, H = X.shape
    Dp = _round_up(head_dim, 128)

    # Query/sequence tiling: pad S to a multiple of the tile; padded keys are
    # masked via the additive bias and padded rows are dropped at the end.
    tq = min(256, _round_up(S, 8))
    Sp = _round_up(S, tq)

    x = X if Sp == S else jnp.pad(X, ((0, 0), (0, Sp - S), (0, 0)))
    x_bf = x.astype(jnp.bfloat16)

    # Additive key mask (0 = attend, -1e9 = masked), computed once.
    bias = (to_mask.reshape(B, 1, S).astype(jnp.float32) - 1.0) * (-_MASK_BIAS)
    bias = bias * 0.0 + (to_mask.reshape(B, 1, S).astype(jnp.float32) - 1.0) * 1e9
    if Sp != S:
        bias = jnp.pad(bias, ((0, 0), (0, 0), (0, Sp - S)),
                       constant_values=_MASK_BIAS)

    # 1) fused QKV projection (bf16 out, written once).
    qkv = pallas_qkv_proj(x_bf, params["Wqkv"], params["bqkv"], ts=tq)

    # 2) per-(batch, head, q-tile) dense attention.
    ctx = pallas_head_attention(qkv, bias, num_head=num_head,
                                head_dim=head_dim, head_dim_padded=Dp, tq=tq)

    # 3) out-proj (all heads, one matmul) + LN1 + FFN + LN2, row-tiled.
    M = B * Sp
    tm = min(512, _round_up(M, 8))
    Mp = _round_up(M, tm)
    ctx2 = ctx.reshape(M, num_head * Dp)
    x2 = x_bf.reshape(M, H)
    if Mp != M:
        ctx2 = jnp.pad(ctx2, ((0, Mp - M), (0, 0)))
        x2 = jnp.pad(x2, ((0, Mp - M), (0, 0)))

    out2 = pallas_outproj_ffn(
        ctx2, x2, params["Wo"], params["bo"], params["ln1_g"], params["ln1_b"],
        params["Wf1"], params["bf1"], params["Wf2"], params["bf2"],
        params["ln2_g"], params["ln2_b"], eps=ln_eps, tm=tm,
        out_dtype=jnp.float32)
    return out2[:M].reshape(B, Sp, H)[:, :S, :]


# ----------------------------------------------------------------------------
# Main
# ----------------------------------------------------------------------------
if __name__ == "__main__":
    # Small but TPU-aligned config (head_dim=64 exercises the 128-lane padding).
    B, S = 2, 128
    hidden_dim = 128
    num_head = 2
    head_dim = 64
    ff_dim = 256
    block_size = 16  # only for BigBird mask-shape construction

    key = jax.random.PRNGKey(0)
    k_x, k_p = jax.random.split(key)

    X = jax.random.normal(k_x, (B, S, hidden_dim), jnp.float32)

    # Masks in BigBird conventions (1.0 = attend, 0.0 = masked)
    seq_mask = jnp.ones((B, S), jnp.float32).at[1, -16:].set(0.0)
    from_mask = seq_mask.reshape(B, 1, S, 1)
    to_mask = seq_mask.reshape(B, 1, 1, S)
    blocked_encoder_mask = seq_mask.reshape(B, S // block_size, block_size)
    n_band = max(S // block_size - 4, 1)
    band_mask = jnp.ones((B, 1, n_band, block_size, 3 * block_size), jnp.float32)

    params = init_params(k_p, hidden_dim, num_head, head_dim, ff_dim)

    fwd = jax.jit(
        partial(bigbird_block_forward, num_head=num_head, head_dim=head_dim)
    )
    out = fwd(params, X, band_mask, from_mask, to_mask, blocked_encoder_mask)
    jax.block_until_ready(out)

    assert out.shape == (B, S, hidden_dim)
    assert bool(jnp.isfinite(out).all())
    print("KERNEL_OK")
</pallas_src>

<mosaic_0001>
module attributes {stable_mosaic.version = 11 : i64} {
  func.func @_qkv_proj_kernel(%arg0: i32, %arg1: i32, %arg2: memref<1x128x128xbf16, #tpu.memory_space<vmem>>, %arg3: memref<128x768xbf16, #tpu.memory_space<vmem>>, %arg4: memref<1x768xf32, #tpu.memory_space<vmem>>, %arg5: memref<1x128x768xbf16, #tpu.memory_space<vmem>>) attributes {dimension_semantics = [#tpu.dimension_semantics<parallel>, #tpu.dimension_semantics<parallel>], iteration_bounds = array<i64: 2, 1>, scalar_prefetch = 0 : i64, scratch_operands = 0 : i64, tpu.core_type = #tpu.core_type<tc>, window_params = [{transform_indices = @transform_0, window_bounds = array<i64: 1, 128, 128>}, {pipeline_mode = #tpu.pipeline_mode<synchronous>, transform_indices = @transform_1, window_bounds = array<i64: 128, 768>}, {pipeline_mode = #tpu.pipeline_mode<synchronous>, transform_indices = @transform_2, window_bounds = array<i64: 1, 768>}, {transform_indices = @transform_3, window_bounds = array<i64: 1, 128, 768>}]} {
    %c0 = arith.constant 0 : index
    %c0_0 = arith.constant 0 : index
    %c0_1 = arith.constant 0 : index
    %0 = vector.load %arg2[%c0, %c0_0, %c0_1] : memref<1x128x128xbf16, #tpu.memory_space<vmem>>, vector<1x128x128xbf16>
    %1 = vector.shape_cast %0 : vector<1x128x128xbf16> to vector<128x128xbf16>
    %c0_2 = arith.constant 0 : index
    %c0_3 = arith.constant 0 : index
    %2 = vector.load %arg3[%c0_2, %c0_3] : memref<128x768xbf16, #tpu.memory_space<vmem>>, vector<128x768xbf16>
    %cst = arith.constant dense<0.000000e+00> : vector<128x768xf32>
    %3 = tpu.matmul %1, %2, %cst {dimension_numbers = #tpu.dot_dimension_numbers<[1], [0], [0], [1], [0, 0, 1, 1], [], []>} : vector<128x128xbf16>, vector<128x768xbf16>, vector<128x768xf32> -> vector<128x768xf32>
    %c0_4 = arith.constant 0 : index
    %c0_5 = arith.constant 0 : index
    %4 = vector.load %arg4[%c0_4, %c0_5] : memref<1x768xf32, #tpu.memory_space<vmem>>, vector<1x768xf32>
    %5 = vector.broadcast %4 : vector<1x768xf32> to vector<128x768xf32>
    %6 = arith.addf %3, %5 : vector<128x768xf32>
    %7 = arith.truncf %6 : vector<128x768xf32> to vector<128x768xbf16>
    %c0_6 = arith.constant 0 : index
    %c0_7 = arith.constant 0 : index
    %c0_8 = arith.constant 0 : index
    %8 = vector.load %arg5[%c0_6, %c0_7, %c0_8] : memref<1x128x768xbf16, #tpu.memory_space<vmem>>, vector<1x128x768xbf16>
    %9 = vector.shape_cast %8 : vector<1x128x768xbf16> to vector<128x768xbf16>
    %10 = vector.shape_cast %7 : vector<128x768xbf16> to vector<1x128x768xbf16>
    tpu.vector_store %arg5[%c0_6, %c0_7, %c0_8], %10 {strides = array<i32>} : memref<1x128x768xbf16, #tpu.memory_space<vmem>>, vector<1x128x768xbf16>,
    return
  }
  func.func @transform_0(%arg0: i32, %arg1: i32) -> (i32, i32, i32) {
    %c0_i32 = arith.constant 0 : i32
    %c0_i32_0 = arith.constant 0 : i32
    return %arg0, %arg1, %c0_i32 : i32, i32, i32
  }
  func.func @transform_1(%arg0: i32, %arg1: i32) -> (i32, i32) {
    %c0_i32 = arith.constant 0 : i32
    %c0_i32_0 = arith.constant 0 : i32
    %c0_i32_1 = arith.constant 0 : i32
    return %c0_i32, %c0_i32_0 : i32, i32
  }
  func.func @transform_2(%arg0: i32, %arg1: i32) -> (i32, i32) {
    %c0_i32 = arith.constant 0 : i32
    %c0_i32_0 = arith.constant 0 : i32
    %c0_i32_1 = arith.constant 0 : i32
    return %c0_i32, %c0_i32_0 : i32, i32
  }
  func.func @transform_3(%arg0: i32, %arg1: i32) -> (i32, i32, i32) {
    %c0_i32 = arith.constant 0 : i32
    %c0_i32_0 = arith.constant 0 : i32
    return %arg0, %arg1, %c0_i32 : i32, i32, i32
  }
}

module attributes {stable_mosaic.version = 11 : i64} {
  func.func @_attn_head_kernel(%arg0: i32, %arg1: i32, %arg2: i32, %arg3: memref<1x128x128xbf16, #tpu.memory_space<vmem>>, %arg4: memref<1x128x128xbf16, #tpu.memory_space<vmem>>, %arg5: memref<1x128x128xbf16, #tpu.memory_space<vmem>>, %arg6: memref<1x1x128xf32, #tpu.memory_space<vmem>>, %arg7: memref<1x128x128xbf16, #tpu.memory_space<vmem>>) attributes {dimension_semantics = [#tpu.dimension_semantics<parallel>, #tpu.dimension_semantics<parallel>, #tpu.dimension_semantics<parallel>], iteration_bounds = array<i64: 2, 2, 1>, scalar_prefetch = 0 : i64, scratch_operands = 0 : i64, tpu.core_type = #tpu.core_type<tc>, window_params = [{transform_indices = @transform_0, window_bounds = array<i64: 1, 128, 128>}, {transform_indices = @transform_1, window_bounds = array<i64: 1, 128, 128>}, {transform_indices = @transform_2, window_bounds = array<i64: 1, 128, 128>}, {transform_indices = @transform_3, window_bounds = array<i64: 1, 1, 128>}, {transform_indices = @transform_4, window_bounds = array<i64: 1, 128, 128>}]} {
    %c0 = arith.constant 0 : index
    %c0_0 = arith.constant 0 : index
    %c0_1 = arith.constant 0 : index
    %0 = vector.load %arg3[%c0, %c0_0, %c0_1] : memref<1x128x128xbf16, #tpu.memory_space<vmem>>, vector<1x128x128xbf16>
    %1 = vector.shape_cast %0 : vector<1x128x128xbf16> to vector<128x128xbf16>
    %c0_2 = arith.constant 0 : index
    %c0_3 = arith.constant 0 : index
    %c0_4 = arith.constant 0 : index
    %2 = vector.load %arg4[%c0_2, %c0_3, %c0_4] : memref<1x128x128xbf16, #tpu.memory_space<vmem>>, vector<1x128x128xbf16>
    %3 = vector.shape_cast %2 : vector<1x128x128xbf16> to vector<128x128xbf16>
    %c0_5 = arith.constant 0 : index
    %c0_6 = arith.constant 0 : index
    %c0_7 = arith.constant 0 : index
    %4 = vector.load %arg5[%c0_5, %c0_6, %c0_7] : memref<1x128x128xbf16, #tpu.memory_space<vmem>>, vector<1x128x128xbf16>
    %5 = vector.shape_cast %4 : vector<1x128x128xbf16> to vector<128x128xbf16>
    %cst = arith.constant dense<0.000000e+00> : vector<128x128xf32>
    %6 = tpu.matmul %1, %3, %cst {dimension_numbers = #tpu.dot_dimension_numbers<[1], [1], [0], [0], [0, 0, 1, 0], [], []>} : vector<128x128xbf16>, vector<128x128xbf16>, vector<128x128xf32> -> vector<128x128xf32>
    %cst_8 = arith.constant 1.250000e-01 : f32
    %7 = vector.broadcast %cst_8 : f32 to vector<128x128xf32>
    %8 = arith.mulf %6, %7 : vector<128x128xf32>
    %c0_9 = arith.constant 0 : index
    %c0_10 = arith.constant 0 : index
    %c0_11 = arith.constant 0 : index
    %9 = vector.load %arg6[%c0_9, %c0_10, %c0_11] : memref<1x1x128xf32, #tpu.memory_space<vmem>>, vector<1x1x128xf32>
    %10 = vector.shape_cast %9 : vector<1x1x128xf32> to vector<1x128xf32>
    %11 = vector.broadcast %10 : vector<1x128xf32> to vector<128x128xf32>
    %12 = arith.addf %8, %11 : vector<128x128xf32>
    %cst_12 = arith.constant dense<0xFF800000> : vector<128xf32>
    %13 = vector.multi_reduction <maximumf>, %12, %cst_12 [1] : vector<128x128xf32> to vector<128xf32>
    %14 = vector.shape_cast %13 : vector<128xf32> to vector<128x1xf32>
    %15 = vector.broadcast %14 : vector<128x1xf32> to vector<128x128xf32>
    %16 = arith.subf %12, %15 : vector<128x128xf32>
    %17 = math.exp %16 : vector<128x128xf32>
    %cst_13 = arith.constant dense<0.000000e+00> : vector<128xf32>
    %18 = vector.multi_reduction <add>, %17, %cst_13 [1] : vector<128x128xf32> to vector<128xf32>
    %19 = vector.shape_cast %18 : vector<128xf32> to vector<128x1xf32>
    %20 = vector.broadcast %19 : vector<128x1xf32> to vector<128x128xf32>
    %21 = arith.divf %17, %20 : vector<128x128xf32>
    %22 = arith.truncf %21 : vector<128x128xf32> to vector<128x128xbf16>
    %cst_14 = arith.constant dense<0.000000e+00> : vector<128x128xf32>
    %23 = tpu.matmul %22, %5, %cst_14 {dimension_numbers = #tpu.dot_dimension_numbers<[1], [0], [0], [1], [0, 0, 1, 1], [], []>} : vector<128x128xbf16>, vector<128x128xbf16>, vector<128x128xf32> -> vector<128x128xf32>
    %24 = arith.truncf %23 : vector<128x128xf32> to vector<128x128xbf16>
    %c0_15 = arith.constant 0 : index
    %c0_16 = arith.constant 0 : index
    %c0_17 = arith.constant 0 : index
    %25 = vector.load %arg7[%c0_15, %c0_16, %c0_17] : memref<1x128x128xbf16, #tpu.memory_space<vmem>>, vector<1x128x128xbf16>
    %26 = vector.shape_cast %25 : vector<1x128x128xbf16> to vector<128x128xbf16>
    %27 = vector.shape_cast %24 : vector<128x128xbf16> to vector<1x128x128xbf16>
    tpu.vector_store %arg7[%c0_15, %c0_16, %c0_17], %27 {strides = array<i32>} : memref<1x128x128xbf16, #tpu.memory_space<vmem>>, vector<1x128x128xbf16>,
    return
  }
  func.func @transform_0(%arg0: i32, %arg1: i32, %arg2: i32) -> (i32, i32, i32) {
    %c0_i32 = arith.constant 0 : i32
    return %arg0, %arg2, %arg1 : i32, i32, i32
  }
  func.func @transform_1(%arg0: i32, %arg1: i32, %arg2: i32) -> (i32, i32, i32) {
    %c2_i32 = arith.constant 2 : i32
    %0 = arith.addi %c2_i32, %arg1 : i32
    %c0_i32 = arith.constant 0 : i32
    %c0_i32_0 = arith.constant 0 : i32
    return %arg0, %c0_i32, %0 : i32, i32, i32
  }
  func.func @transform_2(%arg0: i32, %arg1: i32, %arg2: i32) -> (i32, i32, i32) {
    %c4_i32 = arith.constant 4 : i32
    %0 = arith.addi %c4_i32, %arg1 : i32
    %c0_i32 = arith.constant 0 : i32
    %c0_i32_0 = arith.constant 0 : i32
    return %arg0, %c0_i32, %0 : i32, i32, i32
  }
  func.func @transform_3(%arg0: i32, %arg1: i32, %arg2: i32) -> (i32, i32, i32) {
    %c0_i32 = arith.constant 0 : i32
    %c0_i32_0 = arith.constant 0 : i32
    %c0_i32_1 = arith.constant 0 : i32
    return %arg0, %c0_i32, %c0_i32_0 : i32, i32, i32
  }
  func.func @transform_4(%arg0: i32, %arg1: i32, %arg2: i32) -> (i32, i32, i32) {
    %c0_i32 = arith.constant 0 : i32
    return %arg0, %arg2, %arg1 : i32, i32, i32
  }
}

module attributes {stable_mosaic.version = 11 : i64} {
  func.func @_outproj_ffn_kernel(%arg0: i32, %arg1: memref<256x256xbf16, #tpu.memory_space<vmem>>, %arg2: memref<256x128xbf16, #tpu.memory_space<vmem>>, %arg3: memref<256x128xbf16, #tpu.memory_space<vmem>>, %arg4: memref<1x128xf32, #tpu.memory_space<vmem>>, %arg5: memref<1x128xf32, #tpu.memory_space<vmem>>, %arg6: memref<1x128xf32, #tpu.memory_space<vmem>>, %arg7: memref<128x256xbf16, #tpu.memory_space<vmem>>, %arg8: memref<1x256xf32, #tpu.memory_space<vmem>>, %arg9: memref<256x128xbf16, #tpu.memory_space<vmem>>, %arg10: memref<1x128xf32, #tpu.memory_space<vmem>>, %arg11: memref<1x128xf32, #tpu.memory_space<vmem>>, %arg12: memref<1x128xf32, #tpu.memory_space<vmem>>, %arg13: memref<256x128xf32, #tpu.memory_space<vmem>>) attributes {dimension_semantics = [#tpu.dimension_semantics<parallel>], iteration_bounds = array<i64: 1>, scalar_prefetch = 0 : i64, scratch_operands = 0 : i64, tpu.core_type = #tpu.core_type<tc>, window_params = [{transform_indices = @transform_0, window_bounds = array<i64: 256, 256>}, {transform_indices = @transform_1, window_bounds = array<i64: 256, 128>}, {pipeline_mode = #tpu.pipeline_mode<synchronous>, transform_indices = @transform_2, window_bounds = array<i64: 256, 128>}, {pipeline_mode = #tpu.pipeline_mode<synchronous>, transform_indices = @transform_3, window_bounds = array<i64: 1, 128>}, {pipeline_mode = #tpu.pipeline_mode<synchronous>, transform_indices = @transform_4, window_bounds = array<i64: 1, 128>}, {pipeline_mode = #tpu.pipeline_mode<synchronous>, transform_indices = @transform_5, window_bounds = array<i64: 1, 128>}, {pipeline_mode = #tpu.pipeline_mode<synchronous>, transform_indices = @transform_6, window_bounds = array<i64: 128, 256>}, {pipeline_mode = #tpu.pipeline_mode<synchronous>, transform_indices = @transform_7, window_bounds = array<i64: 1, 256>}, {pipeline_mode = #tpu.pipeline_mode<synchronous>, transform_indices = @transform_8, window_bounds = array<i64: 256, 128>}, {pipeline_mode = #tpu.pipeline_mode<synchronous>, transform_indices = @transform_9, window_bounds = array<i64: 1, 128>}, {pipeline_mode = #tpu.pipeline_mode<synchronous>, transform_indices = @transform_10, window_bounds = array<i64: 1, 128>}, {pipeline_mode = #tpu.pipeline_mode<synchronous>, transform_indices = @transform_11, window_bounds = array<i64: 1, 128>}, {transform_indices = @transform_12, window_bounds = array<i64: 256, 128>}]} {
    %c0 = arith.constant 0 : index
    %c0_0 = arith.constant 0 : index
    %0 = vector.load %arg1[%c0, %c0_0] : memref<256x256xbf16, #tpu.memory_space<vmem>>, vector<256x256xbf16>
    %c0_1 = arith.constant 0 : index
    %c0_2 = arith.constant 0 : index
    %1 = vector.load %arg3[%c0_1, %c0_2] : memref<256x128xbf16, #tpu.memory_space<vmem>>, vector<256x128xbf16>
    %cst = arith.constant dense<0.000000e+00> : vector<256x128xf32>
    %2 = tpu.matmul %0, %1, %cst {dimension_numbers = #tpu.dot_dimension_numbers<[1], [0], [0], [1], [0, 0, 1, 1], [], []>} : vector<256x256xbf16>, vector<256x128xbf16>, vector<256x128xf32> -> vector<256x128xf32>
    %c0_3 = arith.constant 0 : index
    %c0_4 = arith.constant 0 : index
    %3 = vector.load %arg4[%c0_3, %c0_4] : memref<1x128xf32, #tpu.memory_space<vmem>>, vector<1x128xf32>
    %4 = vector.broadcast %3 : vector<1x128xf32> to vector<256x128xf32>
    %5 = arith.addf %2, %4 : vector<256x128xf32>
    %c0_5 = arith.constant 0 : index
    %c0_6 = arith.constant 0 : index
    %6 = vector.load %arg2[%c0_5, %c0_6] : memref<256x128xbf16, #tpu.memory_space<vmem>>, vector<256x128xbf16>
    %7 = arith.extf %6 : vector<256x128xbf16> to vector<256x128xf32>
    %8 = arith.addf %7, %5 : vector<256x128xf32>
    %c0_7 = arith.constant 0 : index
    %c0_8 = arith.constant 0 : index
    %9 = vector.load %arg5[%c0_7, %c0_8] : memref<1x128xf32, #tpu.memory_space<vmem>>, vector<1x128xf32>
    %c0_9 = arith.constant 0 : index
    %c0_10 = arith.constant 0 : index
    %10 = vector.load %arg6[%c0_9, %c0_10] : memref<1x128xf32, #tpu.memory_space<vmem>>, vector<1x128xf32>
    %cst_11 = arith.constant dense<0.000000e+00> : vector<256xf32>
    %11 = vector.multi_reduction <add>, %8, %cst_11 [1] : vector<256x128xf32> to vector<256xf32>
    %12 = vector.shape_cast %11 : vector<256xf32> to vector<256x1xf32>
    %cst_12 = arith.constant 1.280000e+02 : f32
    %13 = vector.broadcast %cst_12 : f32 to vector<256x1xf32>
    %14 = arith.divf %12, %13 : vector<256x1xf32>
    %15 = vector.broadcast %14 : vector<256x1xf32> to vector<256x128xf32>
    %16 = arith.subf %8, %15 : vector<256x128xf32>
    %17 = arith.mulf %16, %16 : vector<256x128xf32>
    %cst_13 = arith.constant dense<0.000000e+00> : vector<256xf32>
    %18 = vector.multi_reduction <add>, %17, %cst_13 [1] : vector<256x128xf32> to vector<256xf32>
    %19 = vector.shape_cast %18 : vector<256xf32> to vector<256x1xf32>
    %cst_14 = arith.constant 1.280000e+02 : f32
    %20 = vector.broadcast %cst_14 : f32 to vector<256x1xf32>
    %21 = arith.divf %19, %20 : vector<256x1xf32>
    %cst_15 = arith.constant 9.99999974E-6 : f32
    %22 = vector.broadcast %cst_15 : f32 to vector<256x1xf32>
    %23 = arith.addf %21, %22 : vector<256x1xf32>
    %24 = math.rsqrt %23 : vector<256x1xf32>
    %25 = vector.broadcast %24 : vector<256x1xf32> to vector<256x128xf32>
    %26 = arith.mulf %16, %25 : vector<256x128xf32>
    %27 = vector.broadcast %9 : vector<1x128xf32> to vector<256x128xf32>
    %28 = arith.mulf %26, %27 : vector<256x128xf32>
    %29 = vector.broadcast %10 : vector<1x128xf32> to vector<256x128xf32>
    %30 = arith.addf %28, %29 : vector<256x128xf32>
    %31 = arith.truncf %30 : vector<256x128xf32> to vector<256x128xbf16>
    %c0_16 = arith.constant 0 : index
    %c0_17 = arith.constant 0 : index
    %32 = vector.load %arg7[%c0_16, %c0_17] : memref<128x256xbf16, #tpu.memory_space<vmem>>, vector<128x256xbf16>
    %cst_18 = arith.constant dense<0.000000e+00> : vector<256x256xf32>
    %33 = tpu.matmul %31, %32, %cst_18 {dimension_numbers = #tpu.dot_dimension_numbers<[1], [0], [0], [1], [0, 0, 1, 1], [], []>} : vector<256x128xbf16>, vector<128x256xbf16>, vector<256x256xf32> -> vector<256x256xf32>
    %c0_19 = arith.constant 0 : index
    %c0_20 = arith.constant 0 : index
    %34 = vector.load %arg8[%c0_19, %c0_20] : memref<1x256xf32, #tpu.memory_space<vmem>>, vector<1x256xf32>
    %35 = vector.broadcast %34 : vector<1x256xf32> to vector<256x256xf32>
    %36 = arith.addf %33, %35 : vector<256x256xf32>
    %cst_21 = arith.constant 5.000000e-01 : f32
    %37 = vector.broadcast %cst_21 : f32 to vector<256x256xf32>
    %38 = arith.mulf %37, %36 : vector<256x256xf32>
    %cst_22 = arith.constant 0.707106769 : f32
    %39 = vector.broadcast %cst_22 : f32 to vector<256x256xf32>
    %40 = arith.mulf %36, %39 : vector<256x256xf32>
    %41 = math.erf %40 : vector<256x256xf32>
    %cst_23 = arith.constant 1.000000e+00 : f32
    %42 = vector.broadcast %cst_23 : f32 to vector<256x256xf32>
    %43 = arith.addf %42, %41 : vector<256x256xf32>
    %44 = arith.mulf %38, %43 : vector<256x256xf32>
    %45 = arith.truncf %44 : vector<256x256xf32> to vector<256x256xbf16>
    %c0_24 = arith.constant 0 : index
    %c0_25 = arith.constant 0 : index
    %46 = vector.load %arg9[%c0_24, %c0_25] : memref<256x128xbf16, #tpu.memory_space<vmem>>, vector<256x128xbf16>
    %cst_26 = arith.constant dense<0.000000e+00> : vector<256x128xf32>
    %47 = tpu.matmul %45, %46, %cst_26 {dimension_numbers = #tpu.dot_dimension_numbers<[1], [0], [0], [1], [0, 0, 1, 1], [], []>} : vector<256x256xbf16>, vector<256x128xbf16>, vector<256x128xf32> -> vector<256x128xf32>
    %c0_27 = arith.constant 0 : index
    %c0_28 = arith.constant 0 : index
    %48 = vector.load %arg10[%c0_27, %c0_28] : memref<1x128xf32, #tpu.memory_space<vmem>>, vector<1x128xf32>
    %49 = vector.broadcast %48 : vector<1x128xf32> to vector<256x128xf32>
    %50 = arith.addf %47, %49 : vector<256x128xf32>
    %51 = arith.addf %30, %50 : vector<256x128xf32>
    %c0_29 = arith.constant 0 : index
    %c0_30 = arith.constant 0 : index
    %52 = vector.load %arg11[%c0_29, %c0_30] : memref<1x128xf32, #tpu.memory_space<vmem>>, vector<1x128xf32>
    %c0_31 = arith.constant 0 : index
    %c0_32 = arith.constant 0 : index
    %53 = vector.load %arg12[%c0_31, %c0_32] : memref<1x128xf32, #tpu.memory_space<vmem>>, vector<1x128xf32>
    %cst_33 = arith.constant dense<0.000000e+00> : vector<256xf32>
    %54 = vector.multi_reduction <add>, %51, %cst_33 [1] : vector<256x128xf32> to vector<256xf32>
    %55 = vector.shape_cast %54 : vector<256xf32> to vector<256x1xf32>
    %cst_34 = arith.constant 1.280000e+02 : f32
    %56 = vector.broadcast %cst_34 : f32 to vector<256x1xf32>
    %57 = arith.divf %55, %56 : vector<256x1xf32>
    %58 = vector.broadcast %57 : vector<256x1xf32> to vector<256x128xf32>
    %59 = arith.subf %51, %58 : vector<256x128xf32>
    %60 = arith.mulf %59, %59 : vector<256x128xf32>
    %cst_35 = arith.constant dense<0.000000e+00> : vector<256xf32>
    %61 = vector.multi_reduction <add>, %60, %cst_35 [1] : vector<256x128xf32> to vector<256xf32>
    %62 = vector.shape_cast %61 : vector<256xf32> to vector<256x1xf32>
    %cst_36 = arith.constant 1.280000e+02 : f32
    %63 = vector.broadcast %cst_36 : f32 to vector<256x1xf32>
    %64 = arith.divf %62, %63 : vector<256x1xf32>
    %cst_37 = arith.constant 9.99999974E-6 : f32
    %65 = vector.broadcast %cst_37 : f32 to vector<256x1xf32>
    %66 = arith.addf %64, %65 : vector<256x1xf32>
    %67 = math.rsqrt %66 : vector<256x1xf32>
    %68 = vector.broadcast %67 : vector<256x1xf32> to vector<256x128xf32>
    %69 = arith.mulf %59, %68 : vector<256x128xf32>
    %70 = vector.broadcast %52 : vector<1x128xf32> to vector<256x128xf32>
    %71 = arith.mulf %69, %70 : vector<256x128xf32>
    %72 = vector.broadcast %53 : vector<1x128xf32> to vector<256x128xf32>
    %73 = arith.addf %71, %72 : vector<256x128xf32>
    %c0_38 = arith.constant 0 : index
    %c0_39 = arith.constant 0 : index
    %74 = vector.load %arg13[%c0_38, %c0_39] : memref<256x128xf32, #tpu.memory_space<vmem>>, vector<256x128xf32>
    tpu.vector_store %arg13[%c0_38, %c0_39], %73 {strides = array<i32>} : memref<256x128xf32, #tpu.memory_space<vmem>>, vector<256x128xf32>,
    return
  }
  func.func @transform_0(%arg0: i32) -> (i32, i32) {
    %c0_i32 = arith.constant 0 : i32
    %c0_i32_0 = arith.constant 0 : i32
    return %arg0, %c0_i32 : i32, i32
  }
  func.func @transform_1(%arg0: i32) -> (i32, i32) {
    %c0_i32 = arith.constant 0 : i32
    %c0_i32_0 = arith.constant 0 : i32
    return %arg0, %c0_i32 : i32, i32
  }
  func.func @transform_2(%arg0: i32) -> (i32, i32) {
    %c0_i32 = arith.constant 0 : i32
    %c0_i32_0 = arith.constant 0 : i32
    %c0_i32_1 = arith.constant 0 : i32
    return %c0_i32, %c0_i32_0 : i32, i32
  }
  func.func @transform_3(%arg0: i32) -> (i32, i32) {
    %c0_i32 = arith.constant 0 : i32
    %c0_i32_0 = arith.constant 0 : i32
    %c0_i32_1 = arith.constant 0 : i32
    return %c0_i32, %c0_i32_0 : i32, i32
  }
  func.func @transform_4(%arg0: i32) -> (i32, i32) {
    %c0_i32 = arith.constant 0 : i32
    %c0_i32_0 = arith.constant 0 : i32
    %c0_i32_1 = arith.constant 0 : i32
    return %c0_i32, %c0_i32_0 : i32, i32
  }
  func.func @transform_5(%arg0: i32) -> (i32, i32) {
    %c0_i32 = arith.constant 0 : i32
    %c0_i32_0 = arith.constant 0 : i32
    %c0_i32_1 = arith.constant 0 : i32
    return %c0_i32, %c0_i32_0 : i32, i32
  }
  func.func @transform_6(%arg0: i32) -> (i32, i32) {
    %c0_i32 = arith.constant 0 : i32
    %c0_i32_0 = arith.constant 0 : i32
    %c0_i32_1 = arith.constant 0 : i32
    return %c0_i32, %c0_i32_0 : i32, i32
  }
  func.func @transform_7(%arg0: i32) -> (i32, i32) {
    %c0_i32 = arith.constant 0 : i32
    %c0_i32_0 = arith.constant 0 : i32
    %c0_i32_1 = arith.constant 0 : i32
    return %c0_i32, %c0_i32_0 : i32, i32
  }
  func.func @transform_8(%arg0: i32) -> (i32, i32) {
    %c0_i32 = arith.constant 0 : i32
    %c0_i32_0 = arith.constant 0 : i32
    %c0_i32_1 = arith.constant 0 : i32
    return %c0_i32, %c0_i32_0 : i32, i32
  }
  func.func @transform_9(%arg0: i32) -> (i32, i32) {
    %c0_i32 = arith.constant 0 : i32
    %c0_i32_0 = arith.constant 0 : i32
    %c0_i32_1 = arith.constant 0 : i32
    return %c0_i32, %c0_i32_0 : i32, i32
  }
  func.func @transform_10(%arg0: i32) -> (i32, i32) {
    %c0_i32 = arith.constant 0 : i32
    %c0_i32_0 = arith.constant 0 : i32
    %c0_i32_1 = arith.constant 0 : i32
    return %c0_i32, %c0_i32_0 : i32, i32
  }
  func.func @transform_11(%arg0: i32) -> (i32, i32) {
    %c0_i32 = arith.constant 0 : i32
    %c0_i32_0 = arith.constant 0 : i32
    %c0_i32_1 = arith.constant 0 : i32
    return %c0_i32, %c0_i32_0 : i32, i32
  }
  func.func @transform_12(%arg0: i32) -> (i32, i32) {
    %c0_i32 = arith.constant 0 : i32
    %c0_i32_0 = arith.constant 0 : i32
    return %arg0, %c0_i32 : i32, i32
  }
}

</mosaic_0001>

<bundles_post_ra>
// kernel: bigbird_block_forward.4
= control target key start
LH: loop header
LB: loop body
LE: loop exit
PB: predicated region body
PF: predicated region fallthrough
CT: control target
= control target key end

     0   :  { %s2469_s0 = inlined_call_operand.vmem [shape: bf16[2,128,768], index: 0, kind: input, shape index: {}, may-alias: {0,1,2}]   ;;  %s2470_s1 = inlined_call_operand.vmem [shape: bf16[2,128,768], index: 1, kind: input, shape index: {}, may-alias: {0,1,2}]   ;;  %s2471_s2 = inlined_call_operand.vmem [shape: bf16[2,128,768], index: 2, kind: input, shape index: {}, may-alias: {0,1,2}]   ;;  %s2472_s3 = inlined_call_operand.vmem [shape: f32[2,1,128], index: 3, kind: input, shape index: {}]   ;;  %s2473_s4 = inlined_call_operand.vmem [shape: bf16[2,128,256], index: 4, kind: output, shape index: {}]  }
   0x1   :  { %2475 = sst [smem:[#allocation8_spill]] %s2473_s4 }
   0x2   :  { %s2042_s15 = smov 0   ;;  %s2044_s16 = smov 0  }
   0x3   :  { %s2046_s17 = smov 0   ;;  %s2048_s18 = smov 0  }
   0x4   :  { %s2050_s19 = smov 0   ;;  %s2052_s20 = smov 0  }
   0x5   :  { %s2054_s21 = smov 0   ;;  %s2056_s22 = smov 0  }
   0x6   :  { %s2058_s23 = smov 0   ;;  %s2060_s24 = smov 0  }
   0x7   :  { %s2062_s25 = smov 0  }
   0x8 LB: > { %2476 = sst [smem:[#allocation6_spill]] %s1999_s21  ;;  %s29_s27 = sadd.s32 1, %s2007_s23  ;;  %s2015_s25 = sphi %s2062_s25, %s14_s25   ;;  %s2011_s24 = sphi %s2060_s24, %s2495_s24   ;;  %s2007_s23 = sphi %s2058_s23, %s2494_s23   ;;  %s2003_s22 = sphi %s2056_s22, %s2493_s22   ;;  %s1999_s21 = sphi %s2054_s21, %s2492_s21   ;;  %s1995_s20 = sphi %s2052_s20, %s2491_s20   ;;  %s1991_s19 = sphi %s2050_s19, %s2490_s19   ;;  %s1987_s18 = sphi %s2048_s18, %s2489_s18   ;;  %s1983_s17 = sphi %s2046_s17, %s2488_s17   ;;  %s1979_s16 = sphi %s2044_s16, %s2487_s16   ;;  %s1975_s15 = sphi %s2042_s15, %s2486_s15  }
   0x9   : > { %p31_p0 = scmp.ge.s32.totalorder %s29_s27, 2  ;;  %s33_s28 = sadd.s32 1, %s2011_s24 }
   0xa   : > { %s44_s29 = sadd.s32 1, %s1995_s20  ;;  %p51_p1 = scmp.ne.s32.totalorder %s1995_s20, %s1991_s19 }
   0xb   : > { %s2497_s27 = smov (%p31_p0, %s29_s27), 0  ;;  %s2499_s28 = smov (!%p31_p0, %s33_s28), %s2011_s24 }
   0xc   : > { %s40_s30 = ssub.s32 %s2007_s23, %s2497_s27  ;;  %p52_p2 = scmp.eq.s32.totalorder %s2015_s25, 0 }
   0xd   : > { %p35_p3 = scmp.ge.s32.totalorder %s2499_s28, 2  ;;  %s67_s5 = sadd.s32 2, %s2007_s23 }
   0xe   : > { %p2115_p4 = por %p52_p2, %p51_p1  ;;  %s68_s7 = sadd.s32 2, %s2497_s27 }
   0xf   : > { %s2501_s28 = smov (%p35_p3, %s2499_s28), 0  ;;  %s70_s8 = ssub.s32 %s67_s5, %s68_s7 }
  0x10   : > { %2478 = sst [smem:[#allocation7_spill]] %s2501_s28  ;;  %s74_s9 = sadd.s32 1, %s1987_s18 }
  0x11   : > { %s37_s10 = ssub.s32 %s2011_s24, %s2501_s28  ;;  %p81_p5 = scmp.ne.s32.totalorder %s1987_s18, %s1983_s17 }
  0x12   : > { %s41_s11 = sor.u32 %s40_s30, %s37_s10  ;;  %s71_s12 = sor.u32 %s70_s8, %s37_s10 }
  0x13   : > { %p42_p6 = scmp.eq.s32.totalorder %s41_s11, 0  ;;  %p72_p7 = scmp.eq.s32.totalorder %s71_s12, 0 }
  0x14   : > { %p2129_p8 = por %p81_p5, %p52_p2  ;;  %s97_s14 = sadd.s32 4, %s2007_s23 }
  0x15   : > { %s2135_s26 = scalar_select %p42_p6, %s1995_s20, %s44_s29  }
  0x16   : > { %s2138_s5 = scalar_select %p72_p7, %s1987_s18, %s74_s9  }
  0x17   : > { %s98_s7 = sadd.s32 4, %s2497_s27  ;;  %s104_s28 = sadd.s32 1, %s1979_s16 }
  0x18   : > { %s100_s4 = ssub.s32 %s97_s14, %s98_s7  ;;  %p111_p9 = scmp.ne.s32.totalorder %s1979_s16, %s1975_s15 }
  0x19   : > { %s101_s30 = sor.u32 %s100_s4, %s37_s10  ;;  %s2480_s21 = sadd.s32 4294967295, %s2015_s25  }
  0x1a   : > { %p171_p10 = scmp.eq.s32.totalorder %s2480_s21, 3  ;;  %p102_p11 = scmp.eq.s32.totalorder %s101_s30, 0 }
  0x1b   : > { %p2148_p12 = por %p111_p9, %p52_p2  ;;  %p1503_p0 = scmp.ge.s32.totalorder %s2015_s25, 4 }
  0x1c   : > { %p2155_p13 = por %p171_p10, %p51_p1 }
  0x1d   : > { %s2160_s29 = scalar_select %p102_p11, %s1979_s16, %s104_s28  }
  0x1e   : > { %193 = sbr.rel (%p1503_p0) target bundleno = 88 (0x58), region = 16 }
  0x25   : > { %196 = sbr.rel (!%p2115_p4) target bundleno = 54 (0x36), region = 20  ;;  %s198_s4 = sand.u32 (%p2115_p4), 1, %s1995_s20  }
  0x26   : > { %s1752_s21 = smul.u32 (%p2115_p4), 96, %s2011_s24  ;;  %s1504_s9 = sshll.u32 (%p2115_p4), %s198_s4, 6 }
  0x27   : > { %s200_s28 = scalar_lea.vmem (%p2115_p4), [#allocation2], %s1504_s9 }
  0x28   : > { %s205_s10 = sadd.s32 (%p2115_p4), %s2007_s23, %s1752_s21 }
  0x29   : > { %s1505_s12 = sshll.u32 (%p2115_p4), %s205_s10, 2 }
  0x2a   : > { %s2171_s30 = scalar_lea.vmem (%p2115_p4), %s2469_s0, %s1505_s12 }
  0x2b   : > { %v223_v0 = vld [vmem:[%s2171_s30] sm:$0xf] (%p2115_p4)  ;;  %v225_v1 = vld [vmem:[%s2171_s30 + $0x18] sm:$0xf] (%p2115_p4)  ;;  %v227_v2 = vld [vmem:[%s2171_s30 + $0x30] sm:$0xf] (%p2115_p4) }
  0x2c   : > { %224 = vst [vmem:[%s200_s28] sm:$0xf] %v223_v0  ;;  %226 = vst [vmem:[%s200_s28 + $0x4] sm:$0xf] %v225_v1  ;;  %v229_v3 = vld [vmem:[%s2171_s30 + $0x48] sm:$0xf] }
  0x2d   : > { %228 = vst [vmem:[%s200_s28 + $0x8] sm:$0xf] %v227_v2  ;;  %v231_v4 = vld [vmem:[%s2171_s30 + $0x60] sm:$0xf]  ;;  %v233_v5 = vld [vmem:[%s2171_s30 + $0x78] sm:$0xf] }
  0x2e   : > { %230 = vst [vmem:[%s200_s28 + $0xc] sm:$0xf] %v229_v3  ;;  %232 = vst [vmem:[%s200_s28 + $0x10] sm:$0xf] %v231_v4  ;;  %v235_v6 = vld [vmem:[%s2171_s30 + $0x90] sm:$0xf] }
  0x2f   : > { %234 = vst [vmem:[%s200_s28 + $0x14] sm:$0xf] %v233_v5  ;;  %v237_v7 = vld [vmem:[%s2171_s30 + $0xa8] sm:$0xf]  ;;  %v239_v8 = vld [vmem:[%s2171_s30 + $0xc0] sm:$0xf] }
  0x30   : > { %236 = vst [vmem:[%s200_s28 + $0x18] sm:$0xf] %v235_v6  ;;  %238 = vst [vmem:[%s200_s28 + $0x1c] sm:$0xf] %v237_v7  ;;  %v241_v9 = vld [vmem:[%s2171_s30 + $0xd8] sm:$0xf] }
  0x31   : > { %240 = vst [vmem:[%s200_s28 + $0x20] sm:$0xf] %v239_v8  ;;  %v243_v10 = vld [vmem:[%s2171_s30 + $0xf0] sm:$0xf]  ;;  %v245_v11 = vld [vmem:[%s2171_s30 + $0x108] sm:$0xf] }
  0x32   : > { %242 = vst [vmem:[%s200_s28 + $0x24] sm:$0xf] %v241_v9  ;;  %244 = vst [vmem:[%s200_s28 + $0x28] sm:$0xf] %v243_v10  ;;  %v247_v12 = vld [vmem:[%s2171_s30 + $0x120] sm:$0xf] }
  0x33   : > { %246 = vst [vmem:[%s200_s28 + $0x2c] sm:$0xf] %v245_v11  ;;  %v249_v13 = vld [vmem:[%s2171_s30 + $0x138] sm:$0xf]  ;;  %v251_v14 = vld [vmem:[%s2171_s30 + $0x150] sm:$0xf] }
  0x34   : > { %248 = vst [vmem:[%s200_s28 + $0x30] sm:$0xf] %v247_v12  ;;  %250 = vst [vmem:[%s200_s28 + $0x34] sm:$0xf] %v249_v13  ;;  %v253_v15 = vld [vmem:[%s2171_s30 + $0x168] sm:$0xf] }
  0x35   : > { %252 = vst [vmem:[%s200_s28 + $0x38] sm:$0xf] %v251_v14  ;;  %254 = vst [vmem:[%s200_s28 + $0x3c] sm:$0xf] %v253_v15 }
  0x36 PF: > { %309 = sbr.rel (!%p2129_p8) target bundleno = 71 (0x47), region = 61  ;;  %s311_s6 = sand.u32 (%p2129_p8), 1, %s1987_s18  }
  0x37   : > { %s1392_s4 = smul.u32 (%p2129_p8), 96, %s2011_s24  ;;  %s1506_s21 = sshll.u32 (%p2129_p8), %s311_s6, 6 }
  0x38   : > { %s313_s13 = scalar_lea.vmem (%p2129_p8), [#allocation3], %s1506_s21 }
  0x39   : > { %s1393_s9 = sadd.s32 (%p2129_p8), %s2007_s23, %s1392_s4 }
  0x3a   : > { %s1507_s10 = sshll.u32 (%p2129_p8), %s1393_s9, 2 }
  0x3b   : > { %s2197_s7 = scalar_lea.vmem (%p2129_p8), %s2470_s1, %s1507_s10 }
  0x3c   : > { %v1508_v16 = vld [vmem:[%s2197_s7 + $0x8] sm:$0xf] (%p2129_p8)  ;;  %v1509_v17 = vld [vmem:[%s2197_s7 + $0x20] sm:$0xf] (%p2129_p8)  ;;  %v1510_v18 = vld [vmem:[%s2197_s7 + $0x38] sm:$0xf] (%p2129_p8) }
  0x3d   : > { %335 = vst [vmem:[%s313_s13] sm:$0xf] %v1508_v16  ;;  %337 = vst [vmem:[%s313_s13 + $0x4] sm:$0xf] %v1509_v17  ;;  %v1511_v19 = vld [vmem:[%s2197_s7 + $0x50] sm:$0xf] }
  0x3e   : > { %339 = vst [vmem:[%s313_s13 + $0x8] sm:$0xf] %v1510_v18  ;;  %v1512_v20 = vld [vmem:[%s2197_s7 + $0x68] sm:$0xf]  ;;  %v1513_v21 = vld [vmem:[%s2197_s7 + $0x80] sm:$0xf] }
  0x3f   : > { %341 = vst [vmem:[%s313_s13 + $0xc] sm:$0xf] %v1511_v19  ;;  %343 = vst [vmem:[%s313_s13 + $0x10] sm:$0xf] %v1512_v20  ;;  %v1514_v22 = vld [vmem:[%s2197_s7 + $0x98] sm:$0xf] }
  0x40   : > { %345 = vst [vmem:[%s313_s13 + $0x14] sm:$0xf] %v1513_v21  ;;  %v1515_v23 = vld [vmem:[%s2197_s7 + $0xb0] sm:$0xf]  ;;  %v1516_v24 = vld [vmem:[%s2197_s7 + $0xc8] sm:$0xf] }
  0x41   : > { %347 = vst [vmem:[%s313_s13 + $0x18] sm:$0xf] %v1514_v22  ;;  %349 = vst [vmem:[%s313_s13 + $0x1c] sm:$0xf] %v1515_v23  ;;  %v1517_v25 = vld [vmem:[%s2197_s7 + $0xe0] sm:$0xf] }
  0x42   : > { %351 = vst [vmem:[%s313_s13 + $0x20] sm:$0xf] %v1516_v24  ;;  %v1518_v26 = vld [vmem:[%s2197_s7 + $0xf8] sm:$0xf]  ;;  %v1519_v27 = vld [vmem:[%s2197_s7 + $0x110] sm:$0xf] }
  0x43   : > { %353 = vst [vmem:[%s313_s13 + $0x24] sm:$0xf] %v1517_v25  ;;  %355 = vst [vmem:[%s313_s13 + $0x28] sm:$0xf] %v1518_v26  ;;  %v1520_v28 = vld [vmem:[%s2197_s7 + $0x128] sm:$0xf] }
  0x44   : > { %357 = vst [vmem:[%s313_s13 + $0x2c] sm:$0xf] %v1519_v27  ;;  %v1521_v29 = vld [vmem:[%s2197_s7 + $0x140] sm:$0xf]  ;;  %v1522_v30 = vld [vmem:[%s2197_s7 + $0x158] sm:$0xf] }
  0x45   : > { %359 = vst [vmem:[%s313_s13 + $0x30] sm:$0xf] %v1520_v28  ;;  %361 = vst [vmem:[%s313_s13 + $0x34] sm:$0xf] %v1521_v29  ;;  %v1523_v31 = vld [vmem:[%s2197_s7 + $0x170] sm:$0xf] }
  0x46   : > { %363 = vst [vmem:[%s313_s13 + $0x38] sm:$0xf] %v1522_v30  ;;  %365 = vst [vmem:[%s313_s13 + $0x3c] sm:$0xf] %v1523_v31 }
  0x47 PF: > { %420 = sbr.rel (!%p2148_p12) target bundleno = 88 (0x58), region = 102  ;;  %s422_s30 = sand.u32 (%p2148_p12), 1, %s1979_s16  }
  0x48   : > { %s1399_s28 = smul.u32 (%p2148_p12), 96, %s2011_s24  ;;  %s1524_s6 = sshll.u32 (%p2148_p12), %s422_s30, 6 }
  0x49   : > { %s424_s8 = scalar_lea.vmem (%p2148_p12), [#allocation4], %s1524_s6 }
  0x4a   : > { %s1400_s4 = sadd.s32 (%p2148_p12), %s2007_s23, %s1399_s28 }
  0x4b   : > { %s1525_s21 = sshll.u32 (%p2148_p12), %s1400_s4, 2 }
  0x4c   : > { %s2223_s12 = scalar_lea.vmem (%p2148_p12), %s2471_s2, %s1525_s21 }
  0x4d   : > { %v1526_v32 = vld [vmem:[%s2223_s12 + $0x10] sm:$0xf] (%p2148_p12)  ;;  %v1527_v33 = vld [vmem:[%s2223_s12 + $0x28] sm:$0xf] (%p2148_p12)  ;;  %v1528_v34 = vld [vmem:[%s2223_s12 + $0x40] sm:$0xf] (%p2148_p12) }
  0x4e   : > { %446 = vst [vmem:[%s424_s8] sm:$0xf] %v1526_v32  ;;  %448 = vst [vmem:[%s424_s8 + $0x4] sm:$0xf] %v1527_v33  ;;  %v1529_v35 = vld [vmem:[%s2223_s12 + $0x58] sm:$0xf] }
  0x4f   : > { %450 = vst [vmem:[%s424_s8 + $0x8] sm:$0xf] %v1528_v34  ;;  %v1530_v36 = vld [vmem:[%s2223_s12 + $0x70] sm:$0xf]  ;;  %v1531_v37 = vld [vmem:[%s2223_s12 + $0x88] sm:$0xf] }
  0x50   : > { %452 = vst [vmem:[%s424_s8 + $0xc] sm:$0xf] %v1529_v35  ;;  %454 = vst [vmem:[%s424_s8 + $0x10] sm:$0xf] %v1530_v36  ;;  %v1532_v38 = vld [vmem:[%s2223_s12 + $0xa0] sm:$0xf] }
  0x51   : > { %456 = vst [vmem:[%s424_s8 + $0x14] sm:$0xf] %v1531_v37  ;;  %v1533_v39 = vld [vmem:[%s2223_s12 + $0xb8] sm:$0xf]  ;;  %v1534_v40 = vld [vmem:[%s2223_s12 + $0xd0] sm:$0xf] }
  0x52   : > { %458 = vst [vmem:[%s424_s8 + $0x18] sm:$0xf] %v1532_v38  ;;  %460 = vst [vmem:[%s424_s8 + $0x1c] sm:$0xf] %v1533_v39  ;;  %v1535_v41 = vld [vmem:[%s2223_s12 + $0xe8] sm:$0xf] }
  0x53   : > { %462 = vst [vmem:[%s424_s8 + $0x20] sm:$0xf] %v1534_v40  ;;  %v1536_v42 = vld [vmem:[%s2223_s12 + $0x100] sm:$0xf]  ;;  %v1537_v43 = vld [vmem:[%s2223_s12 + $0x118] sm:$0xf] }
  0x54   : > { %464 = vst [vmem:[%s424_s8 + $0x24] sm:$0xf] %v1535_v41  ;;  %466 = vst [vmem:[%s424_s8 + $0x28] sm:$0xf] %v1536_v42  ;;  %v1538_v44 = vld [vmem:[%s2223_s12 + $0x130] sm:$0xf] }
  0x55   : > { %468 = vst [vmem:[%s424_s8 + $0x2c] sm:$0xf] %v1537_v43  ;;  %v1539_v45 = vld [vmem:[%s2223_s12 + $0x148] sm:$0xf]  ;;  %v1540_v46 = vld [vmem:[%s2223_s12 + $0x160] sm:$0xf] }
  0x56   : > { %470 = vst [vmem:[%s424_s8 + $0x30] sm:$0xf] %v1538_v44  ;;  %472 = vst [vmem:[%s424_s8 + $0x34] sm:$0xf] %v1539_v45  ;;  %v1541_v47 = vld [vmem:[%s2223_s12 + $0x178] sm:$0xf] }
  0x57   : > { %474 = vst [vmem:[%s424_s8 + $0x38] sm:$0xf] %v1540_v46  ;;  %476 = vst [vmem:[%s424_s8 + $0x3c] sm:$0xf] %v1541_v47 }
  0x58 PF: > { %p1542_p1 = scmp.ge.s32.totalorder %s2015_s25, 1  ;;  %p536_p2 = scmp.lt.s32.totalorder %s2015_s25, 5 }
  0x5a   : > { %p537_p3 = pnand %p1542_p1, %p536_p2 }
  0x5b   : > { %s550_s14 = sand.u32 (!%p537_p3), 1, %s1983_s17   ;;  %s543_s13 = sand.u32 (!%p537_p3), 1, %s1991_s19  }
  0x5c   : > { %540 = sbr.rel (%p537_p3) target bundleno = 949 (0x3b5), region = 147  ;;  %s1544_s7 = sshll.u32 (!%p537_p3), %s550_s14, 6 }
  0x5d   : > { %s552_s30 = scalar_lea.vmem (!%p537_p3), [#allocation3], %s1544_s7  ;;  %s2245_s28 = sshll.u32 (!%p537_p3), %s543_s13, 6 }
  0x5e   : > { %v1841_v48 = vld [vmem:[%s552_s30] sm:$0xff] (!%p537_p3)   ;;  %v1842_v49 = vld [vmem:[%s552_s30 + $0x8] sm:$0xff] (!%p537_p3)   ;;  %v1843_v50 = vld [vmem:[%s552_s30 + $0x10] sm:$0xff] (!%p537_p3)   ;;  %s2248_s6 = scalar_lea.vmem (!%p537_p3), [#allocation2], %s2245_s28  ;;  %p595_p4 = scmp.lt.s32.totalorder (!%p537_p3), %s2003_s22, 1 }
  0x5f   : > { %1688 = vmatprep.subr.bf16.mxu0 (!%p537_p3), %v1841_v48  ;;  %v1849_v51 = vld [vmem:[%s2248_s6] sm:$0xff] (!%p537_p3)   ;;  %v1844_v52 = vld [vmem:[%s552_s30 + $0x18] sm:$0xff] (!%p537_p3)   ;;  %v1846_v54 = vld [vmem:[%s552_s30 + $0x28] sm:$0xff] (!%p537_p3)   ;;  %s557_s9 = sand.u32 (!%p537_p3), 1, %s1975_s15   ;;  %s2403_s15 = scalar_lea.vmem (!%p537_p3), [#allocation5], %s2245_s28 }
  0x60   : > { %1689 = vmatpush3.bf16.xpose.msra.mxu0 (!%p537_p3), %v1841_v48  ;;  %1704 = vmatprep.mubr.bf16.mxu0 (!%p537_p3), %v1849_v51  ;;  %v1845_v53 = vld [vmem:[%s552_s30 + $0x20] sm:$0xff] (!%p537_p3)   ;;  %v1847_v55 = vld [vmem:[%s552_s30 + $0x30] sm:$0xff] (!%p537_p3)   ;;  %v1848_v56 = vld [vmem:[%s552_s30 + $0x38] sm:$0xff] (!%p537_p3)   ;;  %s1545_s10 = sshll.u32 (!%p537_p3), %s557_s9, 6 }
  0x61   : > { %1690 = vmatprep.subr.bf16.mxu0 (!%p537_p3), %v1842_v49  ;;  %v1850_v57 = vld [vmem:[%s2248_s6 + $0x8] sm:$0xff] (!%p537_p3)   ;;  %v1851_v58 = vld [vmem:[%s2248_s6 + $0x10] sm:$0xff] (!%p537_p3)   ;;  %v1852_v59 = vld [vmem:[%s2248_s6 + $0x18] sm:$0xff] (!%p537_p3)   ;;  %s2312_s12 = scalar_lea.vmem (!%p537_p3), [#allocation4], %s1545_s10 }
  0x62   : > { %v1853_v60 = vld [vmem:[%s2248_s6 + $0x20] sm:$0xff] (!%p537_p3)   ;;  %v1854_v61 = vld [vmem:[%s2248_s6 + $0x28] sm:$0xff] (!%p537_p3)   ;;  %v1855_v62 = vld [vmem:[%s2248_s6 + $0x30] sm:$0xff] (!%p537_p3)  }
  0x63   : > { %v1856_v63 = vld [vmem:[%s2248_s6 + $0x38] sm:$0xff]   ;;  %s596_s17 = scalar_select %p595_p4, %s2003_s22, 1  ;;  %v1859_v51 = vld [vmem:[%s2312_s12 + $0x10] sm:$0xff]  }
  0x64   : > { %s2483_s8 = sld [smem:[#allocation6_spill]] (%p2155_p13)  ;;  %s1589_s14 = sshll.u32 (%p2155_p13), %s2003_s22, 5 }
  0x65   : > { %s597_s21 = scalar_lea.vmem %s2472_s3, %s596_s17  ;;  %s2484_s28 = sld [smem:[#allocation8_spill]] (%p2155_p13) }
  0x66   : > { %v1563_v1 = vld [vmem:[%s597_s21] ss:$0 sm:$0xff] }
  0x68   : > { %1691 = vmatpush3.bf16.xpose.msra.mxu0 %v1842_v49  ;;  %v1857_v49 = vld [vmem:[%s2312_s12] sm:$0xff]  }
  0x69   : > { %1692 = vmatprep.subr.bf16.mxu0 %v1843_v50  ;;  %1720 = vmatprep.subr.bf16.mxu1 %v1857_v49 }
  0x6a   : > { %1721 = vmatpush3.bf16.msra.mxu1 %v1857_v49  ;;  %v1861_v49 = vld [vmem:[%s2312_s12 + $0x20] sm:$0xff]   ;;  %s1268_s7 = sadd.s32 (%p2155_p13), %s2483_s8, %s1589_s14 }
  0x6b   : > { %s1590_s11 = sshll.u32 (%p2155_p13), %s1268_s7, 2 }
  0x6c   : > { %s1270_s6 = scalar_lea.vmem (%p2155_p13), %s2484_s28, %s1590_s11 }
  0x70   : > { %1693 = vmatpush3.bf16.xpose.msra.mxu0 %v1843_v50  ;;  %v1858_v50 = vld [vmem:[%s2312_s12 + $0x8] sm:$0xff]  }
  0x71   : > { %1694 = vmatprep.subr.bf16.mxu0 %v1844_v52  ;;  %1722 = vmatprep.subr.bf16.mxu1 %v1858_v50 }
  0x72   : > { %1723 = vmatpush3.bf16.msra.mxu1 %v1858_v50 }
  0x73   : > { %1724 = vmatprep.subr.bf16.mxu1 %v1859_v51 }
  0x76   : > { %1725 = vmatpush3.bf16.msra.mxu1 %v1859_v51  ;;  %v1862_v51 = vld [vmem:[%s2312_s12 + $0x28] sm:$0xff]  }
  0x78   : > { %1695 = vmatpush3.bf16.xpose.msra.mxu0 %v1844_v52 }
  0x79   : > { %1696 = vmatprep.subr.bf16.mxu0 %v1845_v53 }
  0x80   : > { %1697 = vmatpush3.bf16.xpose.msra.mxu0 %v1845_v53 }
  0x81   : > { %1698 = vmatprep.subr.bf16.mxu0 %v1846_v54 }
  0x88   : > { %1699 = vmatpush3.bf16.xpose.msra.mxu0 %v1846_v54 }
  0x89   : > { %1700 = vmatprep.subr.bf16.mxu0 %v1847_v55 }
  0x90   : > { %1701 = vmatpush3.bf16.xpose.msra.mxu0 %v1847_v55 }
  0x91   : > { %1702 = vmatprep.subr.bf16.mxu0 %v1848_v56 }
  0x98   : > { %1703 = vmatpush3.bf16.xpose.msra.mxu0 %v1848_v56 }
  0x9f   : > { %1705 = vmatmul.mubr.bf16.vlgmr.msra.gmra.mrb[0].mxu0 %v1850_v57 }
  0xa0   : > { %1708 = vmatprep.mubr.bf16.mxu0 %v1851_v58 }
  0xa7   : > { %1709 = vmatmul.mubr.bf16.gmra.mrb[4].mxu0 %v1852_v59 }
  0xa8   : > { %1712 = vmatprep.mubr.bf16.mxu0 %v1853_v60 }
  0xaf   : > { %1713 = vmatmul.mubr.bf16.gmra.mrb[8].mxu0 %v1854_v61 }
  0xb0   : > { %1716 = vmatprep.mubr.bf16.mxu0 %v1855_v62 }
  0xb7   : > { %1717 = vmatmul.mubr.bf16.gmra.mrb[12].mxu0 %v1856_v63 }
 0x172   : > { %v1706_v0 = vpop.f32.mrb[0].mxu0 }
 0x173   : > { %v843_v2 = vmul.f32 0.125, %v1706_v0  ;;  %v778_v3 = vpop.f32.mrb[1].mxu0 }
 0x174   : > { %v841_v4 = vmul.f32 0.125, %v778_v3  ;;  %v1707_v5 = vpop.f32.mrb[2].mxu0 }
 0x175   : > { %v844_v6 = vmul.f32 0.125, %v1707_v5  ;;  %v781_v7 = vpop.f32.mrb[3].mxu0  ;;  %v2263_v8 = vadd.f32 %v1563_v1, %v843_v2 }
 0x176   : > { %v842_v9 = vmul.f32 0.125, %v781_v7  ;;  %v2265_v10 = vadd.f32 %v1563_v1, %v841_v4 }
 0x177   : > { %884 = vmax.xlane.f32.xlu1 %v2263_v8  ;;  %v2269_v11 = vadd.f32 %v1563_v1, %v844_v6 }
 0x178   : > { %880 = vmax.xlane.f32.xlu0 %v2265_v10  ;;  %v2271_v13 = vadd.f32 %v1563_v1, %v842_v9 }
 0x17a   : > { %v1710_v12 = vpop.f32.mrb[4].mxu0 }
 0x17b   : > { %886 = vmax.xlane.f32.xlu1 %v2269_v11  ;;  %v794_v14 = vpop.f32.mrb[5].mxu0  ;;  %v847_v18 = vmul.f32 0.125, %v1710_v12 }
 0x17c   : > { %v845_v15 = vmul.f32 0.125, %v794_v14  ;;  %882 = vmax.xlane.f32.xlu0 %v2271_v13  ;;  %v1711_v16 = vpop.f32.mrb[6].mxu0 }
 0x17d   : > { %v797_v17 = vpop.f32.mrb[7].mxu0  ;;  %v848_v21 = vmul.f32 0.125, %v1711_v16  ;;  %v2281_v24 = vadd.f32 %v1563_v1, %v847_v18 }
 0x17e   : > { %v846_v19 = vmul.f32 0.125, %v797_v17  ;;  %v2275_v20 = vadd.f32 %v1563_v1, %v845_v15 }
 0x17f   : > { %v2284_v28 = vadd.f32 %v1563_v1, %v848_v21 }
 0x180   : > { %888 = vmax.xlane.f32.xlu0 %v2275_v20  ;;  %v2278_v22 = vadd.f32 %v1563_v1, %v846_v19 }
 0x182   : > { %890 = vmax.xlane.f32.xlu1 %v2278_v22  ;;  %v1714_v23 = vpop.f32.mrb[8].mxu0 }
 0x183   : > { %v810_v25 = vpop.f32.mrb[9].mxu0  ;;  %v851_v30 = vmul.f32 0.125, %v1714_v23 }
 0x184   : > { %v849_v26 = vmul.f32 0.125, %v810_v25  ;;  %892 = vmax.xlane.f32.xlu0 %v2281_v24  ;;  %v1715_v27 = vpop.f32.mrb[10].mxu0 }
 0x185   : > { %v813_v29 = vpop.f32.mrb[11].mxu0  ;;  %v852_v33 = vmul.f32 0.125, %v1715_v27  ;;  %v2293_v36 = vadd.f32 %v1563_v1, %v851_v30 }
 0x186   : > { %v850_v31 = vmul.f32 0.125, %v813_v29  ;;  %894 = vmax.xlane.f32.xlu1 %v2284_v28  ;;  %v2287_v32 = vadd.f32 %v1563_v1, %v849_v26 }
 0x187   : > { %v2296_v40 = vadd.f32 %v1563_v1, %v852_v33 }
 0x188   : > { %896 = vmax.xlane.f32.xlu0 %v2287_v32  ;;  %v2290_v34 = vadd.f32 %v1563_v1, %v850_v31 }
 0x18a   : > { %898 = vmax.xlane.f32.xlu1 %v2290_v34  ;;  %v1718_v35 = vpop.f32.mrb[12].mxu0 }
 0x18b   : > { %v826_v37 = vpop.f32.mrb[13].mxu0  ;;  %v855_v42 = vmul.f32 0.125, %v1718_v35 }
 0x18c   : > { %v853_v38 = vmul.f32 0.125, %v826_v37  ;;  %900 = vmax.xlane.f32.xlu0 %v2293_v36  ;;  %v1719_v39 = vpop.f32.mrb[14].mxu0 }
 0x18d   : > { %v829_v41 = vpop.f32.mrb[15].mxu0  ;;  %v856_v45 = vmul.f32 0.125, %v1719_v39  ;;  %v2305_v47 = vadd.f32 %v1563_v1, %v855_v42 }
 0x18e   : > { %v854_v43 = vmul.f32 0.125, %v829_v41  ;;  %902 = vmax.xlane.f32.xlu1 %v2296_v40  ;;  %v2299_v44 = vadd.f32 %v1563_v1, %v853_v38  ;;  %v1860_v41 = vld [vmem:[%s2312_s12 + $0x18] sm:$0xff]  }
 0x18f   : > { %v2308_v48 = vadd.f32 %v1563_v1, %v856_v45  ;;  %1726 = vmatprep.subr.bf16.mxu1 %v1860_v41 }
 0x190   : > { %904 = vmax.xlane.f32.xlu0 %v2299_v44  ;;  %v2302_v46 = vadd.f32 %v1563_v1, %v854_v43  ;;  %1727 = vmatpush3.bf16.msra.mxu1 %v1860_v41 }
 0x191   : > { %1728 = vmatprep.subr.bf16.mxu1 %v1861_v49 }
 0x192   : > { %906 = vmax.xlane.f32.xlu1 %v2302_v46 }
 0x194   : > { %908 = vmax.xlane.f32.xlu0 %v2305_v47  ;;  %1729 = vmatpush3.bf16.msra.mxu1 %v1861_v49 }
 0x195   : > { %1730 = vmatprep.subr.bf16.mxu1 %v1862_v51 }
 0x196   : > { %910 = vmax.xlane.f32.xlu1 %v2308_v48 }
 0x198   : > { %1731 = vmatpush3.bf16.msra.mxu1 %v1862_v51 }
 0x204   : > { %v885_v52 = vpop.xlane.xlu1 %884 }
 0x205   : > { %v914_v53 = vsub.f32 %v2263_v8, %v885_v52  ;;  %v881_v54 = vpop.xlane.xlu0 %880 }
 0x206   : > { %v912_v55 = vsub.f32 %v2265_v10, %v881_v54  ;;  %v1863_v54 = vld [vmem:[%s2312_s12 + $0x30] sm:$0xff]  }
 0x207   : > { %v932_v58 = vmul.f32 1.442695, %v914_v53  ;;  %1732 = vmatprep.subr.bf16.mxu1 %v1863_v54 }
 0x208   : > { %v928_v56 = vmul.f32 1.442695, %v912_v55  ;;  %v887_v57 = vpop.xlane.xlu1 %886  ;;  %1733 = vmatpush3.bf16.msra.mxu1 %v1863_v54 }
 0x209   : > { %v915_v59 = vsub.f32 %v2269_v11, %v887_v57  ;;  %v883_v60 = vpop.xlane.xlu0 %882 }
 0x20a   : > { %1865 = vpow2.f32 %v928_v56  ;;  %v913_v61 = vsub.f32 %v2271_v13, %v883_v60  ;;  %v1864_v56 = vld [vmem:[%s2312_s12 + $0x38] sm:$0xff]  }
 0x20b   : > { %1867 = vpow2.f32 %v932_v58  ;;  %v934_v63 = vmul.f32 1.442695, %v915_v59  ;;  %1734 = vmatprep.subr.bf16.mxu1 %v1864_v56 }
 0x20c   : > { %v930_v62 = vmul.f32 1.442695, %v913_v61  ;;  %1735 = vmatpush3.bf16.msra.mxu1 %v1864_v56 }
 0x20d   : > { %v889_v0 = vpop.xlane.xlu0 %888 }
 0x20e   : > { %1869 = vpow2.f32 %v930_v62  ;;  %v916_v1 = vsub.f32 %v2275_v20, %v889_v0 }
 0x20f   : > { %v891_v2 = vpop.xlane.xlu1 %890  ;;  %1871 = vpow2.f32 %v934_v63 }
 0x210   : > { %v936_v3 = vmul.f32 1.442695, %v916_v1  ;;  %v917_v4 = vsub.f32 %v2278_v22, %v891_v2 }
 0x211   : > { %v893_v5 = vpop.xlane.xlu0 %892 }
 0x212   : > { %1873 = vpow2.f32 %v936_v3  ;;  %v938_v6 = vmul.f32 1.442695, %v917_v4  ;;  %v918_v7 = vsub.f32 %v2281_v24, %v893_v5 }
 0x213   : > { %v895_v8 = vpop.xlane.xlu1 %894 }
 0x214   : > { %v2324_v9 = vpop.eup %1865  ;;  %v940_v10 = vmul.f32 1.442695, %v918_v7  ;;  %v919_v11 = vsub.f32 %v2284_v28, %v895_v8  ;;  %1875 = vpow2.f32 %v938_v6 }
 0x215   : > { %v897_v12 = vpop.xlane.xlu0 %896  ;;  %960 = vadd.xlane.f32.xlu0 %v2324_v9  ;;  %v2329_v15 = vpop.eup %1867 }
 0x216   : > { %1877 = vpow2.f32 %v940_v10  ;;  %v942_v13 = vmul.f32 1.442695, %v919_v11  ;;  %v920_v14 = vsub.f32 %v2287_v32, %v897_v12 }
 0x217   : > { %v899_v16 = vpop.xlane.xlu1 %898 }
 0x218   : > { %v2331_v17 = vpop.eup %1869  ;;  %v944_v18 = vmul.f32 1.442695, %v920_v14  ;;  %v921_v19 = vsub.f32 %v2290_v34, %v899_v16  ;;  %1879 = vpow2.f32 %v942_v13 }
 0x219   : > { %v901_v20 = vpop.xlane.xlu0 %900  ;;  %964 = vadd.xlane.f32.xlu0 %v2329_v15  ;;  %962 = vadd.xlane.f32.xlu1 %v2331_v17  ;;  %v2337_v23 = vpop.eup %1871 }
 0x21a   : > { %1881 = vpow2.f32 %v944_v18  ;;  %v946_v21 = vmul.f32 1.442695, %v921_v19  ;;  %v922_v22 = vsub.f32 %v2293_v36, %v901_v20 }
 0x21b   : > { %v903_v24 = vpop.xlane.xlu1 %902 }
 0x21c   : > { %v2339_v25 = vpop.eup %1873  ;;  %v948_v26 = vmul.f32 1.442695, %v922_v22  ;;  %v923_v27 = vsub.f32 %v2296_v40, %v903_v24  ;;  %1883 = vpow2.f32 %v946_v21 }
 0x21d   : > { %968 = vadd.xlane.f32.xlu0 %v2339_v25  ;;  %v905_v28 = vpop.xlane.xlu0 %904  ;;  %966 = vadd.xlane.f32.xlu1 %v2337_v23 }
 0x21e   : > { %1885 = vpow2.f32 %v948_v26  ;;  %v950_v29 = vmul.f32 1.442695, %v923_v27  ;;  %v924_v30 = vsub.f32 %v2299_v44, %v905_v28  ;;  %v2345_v31 = vpop.eup %1875 }
 0x21f   : > { %v907_v32 = vpop.xlane.xlu1 %906 }
 0x220   : > { %v2347_v33 = vpop.eup %1877  ;;  %v952_v34 = vmul.f32 1.442695, %v924_v30  ;;  %v925_v35 = vsub.f32 %v2302_v46, %v907_v32  ;;  %1887 = vpow2.f32 %v950_v29 }
 0x221   : > { %972 = vadd.xlane.f32.xlu0 %v2347_v33  ;;  %v909_v36 = vpop.xlane.xlu0 %908  ;;  %970 = vadd.xlane.f32.xlu1 %v2345_v31 }
 0x222   : > { %1889 = vpow2.f32 %v952_v34  ;;  %v954_v37 = vmul.f32 1.442695, %v925_v35  ;;  %v926_v38 = vsub.f32 %v2305_v47, %v909_v36  ;;  %v2353_v39 = vpop.eup %1879 }
 0x223   : > { %v911_v40 = vpop.xlane.xlu1 %910 }
 0x224   : > { %v2356_v42 = vpop.eup %1881  ;;  %v956_v43 = vmul.f32 1.442695, %v926_v38  ;;  %v927_v44 = vsub.f32 %v2308_v48, %v911_v40  ;;  %1891 = vpow2.f32 %v954_v37 }
 0x225   : > { %976 = vadd.xlane.f32.xlu0 %v2356_v42  ;;  %974 = vadd.xlane.f32.xlu1 %v2353_v39 }
 0x226   : > { %1893 = vpow2.f32 %v956_v43  ;;  %v958_v45 = vmul.f32 1.442695, %v927_v44  ;;  %v2361_v46 = vpop.eup %1883 }
 0x228   : > { %v2363_v47 = vpop.eup %1885  ;;  %1895 = vpow2.f32 %v958_v45 }
 0x229   : > { %980 = vadd.xlane.f32.xlu0 %v2363_v47  ;;  %978 = vadd.xlane.f32.xlu1 %v2361_v46 }
 0x22a   : > { %v2368_v48 = vpop.eup %1887 }
 0x22c   : > { %v2370_v50 = vpop.eup %1889 }
 0x22d   : > { %984 = vadd.xlane.f32.xlu0 %v2370_v50  ;;  %982 = vadd.xlane.f32.xlu1 %v2368_v48 }
 0x22e   : > { %v2375_v52 = vpop.eup %1891 }
 0x230   : > { %v2377_v53 = vpop.eup %1893 }
 0x231   : > { %988 = vadd.xlane.f32.xlu0 %v2377_v53  ;;  %986 = vadd.xlane.f32.xlu1 %v2375_v52 }
 0x232   : > { %v2382_v55 = vpop.eup %1895 }
 0x235   : > { %990 = vadd.xlane.f32.xlu1 %v2382_v55 }
 0x2a2   : > { %v961_v57 = vpop.xlane.xlu0 %960 }
 0x2a3   : > { %1897 = vrcp.f32 %v961_v57 }
 0x2a6   : > { %v965_v58 = vpop.xlane.xlu0 %964  ;;  %v963_v59 = vpop.xlane.xlu1 %962 }
 0x2a7   : > { %1899 = vrcp.f32 %v963_v59 }
 0x2a8   : > { %1901 = vrcp.f32 %v965_v58 }
 0x2aa   : > { %v969_v60 = vpop.xlane.xlu0 %968  ;;  %v967_v61 = vpop.xlane.xlu1 %966 }
 0x2ab   : > { %1903 = vrcp.f32 %v967_v61 }
 0x2ac   : > { %1905 = vrcp.f32 %v969_v60 }
 0x2ad   : > { %v1898_v0 = vpop.eup %1897 }
 0x2ae   : > { %v973_v62 = vpop.xlane.xlu0 %972  ;;  %v971_v63 = vpop.xlane.xlu1 %970  ;;  %v993_v4 = vmul.f32 %v1898_v0, %v2324_v9 }
 0x2af   : > { %1907 = vrcp.f32 %v971_v63 }
 0x2b0   : > { %1909 = vrcp.f32 %v973_v62 }
 0x2b1   : > { %v1900_v1 = vpop.eup %1899 }
 0x2b2   : > { %v977_v2 = vpop.xlane.xlu0 %976  ;;  %v975_v3 = vpop.xlane.xlu1 %974  ;;  %v995_v5 = vmul.f32 %v1900_v1, %v2331_v17 }
 0x2b3   : > { %v1902_v6 = vpop.eup %1901  ;;  %1911 = vrcp.f32 %v975_v3 }
 0x2b4   : > { %v1024_v7 = vpack.c.bf16 %v995_v5, %v993_v4  ;;  %1913 = vrcp.f32 %v977_v2  ;;  %v997_v12 = vmul.f32 %v1902_v6, %v2329_v15 }
 0x2b5   : > { %v1904_v8 = vpop.eup %1903 }
 0x2b6   : > { %v981_v10 = vpop.xlane.xlu0 %980  ;;  %v979_v11 = vpop.xlane.xlu1 %978  ;;  %1736 = vmatprep.mubr.bf16.mxu1 %v1024_v7  ;;  %v999_v13 = vmul.f32 %v1904_v8, %v2337_v23 }
 0x2b7   : > { %v1906_v14 = vpop.eup %1905  ;;  %1915 = vrcp.f32 %v979_v11 }
 0x2b8   : > { %v1025_v16 = vpack.c.bf16 %v999_v13, %v997_v12  ;;  %1917 = vrcp.f32 %v981_v10  ;;  %v1001_v17 = vmul.f32 %v1906_v14, %v2339_v25 }
 0x2b9   : > { %v1908_v18 = vpop.eup %1907 }
 0x2ba   : > { %v985_v9 = vpop.xlane.xlu0 %984  ;;  %v983_v19 = vpop.xlane.xlu1 %982  ;;  %1737 = vmatmul.mubr.bf16.vlgmr.msra.gmra.mrb[0].mxu1 %v1025_v16  ;;  %v1003_v20 = vmul.f32 %v1908_v18, %v2345_v31 }
 0x2bb   : > { %v1910_v21 = vpop.eup %1909  ;;  %1919 = vrcp.f32 %v983_v19 }
 0x2bc   : > { %v1026_v22 = vpack.c.bf16 %v1003_v20, %v1001_v17  ;;  %1921 = vrcp.f32 %v985_v9  ;;  %v1005_v23 = vmul.f32 %v1910_v21, %v2347_v33 }
 0x2bd   : > { %v1912_v24 = vpop.eup %1911 }
 0x2be   : > { %v989_v15 = vpop.xlane.xlu0 %988  ;;  %v987_v26 = vpop.xlane.xlu1 %986  ;;  %1740 = vmatprep.mubr.bf16.mxu1 %v1026_v22  ;;  %v1007_v27 = vmul.f32 %v1912_v24, %v2353_v39 }
 0x2bf   : > { %v1914_v28 = vpop.eup %1913  ;;  %1923 = vrcp.f32 %v987_v26 }
 0x2c0   : > { %1925 = vrcp.f32 %v989_v15  ;;  %v1027_v29 = vpack.c.bf16 %v1007_v27, %v1005_v23  ;;  %v1009_v31 = vmul.f32 %v1914_v28, %v2356_v42 }
 0x2c1   : > { %v1916_v30 = vpop.eup %1915 }
 0x2c2   : > { %v991_v25 = vpop.xlane.xlu1 %990  ;;  %1741 = vmatmul.mubr.bf16.gmra.mrb[4].mxu1 %v1027_v29  ;;  %v1011_v32 = vmul.f32 %v1916_v30, %v2361_v46  ;;  %v1918_v34 = vpop.eup %1917 }
 0x2c3   : > { %1927 = vrcp.f32 %v991_v25  ;;  %v1013_v33 = vmul.f32 %v1918_v34, %v2363_v47 }
 0x2c4   : > { %v1028_v35 = vpack.c.bf16 %v1011_v32, %v1009_v31 }
 0x2c5   : > { %v1920_v36 = vpop.eup %1919 }
 0x2c6   : > { %1744 = vmatprep.mubr.bf16.mxu1 %v1028_v35  ;;  %v1015_v37 = vmul.f32 %v1920_v36, %v2368_v48  ;;  %v1922_v38 = vpop.eup %1921 }
 0x2c7   : > { %v1017_v43 = vmul.f32 %v1922_v38, %v2370_v50 }
 0x2c8   : > { %v1029_v39 = vpack.c.bf16 %v1015_v37, %v1013_v33 }
 0x2c9   : > { %v1924_v40 = vpop.eup %1923 }
 0x2ca   : > { %v1926_v41 = vpop.eup %1925  ;;  %1745 = vmatmul.mubr.bf16.gmra.mrb[8].mxu1 %v1029_v39  ;;  %v1019_v42 = vmul.f32 %v1924_v40, %v2375_v52 }
 0x2cb   : > { %v1021_v46 = vmul.f32 %v1926_v41, %v2377_v53 }
 0x2cc   : > { %v1030_v45 = vpack.c.bf16 %v1019_v42, %v1017_v43 }
 0x2cd   : > { %v1928_v44 = vpop.eup %1927 }
 0x2ce   : > { %v1023_v49 = vmul.f32 %v1928_v44, %v2382_v55  ;;  %1748 = vmatprep.mubr.bf16.mxu1 %v1030_v45 }
 0x2d0   : > { %v1031_v47 = vpack.c.bf16 %v1023_v49, %v1021_v46 }
 0x2d2   : > { %1749 = vmatmul.mubr.bf16.gmra.mrb[12].mxu1 %v1031_v47 }
 0x38d   : > { %v1738_v48 = vpop.f32.mrb[0].mxu1 }
 0x38e   : > { %v1114_v51 = vpop.f32.mrb[1].mxu1 }
 0x38f   : > { %v1739_v54 = vpop.f32.mrb[2].mxu1 }
 0x390   : > { %v1617_v56 = vpack.c.bf16 %v1739_v54, %v1738_v48  ;;  %v1117_v57 = vpop.f32.mrb[3].mxu1 }
 0x391   : > { %v1612_v58 = vpack.c.bf16 %v1117_v57, %v1114_v51 }
 0x392   : > { %1649 = vst [vmem:[%s2403_s15 + $0x8] sm:$0xff] %v1617_v56  }
 0x393   : > { %1613 = vst [vmem:[%s2403_s15] sm:$0xff] %v1612_v58  }
 0x395   : > { %v1742_v50 = vpop.f32.mrb[4].mxu1 }
 0x396   : > { %v1130_v52 = vpop.f32.mrb[5].mxu1 }
 0x397   : > { %v1743_v53 = vpop.f32.mrb[6].mxu1 }
 0x398   : > { %v1627_v55 = vpack.c.bf16 %v1743_v53, %v1742_v50  ;;  %v1133_v59 = vpop.f32.mrb[7].mxu1 }
 0x399   : > { %v1622_v60 = vpack.c.bf16 %v1133_v59, %v1130_v52  ;;  %v1290_v12 = vld [vmem:[%s2403_s15 + $0x8] sm:$0xf] (%p2155_p13)  ;;  %v1292_v13 = vld [vmem:[%s2403_s15 + $0xc] sm:$0xf] (%p2155_p13) }
 0x39a   : > { %1651 = vst [vmem:[%s2403_s15 + $0x18] sm:$0xff] %v1627_v55   ;;  %v1286_v10 = vld [vmem:[%s2403_s15] sm:$0xf] (%p2155_p13)  ;;  %v1288_v11 = vld [vmem:[%s2403_s15 + $0x4] sm:$0xf] (%p2155_p13) }
 0x39b   : > { %1650 = vst [vmem:[%s2403_s15 + $0x10] sm:$0xff] %v1622_v60   ;;  %1287 = vst [vmem:[%s1270_s6] sm:$0xf] (%p2155_p13), %v1286_v10 }
 0x39c   : > { %1289 = vst [vmem:[%s1270_s6 + $0x8] sm:$0xf] (%p2155_p13), %v1288_v11  ;;  %1291 = vst [vmem:[%s1270_s6 + $0x10] sm:$0xf] (%p2155_p13), %v1290_v12 }
 0x39d   : > { %v1746_v61 = vpop.f32.mrb[8].mxu1  ;;  %1293 = vst [vmem:[%s1270_s6 + $0x18] sm:$0xf] (%p2155_p13), %v1292_v13 }
 0x39e   : > { %v1146_v62 = vpop.f32.mrb[9].mxu1 }
 0x39f   : > { %v1747_v63 = vpop.f32.mrb[10].mxu1 }
 0x3a0   : > { %v1637_v0 = vpack.c.bf16 %v1747_v63, %v1746_v61  ;;  %v1149_v1 = vpop.f32.mrb[11].mxu1 }
 0x3a1   : > { %v1632_v2 = vpack.c.bf16 %v1149_v1, %v1146_v62  ;;  %v1298_v18 = vld [vmem:[%s2403_s15 + $0x18] sm:$0xf] (%p2155_p13)  ;;  %v1300_v9 = vld [vmem:[%s2403_s15 + $0x1c] sm:$0xf] (%p2155_p13) }
 0x3a2   : > { %1653 = vst [vmem:[%s2403_s15 + $0x28] sm:$0xff] %v1637_v0   ;;  %v1294_v14 = vld [vmem:[%s2403_s15 + $0x10] sm:$0xf] (%p2155_p13)  ;;  %v1296_v16 = vld [vmem:[%s2403_s15 + $0x14] sm:$0xf] (%p2155_p13) }
 0x3a3   : > { %1652 = vst [vmem:[%s2403_s15 + $0x20] sm:$0xff] %v1632_v2   ;;  %1295 = vst [vmem:[%s1270_s6 + $0x20] sm:$0xf] (%p2155_p13), %v1294_v14 }
 0x3a4   : > { %1297 = vst [vmem:[%s1270_s6 + $0x28] sm:$0xf] (%p2155_p13), %v1296_v16  ;;  %1299 = vst [vmem:[%s1270_s6 + $0x30] sm:$0xf] (%p2155_p13), %v1298_v18 }
 0x3a5   : > { %v1750_v3 = vpop.f32.mrb[12].mxu1  ;;  %1263 = sbr.rel (!%p2155_p13) target bundleno = 949 (0x3b5), region = 163  ;;  %1301 = vst [vmem:[%s1270_s6 + $0x38] sm:$0xf] (%p2155_p13), %v1300_v9 }
 0x3a6   : > { %v1162_v4 = vpop.f32.mrb[13].mxu1 }
 0x3a7   : > { %v1751_v5 = vpop.f32.mrb[14].mxu1 }
 0x3a8   : > { %v1647_v6 = vpack.c.bf16 %v1751_v5, %v1750_v3  ;;  %v1165_v7 = vpop.f32.mrb[15].mxu1 }
 0x3a9   : > { %v1642_v8 = vpack.c.bf16 %v1165_v7, %v1162_v4  ;;  %v1306_v20 = vld [vmem:[%s2403_s15 + $0x28] sm:$0xf] (%p2155_p13)  ;;  %v1308_v21 = vld [vmem:[%s2403_s15 + $0x2c] sm:$0xf] (%p2155_p13) }
 0x3aa   : > { %1655 = vst [vmem:[%s2403_s15 + $0x38] sm:$0xff] %v1647_v6   ;;  %v1302_v19 = vld [vmem:[%s2403_s15 + $0x20] sm:$0xf] (%p2155_p13)  ;;  %v1304_v17 = vld [vmem:[%s2403_s15 + $0x24] sm:$0xf] (%p2155_p13) }
 0x3ab   : > { %1654 = vst [vmem:[%s2403_s15 + $0x30] sm:$0xff] %v1642_v8   ;;  %1303 = vst [vmem:[%s1270_s6 + $0x40] sm:$0xf] (%p2155_p13), %v1302_v19 }
 0x3ac   : > { %1305 = vst [vmem:[%s1270_s6 + $0x48] sm:$0xf] %v1304_v17  ;;  %1307 = vst [vmem:[%s1270_s6 + $0x50] sm:$0xf] %v1306_v20 }
 0x3ad   : > { %1309 = vst [vmem:[%s1270_s6 + $0x58] sm:$0xf] %v1308_v21 }
 0x3b1   : > { %v1314_v15 = vld [vmem:[%s2403_s15 + $0x38] sm:$0xf]  ;;  %v1316_v26 = vld [vmem:[%s2403_s15 + $0x3c] sm:$0xf] }
 0x3b2   : > { %v1310_v22 = vld [vmem:[%s2403_s15 + $0x30] sm:$0xf]  ;;  %v1312_v24 = vld [vmem:[%s2403_s15 + $0x34] sm:$0xf]  ;;  %1315 = vst [vmem:[%s1270_s6 + $0x70] sm:$0xf] %v1314_v15 }
 0x3b3   : > { %1311 = vst [vmem:[%s1270_s6 + $0x60] sm:$0xf] %v1310_v22  ;;  %1313 = vst [vmem:[%s1270_s6 + $0x68] sm:$0xf] %v1312_v24 }
 0x3b4   : > { %1317 = vst [vmem:[%s1270_s6 + $0x78] sm:$0xf] %v1316_v26 }
 0x3b5 PF: > { %s14_s25 = sadd.s32 1, %s2015_s25   ;;  %s2485_s4 = sld [smem:[#allocation7_spill]] }
 0x3b6   : > { %p11_p5 = scmp.ge.s32.totalorder %s14_s25, 6   ;;  %s2486_s15 = smov %s1979_s16 }
 0x3b7   : > { %s2487_s16 = smov %s2160_s29  ;;  %s2488_s17 = smov %s1987_s18 }
 0x3b8   : > { %s2489_s18 = smov %s2138_s5  ;;  %s2490_s19 = smov %s1995_s20 }
 0x3b9   : > { %s2491_s20 = smov %s2135_s26  ;;  %s2492_s21 = smov %s2007_s23 }
 0x3ba   : > { %s2493_s22 = smov %s2011_s24  ;;  %s2494_s23 = smov %s2497_s27 }
 0x3bb   : > { %s2495_s24 = smov %s2485_s4  ;;  %13 = sbr.rel (!%p11_p5) target bundleno = 8 (0x8), region = 254 }

// kernel: bigbird_block_forward.3
= control target key start
LH: loop header
LB: loop body
LE: loop exit
PB: predicated region body
PF: predicated region fallthrough
CT: control target
= control target key end

     0   :  { %s1695_s12 = smov 0   ;;  %s1697_s13 = smov 0   ;;  %s2112_s0 = inlined_call_operand.vmem [shape: bf16[2,128,128], index: 0, kind: input, shape index: {}]   ;;  %s2113_s1 = inlined_call_operand.vmem [shape: bf16[128,768], index: 1, kind: input, shape index: {}]   ;;  %s2114_s2 = inlined_call_operand.vmem [shape: f32[1,768], index: 2, kind: input, shape index: {}]   ;;  %s2115_s3 = inlined_call_operand.vmem [shape: bf16[2,128,768], index: 3, kind: output, shape index: {}]  }
   0x1   :  { %s1699_s14 = smov 0  }
   0x2 LB: > { %s25_s15 = sadd.s32 1, %s1668_s13  ;;  %p1369_p0 = scmp.ge.s32.totalorder %s1672_s14, 1  ;;  %s1672_s14 = sphi %s1699_s14, %s13_s14   ;;  %s1668_s13 = sphi %s1697_s13, %s2117_s13   ;;  %s1664_s12 = sphi %s1695_s12, %s2116_s12  }
   0x3   : > { %p27_p1 = scmp.ge.s32.totalorder %s25_s15, 2  ;;  %p158_p2 = scmp.lt.s32.totalorder %s1672_s14, 3 }
   0x5   : > { %s2119_s15 = smov (%p27_p1, %s25_s15), 0  ;;  %p159_p3 = pnand %p1369_p0, %p158_p2 }
   0x6   : > { %v1570_v0 = vld [vmem:[%s2113_s1 + $0x4] ss:$24 sps:$4 sm:$0xff] (!%p159_p3)   ;;  %p192_p4 = scmp.lt.s32.totalorder (!%p159_p3), %s1664_s12, 1  ;;  %v1572_v1 = vld [vmem:[%s2113_s1] ss:$24 sps:$4 sm:$0xff] (!%p159_p3)   ;;  %v1674_v2 = vmov (!%p159_p3), 0   ;;  %v279_v57 = vlaneseq (!%p159_p3) }
   0x7   : > { %162 = sbr.rel (%p159_p3) target bundleno = 348 (0x15c), region = 32  ;;  %629 = vmatprep.mubr.bf16.mxu0 (!%p159_p3), %v1674_v2  ;;  %669 = vmatprep.mubr.bf16.mxu1 (!%p159_p3), %v1674_v2  ;;  %v1573_v3 = vld [vmem:[%s2113_s1 + $0x34] ss:$24 sps:$4 sm:$0xff] (!%p159_p3)   ;;  %v1575_v4 = vld [vmem:[%s2113_s1 + $0x30] ss:$24 sps:$4 sm:$0xff] (!%p159_p3)  }
   0x8   : > { %597 = vmatprep.subr.bf16.mxu0 (!%p159_p3), %v1570_v0  ;;  %1528 = vmatprep.subr.bf16.mxu1 (!%p159_p3), %v1570_v0  ;;  %v1576_v5 = vld [vmem:[%s2113_s1 + $0x64] ss:$24 sps:$4 sm:$0xff] (!%p159_p3)   ;;  %v1578_v6 = vld [vmem:[%s2113_s1 + $0x60] ss:$24 sps:$4 sm:$0xff] (!%p159_p3)   ;;  %v1579_v7 = vld [vmem:[%s2113_s1 + $0x94] ss:$24 sps:$4 sm:$0xff] (!%p159_p3)  }
   0x9   : > { %598 = vmatpush1.bf16.msra.mxu0 (!%p159_p3), %v1572_v1  ;;  %1536 = vmatpush1.bf16.msra.mxu1 (!%p159_p3), %v1572_v1  ;;  %v1581_v8 = vld [vmem:[%s2113_s1 + $0x90] ss:$24 sps:$4 sm:$0xff] (!%p159_p3)   ;;  %v1582_v9 = vld [vmem:[%s2113_s1 + $0xc4] ss:$24 sps:$4 sm:$0xff] (!%p159_p3)   ;;  %v1584_v10 = vld [vmem:[%s2113_s1 + $0xc0] ss:$24 sps:$4 sm:$0xff] (!%p159_p3)  }
   0xa   : > { %599 = vmatprep.subr.bf16.mxu0 (!%p159_p3), %v1573_v3  ;;  %1529 = vmatprep.subr.bf16.mxu1 (!%p159_p3), %v1573_v3  ;;  %v1585_v11 = vld [vmem:[%s2113_s1 + $0xf4] ss:$24 sps:$4 sm:$0xff] (!%p159_p3)   ;;  %v1587_v12 = vld [vmem:[%s2113_s1 + $0xf0] ss:$24 sps:$4 sm:$0xff] (!%p159_p3)   ;;  %v1588_v13 = vld [vmem:[%s2113_s1 + $0x124] ss:$24 sps:$4 sm:$0xff] (!%p159_p3)  }
   0xb   : > { %v1590_v14 = vld [vmem:[%s2113_s1 + $0x120] ss:$24 sps:$4 sm:$0xff] (!%p159_p3)   ;;  %v1591_v15 = vld [vmem:[%s2113_s1 + $0x154] ss:$24 sps:$4 sm:$0xff] (!%p159_p3)   ;;  %v1593_v16 = vld [vmem:[%s2113_s1 + $0x150] ss:$24 sps:$4 sm:$0xff] (!%p159_p3)  }
   0xc   : > { %v1598_v17 = vld [vmem:[%s2113_s1 + $0xc] ss:$24 sps:$4 sm:$0xff] (!%p159_p3)   ;;  %v1596_v21 = vld [vmem:[%s2113_s1 + $0x8] ss:$24 sps:$4 sm:$0xff] (!%p159_p3)   ;;  %v1604_v23 = vld [vmem:[%s2113_s1 + $0x3c] ss:$24 sps:$4 sm:$0xff] (!%p159_p3)  }
   0xd   : > { %600 = vmatpush1.bf16.msra.mxu0 (!%p159_p3), %v1575_v4  ;;  %1537 = vmatpush1.bf16.msra.mxu1 (!%p159_p3), %v1575_v4  ;;  %v1601_v18 = vld [vmem:[%s2113_s1 + $0x14] ss:$24 sps:$4 sm:$0xff] (!%p159_p3)   ;;  %v1599_v22 = vld [vmem:[%s2113_s1 + $0x10] ss:$24 sps:$4 sm:$0xff] (!%p159_p3)   ;;  %v1607_v24 = vld [vmem:[%s2113_s1 + $0x44] ss:$24 sps:$4 sm:$0xff] (!%p159_p3)  }
   0xe   : > { %s2121_s12 = smov (!%p192_p4, %s1664_s12), 1  ;;  %601 = vmatprep.subr.bf16.mxu0 %v1576_v5  ;;  %1530 = vmatprep.subr.bf16.mxu1 %v1576_v5  ;;  %v1602_v25 = vld [vmem:[%s2113_s1 + $0x38] ss:$24 sps:$4 sm:$0xff]   ;;  %v1612_v27 = vld [vmem:[%s2113_s1 + $0x6c] ss:$24 sps:$4 sm:$0xff]   ;;  %v1922_v58 = vshrl.u32 %v279_v57, 7 }
   0xf   : > { %s1479_s26 = sshll.u32 %s2121_s12, 6  ;;  %v1605_v26 = vld [vmem:[%s2113_s1 + $0x40] ss:$24 sps:$4 sm:$0xff]   ;;  %v1615_v28 = vld [vmem:[%s2113_s1 + $0x74] ss:$24 sps:$4 sm:$0xff]   ;;  %s1544_s28 = smul.u32 384, %s2121_s12 }
  0x10   : > { %s1742_s6 = scalar_lea.vmem %s2112_s0, %s1479_s26  ;;  %v1610_v31 = vld [vmem:[%s2113_s1 + $0x68] ss:$24 sps:$4 sm:$0xff]   ;;  %v1618_v33 = vld [vmem:[%s2113_s1 + $0x9c] ss:$24 sps:$4 sm:$0xff]   ;;  %v1616_v35 = vld [vmem:[%s2113_s1 + $0x98] ss:$24 sps:$4 sm:$0xff]  }
  0x11   : > { %602 = vmatpush1.bf16.msra.mxu0 %v1578_v6  ;;  %1538 = vmatpush1.bf16.msra.mxu1 %v1578_v6  ;;  %v1778_v19 = vld [vmem:[%s1742_s6] sm:$0xff]   ;;  %v1812_v29 = vld [vmem:[%s1742_s6 + $0x8] sm:$0xff]   ;;  %v1622_v39 = vld [vmem:[%s1742_s6 + $0x10] sm:$0xff]   ;;  %v281_v59 = vsub.s32 0, %v1922_v58  ;;  %v285_v61 = vsub.s32 1, %v1922_v58  ;;  %s1945_s4 = scalar_lea.vmem %s2115_s3, %s1544_s28 }
  0x12   : > { %603 = vmatprep.subr.bf16.mxu0 %v1579_v7  ;;  %1531 = vmatprep.subr.bf16.mxu1 %v1579_v7  ;;  %v1781_v20 = vld [vmem:[%s1742_s6 + $0x20] sm:$0xff]   ;;  %v1815_v30 = vld [vmem:[%s1742_s6 + $0x28] sm:$0xff]   ;;  %v1847_v40 = vld [vmem:[%s1742_s6 + $0x30] sm:$0xff]  }
  0x13   : > { %v1613_v32 = vld [vmem:[%s2113_s1 + $0x70] ss:$24 sps:$4 sm:$0xff]   ;;  %v1621_v34 = vld [vmem:[%s2113_s1 + $0xa4] ss:$24 sps:$4 sm:$0xff]   ;;  %v1619_v36 = vld [vmem:[%s2113_s1 + $0xa0] ss:$24 sps:$4 sm:$0xff]  }
  0x14   : > { %v1626_v37 = vld [vmem:[%s2113_s1 + $0xcc] ss:$24 sps:$4 sm:$0xff]   ;;  %v1624_v41 = vld [vmem:[%s2113_s1 + $0xc8] ss:$24 sps:$4 sm:$0xff]   ;;  %v1632_v43 = vld [vmem:[%s2113_s1 + $0xfc] ss:$24 sps:$4 sm:$0xff]  }
  0x15   : > { %604 = vmatpush1.bf16.msra.mxu0 %v1581_v8  ;;  %1539 = vmatpush1.bf16.msra.mxu1 %v1581_v8  ;;  %v1629_v38 = vld [vmem:[%s2113_s1 + $0xd4] ss:$24 sps:$4 sm:$0xff]   ;;  %v1627_v42 = vld [vmem:[%s2113_s1 + $0xd0] ss:$24 sps:$4 sm:$0xff]   ;;  %v1635_v44 = vld [vmem:[%s2113_s1 + $0x104] ss:$24 sps:$4 sm:$0xff]  }
  0x16   : > { %605 = vmatprep.subr.bf16.mxu0 %v1582_v9  ;;  %1532 = vmatprep.subr.bf16.mxu1 %v1582_v9  ;;  %v1630_v45 = vld [vmem:[%s2113_s1 + $0xf8] ss:$24 sps:$4 sm:$0xff]   ;;  %v1640_v47 = vld [vmem:[%s2113_s1 + $0x12c] ss:$24 sps:$4 sm:$0xff]   ;;  %v1638_v51 = vld [vmem:[%s2113_s1 + $0x128] ss:$24 sps:$4 sm:$0xff]  }
  0x17   : > { %v1633_v46 = vld [vmem:[%s2113_s1 + $0x100] ss:$24 sps:$4 sm:$0xff]   ;;  %v1643_v48 = vld [vmem:[%s2113_s1 + $0x134] ss:$24 sps:$4 sm:$0xff]   ;;  %v1641_v52 = vld [vmem:[%s2113_s1 + $0x130] ss:$24 sps:$4 sm:$0xff]  }
  0x18   : > { %v1636_v49 = vld [vmem:[%s1742_s6 + $0x18] sm:$0xff]   ;;  %v1928_v60 = vld [vmem:[%s2114_s2] sm:$0x3f] }
  0x19   : > { %606 = vmatpush1.bf16.msra.mxu0 %v1584_v10  ;;  %1540 = vmatpush1.bf16.msra.mxu1 %v1584_v10  ;;  %v1637_v50 = vld [vmem:[%s1742_s6 + $0x38] sm:$0xff]   ;;  %v1932_v62 = vrot.slane %v1928_v60, %v281_v59  ;;  %v1935_v63 = vrot.slane %v1928_v60, %v285_v61 }
  0x1a   : > { %607 = vmatprep.subr.bf16.mxu0 %v1585_v11  ;;  %1533 = vmatprep.subr.bf16.mxu1 %v1585_v11  ;;  %v1646_v53 = vld [vmem:[%s2113_s1 + $0x15c] ss:$24 sps:$4 sm:$0xff]   ;;  %v1644_v55 = vld [vmem:[%s2113_s1 + $0x158] ss:$24 sps:$4 sm:$0xff]  }
  0x1b   : > { %v1649_v54 = vld [vmem:[%s2113_s1 + $0x164] ss:$24 sps:$4 sm:$0xff]   ;;  %v1647_v56 = vld [vmem:[%s2113_s1 + $0x160] ss:$24 sps:$4 sm:$0xff]  }
  0x1d   : > { %608 = vmatpush1.bf16.msra.mxu0 %v1587_v12  ;;  %1541 = vmatpush1.bf16.msra.mxu1 %v1587_v12 }
  0x1e   : > { %609 = vmatprep.subr.bf16.mxu0 %v1588_v13  ;;  %1534 = vmatprep.subr.bf16.mxu1 %v1588_v13 }
  0x21   : > { %610 = vmatpush1.bf16.msra.mxu0 %v1590_v14  ;;  %1542 = vmatpush1.bf16.msra.mxu1 %v1590_v14 }
  0x22   : > { %611 = vmatprep.subr.bf16.mxu0 %v1591_v15  ;;  %1535 = vmatprep.subr.bf16.mxu1 %v1591_v15 }
  0x25   : > { %612 = vmatpush1.bf16.msra.mxu0 %v1593_v16  ;;  %1543 = vmatpush1.bf16.msra.mxu1 %v1593_v16 }
  0x26   : > { %710 = vmatprep.subr.bf16.mxu1 %v1598_v17  ;;  %823 = vmatprep.subr.bf16.mxu0 %v1601_v18 }
  0x28   : > { %630 = vmatmul.mubr.bf16.vlgmr.msra.gmra.mrb[0].mxu0 %v1778_v19  ;;  %670 = vmatmul.mubr.bf16.vlgmr.msra.gmra.mrb[0].mxu1 %v1781_v20 }
  0x29   : > { %711 = vmatpush1.bf16.msra.mxu1 %v1596_v21  ;;  %824 = vmatpush1.bf16.msra.mxu0 %v1599_v22 }
  0x2a   : > { %712 = vmatprep.subr.bf16.mxu1 %v1604_v23  ;;  %825 = vmatprep.subr.bf16.mxu0 %v1607_v24 }
  0x2b   : > { %639 = vmatprep.mubr.bf16.mxu0 %v1674_v2  ;;  %679 = vmatprep.mubr.bf16.mxu1 %v1674_v2 }
  0x2d   : > { %713 = vmatpush1.bf16.msra.mxu1 %v1602_v25  ;;  %826 = vmatpush1.bf16.msra.mxu0 %v1605_v26 }
  0x2e   : > { %714 = vmatprep.subr.bf16.mxu1 %v1612_v27  ;;  %827 = vmatprep.subr.bf16.mxu0 %v1615_v28 }
  0x30   : > { %640 = vmatmul.mubr.bf16.gmra.mrb[4].mxu0 %v1812_v29  ;;  %680 = vmatmul.mubr.bf16.gmra.mrb[4].mxu1 %v1815_v30 }
  0x31   : > { %715 = vmatpush1.bf16.msra.mxu1 %v1610_v31  ;;  %828 = vmatpush1.bf16.msra.mxu0 %v1613_v32 }
  0x32   : > { %716 = vmatprep.subr.bf16.mxu1 %v1618_v33  ;;  %829 = vmatprep.subr.bf16.mxu0 %v1621_v34 }
  0x33   : > { %649 = vmatprep.mubr.bf16.mxu0 %v1674_v2  ;;  %689 = vmatprep.mubr.bf16.mxu1 %v1674_v2 }
  0x35   : > { %717 = vmatpush1.bf16.msra.mxu1 %v1616_v35  ;;  %830 = vmatpush1.bf16.msra.mxu0 %v1619_v36 }
  0x36   : > { %718 = vmatprep.subr.bf16.mxu1 %v1626_v37  ;;  %831 = vmatprep.subr.bf16.mxu0 %v1629_v38 }
  0x38   : > { %650 = vmatmul.mubr.bf16.gmra.mrb[8].mxu0 %v1622_v39  ;;  %690 = vmatmul.mubr.bf16.gmra.mrb[8].mxu1 %v1847_v40 }
  0x39   : > { %719 = vmatpush1.bf16.msra.mxu1 %v1624_v41  ;;  %832 = vmatpush1.bf16.msra.mxu0 %v1627_v42 }
  0x3a   : > { %720 = vmatprep.subr.bf16.mxu1 %v1632_v43  ;;  %833 = vmatprep.subr.bf16.mxu0 %v1635_v44 }
  0x3b   : > { %659 = vmatprep.mubr.bf16.mxu0 %v1674_v2  ;;  %699 = vmatprep.mubr.bf16.mxu1 %v1674_v2 }
  0x3d   : > { %721 = vmatpush1.bf16.msra.mxu1 %v1630_v45  ;;  %834 = vmatpush1.bf16.msra.mxu0 %v1633_v46 }
  0x3e   : > { %722 = vmatprep.subr.bf16.mxu1 %v1640_v47  ;;  %835 = vmatprep.subr.bf16.mxu0 %v1643_v48 }
  0x40   : > { %660 = vmatmul.mubr.bf16.gmra.mrb[12].mxu0 %v1636_v49  ;;  %700 = vmatmul.mubr.bf16.gmra.mrb[12].mxu1 %v1637_v50 }
  0x41   : > { %723 = vmatpush1.bf16.msra.mxu1 %v1638_v51  ;;  %836 = vmatpush1.bf16.msra.mxu0 %v1641_v52 }
  0x42   : > { %724 = vmatprep.subr.bf16.mxu1 %v1646_v53  ;;  %837 = vmatprep.subr.bf16.mxu0 %v1649_v54 }
  0x43   : > { %742 = vmatprep.mubr.bf16.mxu1 %v1674_v2  ;;  %855 = vmatprep.mubr.bf16.mxu0 %v1674_v2 }
  0x45   : > { %725 = vmatpush1.bf16.msra.mxu1 %v1644_v55  ;;  %838 = vmatpush1.bf16.msra.mxu0 %v1647_v56 }
  0x48   : > { %743 = vmatmul.mubr.bf16.vlgmr.msra.gmra.mrb[16].mxu1 %v1778_v19  ;;  %856 = vmatmul.mubr.bf16.vlgmr.msra.gmra.mrb[16].mxu0 %v1778_v19 }
  0x49   : > { %752 = vmatprep.mubr.bf16.mxu1 %v1674_v2  ;;  %865 = vmatprep.mubr.bf16.mxu0 %v1674_v2 }
  0x50   : > { %753 = vmatmul.mubr.bf16.gmra.mrb[20].mxu1 %v1812_v29  ;;  %866 = vmatmul.mubr.bf16.gmra.mrb[20].mxu0 %v1812_v29 }
  0x51   : > { %762 = vmatprep.mubr.bf16.mxu1 %v1674_v2  ;;  %875 = vmatprep.mubr.bf16.mxu0 %v1674_v2 }
  0x58   : > { %763 = vmatmul.mubr.bf16.gmra.mrb[24].mxu1 %v1622_v39  ;;  %876 = vmatmul.mubr.bf16.gmra.mrb[24].mxu0 %v1622_v39 }
  0x59   : > { %772 = vmatprep.mubr.bf16.mxu1 %v1674_v2  ;;  %885 = vmatprep.mubr.bf16.mxu0 %v1674_v2 }
  0x60   : > { %773 = vmatmul.mubr.bf16.gmra.mrb[28].mxu1 %v1636_v49  ;;  %886 = vmatmul.mubr.bf16.gmra.mrb[28].mxu0 %v1636_v49 }
  0x61   : > { %782 = vmatprep.mubr.bf16.mxu1 %v1674_v2  ;;  %895 = vmatprep.mubr.bf16.mxu0 %v1674_v2 }
  0x68   : > { %783 = vmatmul.mubr.bf16.gmra.mrb[32].mxu1 %v1781_v20  ;;  %896 = vmatmul.mubr.bf16.gmra.mrb[32].mxu0 %v1781_v20 }
  0x69   : > { %792 = vmatprep.mubr.bf16.mxu1 %v1674_v2  ;;  %905 = vmatprep.mubr.bf16.mxu0 %v1674_v2 }
  0x70   : > { %793 = vmatmul.mubr.bf16.gmra.mrb[36].mxu1 %v1815_v30  ;;  %906 = vmatmul.mubr.bf16.gmra.mrb[36].mxu0 %v1815_v30 }
  0x71   : > { %802 = vmatprep.mubr.bf16.mxu1 %v1674_v2  ;;  %915 = vmatprep.mubr.bf16.mxu0 %v1674_v2 }
  0x78   : > { %803 = vmatmul.mubr.bf16.gmra.mrb[40].mxu1 %v1847_v40  ;;  %916 = vmatmul.mubr.bf16.gmra.mrb[40].mxu0 %v1847_v40 }
  0x79   : > { %812 = vmatprep.mubr.bf16.mxu1 %v1674_v2  ;;  %925 = vmatprep.mubr.bf16.mxu0 %v1674_v2 }
  0x80   : > { %813 = vmatmul.mubr.bf16.gmra.mrb[44].mxu1 %v1637_v50  ;;  %926 = vmatmul.mubr.bf16.gmra.mrb[44].mxu0 %v1637_v50 }
  0xfb   : > { %v631_v0 = vpop.f32.mrb[0].mxu0  ;;  %v671_v1 = vpop.f32.mrb[0].mxu1 }
  0xfc   : > { %v632_v2 = vadd.f32 %v631_v0, %v1932_v62  ;;  %v672_v3 = vadd.f32 %v671_v1, %v1932_v62  ;;  %v633_v4 = vpop.f32.mrb[1].mxu0  ;;  %v673_v5 = vpop.f32.mrb[1].mxu1 }
  0xfd   : > { %v634_v6 = vadd.f32 %v633_v4, %v1935_v63  ;;  %v674_v7 = vadd.f32 %v673_v5, %v1935_v63  ;;  %v635_v8 = vpop.f32.mrb[2].mxu0  ;;  %v675_v9 = vpop.f32.mrb[2].mxu1 }
  0xfe   : > { %v636_v10 = vadd.f32 %v635_v8, %v1932_v62  ;;  %v676_v11 = vadd.f32 %v675_v9, %v1932_v62  ;;  %v637_v12 = vpop.f32.mrb[3].mxu0  ;;  %v677_v13 = vpop.f32.mrb[3].mxu1 }
  0xff   : > { %v1480_v14 = vpack.c.bf16 %v634_v6, %v632_v2  ;;  %v1504_v15 = vpack.c.bf16 %v674_v7, %v672_v3  ;;  %v638_v16 = vadd.f32 %v637_v12, %v1935_v63  ;;  %v678_v17 = vadd.f32 %v677_v13, %v1935_v63 }
 0x100   : > { %v289_v6 = vsub.s32 2, %v1922_v58  ;;  %v297_v7 = vsub.s32 4, %v1922_v58  ;;  %v293_v12 = vsub.s32 3, %v1922_v58  ;;  %v301_v13 = vsub.s32 5, %v1922_v58 }
 0x101   : > { %1224 = vst [vmem:[%s1945_s4] sm:$0xff] %v1480_v14  ;;  %1248 = vst [vmem:[%s1945_s4 + $0xc0] sm:$0xff] %v1504_v15  ;;  %v1483_v18 = vpack.c.bf16 %v638_v16, %v636_v10  ;;  %v1507_v19 = vpack.c.bf16 %v678_v17, %v676_v11 }
 0x103   : > { %1227 = vst [vmem:[%s1945_s4 + $0x18] sm:$0xff] %v1483_v18  ;;  %1251 = vst [vmem:[%s1945_s4 + $0xd8] sm:$0xff] %v1507_v19  ;;  %v641_v20 = vpop.f32.mrb[4].mxu0  ;;  %v681_v21 = vpop.f32.mrb[4].mxu1 }
 0x104   : > { %v642_v22 = vadd.f32 %v641_v20, %v1932_v62  ;;  %v682_v23 = vadd.f32 %v681_v21, %v1932_v62  ;;  %v643_v24 = vpop.f32.mrb[5].mxu0  ;;  %v683_v25 = vpop.f32.mrb[5].mxu1 }
 0x105   : > { %v644_v26 = vadd.f32 %v643_v24, %v1935_v63  ;;  %v684_v27 = vadd.f32 %v683_v25, %v1935_v63  ;;  %v645_v28 = vpop.f32.mrb[6].mxu0  ;;  %v685_v29 = vpop.f32.mrb[6].mxu1  ;;  %v2003_v25 = vrot.slane %v1928_v60, %v301_v13 }
 0x106   : > { %v646_v30 = vadd.f32 %v645_v28, %v1932_v62  ;;  %v686_v31 = vadd.f32 %v685_v29, %v1932_v62  ;;  %v647_v32 = vpop.f32.mrb[7].mxu0  ;;  %v687_v33 = vpop.f32.mrb[7].mxu1 }
 0x107   : > { %v1486_v34 = vpack.c.bf16 %v644_v26, %v642_v22  ;;  %v1510_v35 = vpack.c.bf16 %v684_v27, %v682_v23  ;;  %v648_v36 = vadd.f32 %v647_v32, %v1935_v63  ;;  %v688_v37 = vadd.f32 %v687_v33, %v1935_v63 }
 0x108   : > { %v1992_v22 = vrot.slane %v1928_v60, %v289_v6  ;;  %v1995_v23 = vrot.slane %v1928_v60, %v297_v7 }
 0x109   : > { %1230 = vst [vmem:[%s1945_s4 + $0x30] sm:$0xff] %v1486_v34  ;;  %1254 = vst [vmem:[%s1945_s4 + $0xf0] sm:$0xff] %v1510_v35  ;;  %v1489_v38 = vpack.c.bf16 %v648_v36, %v646_v30  ;;  %v1513_v39 = vpack.c.bf16 %v688_v37, %v686_v31 }
 0x10b   : > { %1233 = vst [vmem:[%s1945_s4 + $0x48] sm:$0xff] %v1489_v38  ;;  %1257 = vst [vmem:[%s1945_s4 + $0x108] sm:$0xff] %v1513_v39  ;;  %v651_v40 = vpop.f32.mrb[8].mxu0  ;;  %v691_v41 = vpop.f32.mrb[8].mxu1 }
 0x10c   : > { %v652_v42 = vadd.f32 %v651_v40, %v1932_v62  ;;  %v692_v43 = vadd.f32 %v691_v41, %v1932_v62  ;;  %v653_v44 = vpop.f32.mrb[9].mxu0  ;;  %v693_v45 = vpop.f32.mrb[9].mxu1 }
 0x10d   : > { %v654_v46 = vadd.f32 %v653_v44, %v1935_v63  ;;  %v694_v47 = vadd.f32 %v693_v45, %v1935_v63  ;;  %v655_v48 = vpop.f32.mrb[10].mxu0  ;;  %v695_v49 = vpop.f32.mrb[10].mxu1 }
 0x10e   : > { %v656_v50 = vadd.f32 %v655_v48, %v1932_v62  ;;  %v696_v51 = vadd.f32 %v695_v49, %v1932_v62  ;;  %v657_v52 = vpop.f32.mrb[11].mxu0  ;;  %v697_v53 = vpop.f32.mrb[11].mxu1 }
 0x10f   : > { %v1492_v54 = vpack.c.bf16 %v654_v46, %v652_v42  ;;  %v1516_v55 = vpack.c.bf16 %v694_v47, %v692_v43  ;;  %v658_v56 = vadd.f32 %v657_v52, %v1935_v63  ;;  %v698_v57 = vadd.f32 %v697_v53, %v1935_v63 }
 0x111   : > { %1236 = vst [vmem:[%s1945_s4 + $0x60] sm:$0xff] %v1492_v54  ;;  %1260 = vst [vmem:[%s1945_s4 + $0x120] sm:$0xff] %v1516_v55  ;;  %v1495_v59 = vpack.c.bf16 %v658_v56, %v656_v50  ;;  %v1519_v61 = vpack.c.bf16 %v698_v57, %v696_v51 }
 0x113   : > { %1239 = vst [vmem:[%s1945_s4 + $0x78] sm:$0xff] %v1495_v59  ;;  %1263 = vst [vmem:[%s1945_s4 + $0x138] sm:$0xff] %v1519_v61  ;;  %v661_v0 = vpop.f32.mrb[12].mxu0  ;;  %v701_v1 = vpop.f32.mrb[12].mxu1 }
 0x114   : > { %v662_v2 = vadd.f32 %v661_v0, %v1932_v62  ;;  %v702_v3 = vadd.f32 %v701_v1, %v1932_v62  ;;  %v663_v4 = vpop.f32.mrb[13].mxu0  ;;  %v703_v5 = vpop.f32.mrb[13].mxu1 }
 0x115   : > { %v664_v8 = vadd.f32 %v663_v4, %v1935_v63  ;;  %v704_v9 = vadd.f32 %v703_v5, %v1935_v63  ;;  %v665_v10 = vpop.f32.mrb[14].mxu0  ;;  %v705_v11 = vpop.f32.mrb[14].mxu1 }
 0x116   : > { %v666_v14 = vadd.f32 %v665_v10, %v1932_v62  ;;  %v706_v15 = vadd.f32 %v705_v11, %v1932_v62  ;;  %v667_v16 = vpop.f32.mrb[15].mxu0  ;;  %v707_v17 = vpop.f32.mrb[15].mxu1  ;;  %v2000_v62 = vrot.slane %v1928_v60, %v293_v12 }
 0x117   : > { %v1498_v18 = vpack.c.bf16 %v664_v8, %v662_v2  ;;  %v1522_v19 = vpack.c.bf16 %v704_v9, %v702_v3  ;;  %v668_v20 = vadd.f32 %v667_v16, %v1935_v63  ;;  %v708_v21 = vadd.f32 %v707_v17, %v1935_v63 }
 0x119   : > { %1242 = vst [vmem:[%s1945_s4 + $0x90] sm:$0xff] %v1498_v18  ;;  %1266 = vst [vmem:[%s1945_s4 + $0x150] sm:$0xff] %v1522_v19  ;;  %v1501_v58 = vpack.c.bf16 %v668_v20, %v666_v14  ;;  %v1525_v24 = vpack.c.bf16 %v708_v21, %v706_v15 }
 0x11b   : > { %1245 = vst [vmem:[%s1945_s4 + $0xa8] sm:$0xff] %v1501_v58  ;;  %1269 = vst [vmem:[%s1945_s4 + $0x168] sm:$0xff] %v1525_v24  ;;  %v744_v26 = vpop.f32.mrb[16].mxu1  ;;  %v857_v63 = vpop.f32.mrb[16].mxu0 }
 0x11c   : > { %v745_v27 = vadd.f32 %v744_v26, %v1992_v22  ;;  %v858_v28 = vadd.f32 %v857_v63, %v1995_v23  ;;  %v746_v29 = vpop.f32.mrb[17].mxu1  ;;  %v859_v30 = vpop.f32.mrb[17].mxu0 }
 0x11d   : > { %v747_v31 = vadd.f32 %v746_v29, %v2000_v62  ;;  %v860_v32 = vadd.f32 %v859_v30, %v2003_v25  ;;  %v748_v60 = vpop.f32.mrb[18].mxu1  ;;  %v861_v33 = vpop.f32.mrb[18].mxu0 }
 0x11e   : > { %v749_v34 = vadd.f32 %v748_v60, %v1992_v22  ;;  %v862_v35 = vadd.f32 %v861_v33, %v1995_v23  ;;  %v750_v36 = vpop.f32.mrb[19].mxu1  ;;  %v863_v37 = vpop.f32.mrb[19].mxu0 }
 0x11f   : > { %v1481_v38 = vpack.c.bf16 %v747_v31, %v745_v27  ;;  %v1482_v39 = vpack.c.bf16 %v860_v32, %v858_v28  ;;  %v751_v40 = vadd.f32 %v750_v36, %v2000_v62  ;;  %v864_v41 = vadd.f32 %v863_v37, %v2003_v25 }
 0x121   : > { %1225 = vst [vmem:[%s1945_s4 + $0x8] sm:$0xff] %v1481_v38  ;;  %1226 = vst [vmem:[%s1945_s4 + $0x10] sm:$0xff] %v1482_v39  ;;  %v1484_v42 = vpack.c.bf16 %v751_v40, %v749_v34  ;;  %v1485_v43 = vpack.c.bf16 %v864_v41, %v862_v35 }
 0x123   : > { %1228 = vst [vmem:[%s1945_s4 + $0x20] sm:$0xff] %v1484_v42  ;;  %1229 = vst [vmem:[%s1945_s4 + $0x28] sm:$0xff] %v1485_v43  ;;  %v754_v44 = vpop.f32.mrb[20].mxu1  ;;  %v867_v45 = vpop.f32.mrb[20].mxu0 }
 0x124   : > { %v755_v46 = vadd.f32 %v754_v44, %v1992_v22  ;;  %v868_v47 = vadd.f32 %v867_v45, %v1995_v23  ;;  %v756_v48 = vpop.f32.mrb[21].mxu1  ;;  %v869_v49 = vpop.f32.mrb[21].mxu0 }
 0x125   : > { %v757_v50 = vadd.f32 %v756_v48, %v2000_v62  ;;  %v870_v51 = vadd.f32 %v869_v49, %v2003_v25  ;;  %v758_v52 = vpop.f32.mrb[22].mxu1  ;;  %v871_v53 = vpop.f32.mrb[22].mxu0 }
 0x126   : > { %v759_v54 = vadd.f32 %v758_v52, %v1992_v22  ;;  %v872_v55 = vadd.f32 %v871_v53, %v1995_v23  ;;  %v760_v56 = vpop.f32.mrb[23].mxu1  ;;  %v873_v57 = vpop.f32.mrb[23].mxu0 }
 0x127   : > { %v1487_v59 = vpack.c.bf16 %v757_v50, %v755_v46  ;;  %v1488_v61 = vpack.c.bf16 %v870_v51, %v868_v47  ;;  %v761_v0 = vadd.f32 %v760_v56, %v2000_v62  ;;  %v874_v1 = vadd.f32 %v873_v57, %v2003_v25 }
 0x129   : > { %1231 = vst [vmem:[%s1945_s4 + $0x38] sm:$0xff] %v1487_v59  ;;  %1232 = vst [vmem:[%s1945_s4 + $0x40] sm:$0xff] %v1488_v61  ;;  %v1490_v2 = vpack.c.bf16 %v761_v0, %v759_v54  ;;  %v1491_v3 = vpack.c.bf16 %v874_v1, %v872_v55 }
 0x12b   : > { %1234 = vst [vmem:[%s1945_s4 + $0x50] sm:$0xff] %v1490_v2  ;;  %1235 = vst [vmem:[%s1945_s4 + $0x58] sm:$0xff] %v1491_v3  ;;  %v764_v4 = vpop.f32.mrb[24].mxu1  ;;  %v877_v5 = vpop.f32.mrb[24].mxu0 }
 0x12c   : > { %v765_v6 = vadd.f32 %v764_v4, %v1992_v22  ;;  %v878_v7 = vadd.f32 %v877_v5, %v1995_v23  ;;  %v766_v8 = vpop.f32.mrb[25].mxu1  ;;  %v879_v9 = vpop.f32.mrb[25].mxu0 }
 0x12d   : > { %v767_v10 = vadd.f32 %v766_v8, %v2000_v62  ;;  %v880_v11 = vadd.f32 %v879_v9, %v2003_v25  ;;  %v768_v12 = vpop.f32.mrb[26].mxu1  ;;  %v881_v13 = vpop.f32.mrb[26].mxu0 }
 0x12e   : > { %v769_v14 = vadd.f32 %v768_v12, %v1992_v22  ;;  %v882_v15 = vadd.f32 %v881_v13, %v1995_v23  ;;  %v770_v16 = vpop.f32.mrb[27].mxu1  ;;  %v883_v17 = vpop.f32.mrb[27].mxu0 }
 0x12f   : > { %v1493_v18 = vpack.c.bf16 %v767_v10, %v765_v6  ;;  %v1494_v19 = vpack.c.bf16 %v880_v11, %v878_v7  ;;  %v771_v20 = vadd.f32 %v770_v16, %v2000_v62  ;;  %v884_v21 = vadd.f32 %v883_v17, %v2003_v25 }
 0x131   : > { %1237 = vst [vmem:[%s1945_s4 + $0x68] sm:$0xff] %v1493_v18  ;;  %1238 = vst [vmem:[%s1945_s4 + $0x70] sm:$0xff] %v1494_v19  ;;  %v1496_v58 = vpack.c.bf16 %v771_v20, %v769_v14  ;;  %v1497_v24 = vpack.c.bf16 %v884_v21, %v882_v15 }
 0x133   : > { %1240 = vst [vmem:[%s1945_s4 + $0x80] sm:$0xff] %v1496_v58  ;;  %1241 = vst [vmem:[%s1945_s4 + $0x88] sm:$0xff] %v1497_v24  ;;  %v774_v26 = vpop.f32.mrb[28].mxu1  ;;  %v887_v63 = vpop.f32.mrb[28].mxu0 }
 0x134   : > { %v775_v27 = vadd.f32 %v774_v26, %v1992_v22  ;;  %v888_v28 = vadd.f32 %v887_v63, %v1995_v23  ;;  %v776_v29 = vpop.f32.mrb[29].mxu1  ;;  %v889_v30 = vpop.f32.mrb[29].mxu0 }
 0x135   : > { %v777_v31 = vadd.f32 %v776_v29, %v2000_v62  ;;  %v890_v32 = vadd.f32 %v889_v30, %v2003_v25  ;;  %v778_v60 = vpop.f32.mrb[30].mxu1  ;;  %v891_v33 = vpop.f32.mrb[30].mxu0 }
 0x136   : > { %v779_v34 = vadd.f32 %v778_v60, %v1992_v22  ;;  %v892_v35 = vadd.f32 %v891_v33, %v1995_v23  ;;  %v780_v36 = vpop.f32.mrb[31].mxu1  ;;  %v893_v37 = vpop.f32.mrb[31].mxu0 }
 0x137   : > { %v1499_v38 = vpack.c.bf16 %v777_v31, %v775_v27  ;;  %v1500_v39 = vpack.c.bf16 %v890_v32, %v888_v28  ;;  %v781_v40 = vadd.f32 %v780_v36, %v2000_v62  ;;  %v894_v41 = vadd.f32 %v893_v37, %v2003_v25 }
 0x139   : > { %1243 = vst [vmem:[%s1945_s4 + $0x98] sm:$0xff] %v1499_v38  ;;  %1244 = vst [vmem:[%s1945_s4 + $0xa0] sm:$0xff] %v1500_v39  ;;  %v1502_v42 = vpack.c.bf16 %v781_v40, %v779_v34  ;;  %v1503_v43 = vpack.c.bf16 %v894_v41, %v892_v35 }
 0x13b   : > { %1246 = vst [vmem:[%s1945_s4 + $0xb0] sm:$0xff] %v1502_v42  ;;  %1247 = vst [vmem:[%s1945_s4 + $0xb8] sm:$0xff] %v1503_v43  ;;  %v784_v44 = vpop.f32.mrb[32].mxu1  ;;  %v897_v45 = vpop.f32.mrb[32].mxu0 }
 0x13c   : > { %v785_v46 = vadd.f32 %v784_v44, %v1992_v22  ;;  %v898_v47 = vadd.f32 %v897_v45, %v1995_v23  ;;  %v786_v48 = vpop.f32.mrb[33].mxu1  ;;  %v899_v49 = vpop.f32.mrb[33].mxu0 }
 0x13d   : > { %v787_v50 = vadd.f32 %v786_v48, %v2000_v62  ;;  %v900_v51 = vadd.f32 %v899_v49, %v2003_v25  ;;  %v788_v52 = vpop.f32.mrb[34].mxu1  ;;  %v901_v53 = vpop.f32.mrb[34].mxu0 }
 0x13e   : > { %v789_v54 = vadd.f32 %v788_v52, %v1992_v22  ;;  %v902_v55 = vadd.f32 %v901_v53, %v1995_v23  ;;  %v790_v56 = vpop.f32.mrb[35].mxu1  ;;  %v903_v57 = vpop.f32.mrb[35].mxu0 }
 0x13f   : > { %v1505_v59 = vpack.c.bf16 %v787_v50, %v785_v46  ;;  %v1506_v61 = vpack.c.bf16 %v900_v51, %v898_v47  ;;  %v791_v0 = vadd.f32 %v790_v56, %v2000_v62  ;;  %v904_v1 = vadd.f32 %v903_v57, %v2003_v25 }
 0x141   : > { %1249 = vst [vmem:[%s1945_s4 + $0xc8] sm:$0xff] %v1505_v59  ;;  %1250 = vst [vmem:[%s1945_s4 + $0xd0] sm:$0xff] %v1506_v61  ;;  %v1508_v2 = vpack.c.bf16 %v791_v0, %v789_v54  ;;  %v1509_v3 = vpack.c.bf16 %v904_v1, %v902_v55 }
 0x143   : > { %1252 = vst [vmem:[%s1945_s4 + $0xe0] sm:$0xff] %v1508_v2  ;;  %1253 = vst [vmem:[%s1945_s4 + $0xe8] sm:$0xff] %v1509_v3  ;;  %v794_v4 = vpop.f32.mrb[36].mxu1  ;;  %v907_v5 = vpop.f32.mrb[36].mxu0 }
 0x144   : > { %v795_v6 = vadd.f32 %v794_v4, %v1992_v22  ;;  %v908_v7 = vadd.f32 %v907_v5, %v1995_v23  ;;  %v796_v8 = vpop.f32.mrb[37].mxu1  ;;  %v909_v9 = vpop.f32.mrb[37].mxu0 }
 0x145   : > { %v797_v10 = vadd.f32 %v796_v8, %v2000_v62  ;;  %v910_v11 = vadd.f32 %v909_v9, %v2003_v25  ;;  %v798_v12 = vpop.f32.mrb[38].mxu1  ;;  %v911_v13 = vpop.f32.mrb[38].mxu0 }
 0x146   : > { %v799_v14 = vadd.f32 %v798_v12, %v1992_v22  ;;  %v912_v15 = vadd.f32 %v911_v13, %v1995_v23  ;;  %v800_v16 = vpop.f32.mrb[39].mxu1  ;;  %v913_v17 = vpop.f32.mrb[39].mxu0 }
 0x147   : > { %v1511_v18 = vpack.c.bf16 %v797_v10, %v795_v6  ;;  %v1512_v19 = vpack.c.bf16 %v910_v11, %v908_v7  ;;  %v801_v20 = vadd.f32 %v800_v16, %v2000_v62  ;;  %v914_v21 = vadd.f32 %v913_v17, %v2003_v25 }
 0x149   : > { %1255 = vst [vmem:[%s1945_s4 + $0xf8] sm:$0xff] %v1511_v18  ;;  %1256 = vst [vmem:[%s1945_s4 + $0x100] sm:$0xff] %v1512_v19  ;;  %v1514_v58 = vpack.c.bf16 %v801_v20, %v799_v14  ;;  %v1515_v24 = vpack.c.bf16 %v914_v21, %v912_v15 }
 0x14b   : > { %1258 = vst [vmem:[%s1945_s4 + $0x110] sm:$0xff] %v1514_v58  ;;  %1259 = vst [vmem:[%s1945_s4 + $0x118] sm:$0xff] %v1515_v24  ;;  %v804_v26 = vpop.f32.mrb[40].mxu1  ;;  %v917_v63 = vpop.f32.mrb[40].mxu0 }
 0x14c   : > { %v805_v27 = vadd.f32 %v804_v26, %v1992_v22  ;;  %v918_v28 = vadd.f32 %v917_v63, %v1995_v23  ;;  %v806_v29 = vpop.f32.mrb[41].mxu1  ;;  %v919_v30 = vpop.f32.mrb[41].mxu0 }
 0x14d   : > { %v807_v31 = vadd.f32 %v806_v29, %v2000_v62  ;;  %v920_v32 = vadd.f32 %v919_v30, %v2003_v25  ;;  %v808_v60 = vpop.f32.mrb[42].mxu1  ;;  %v921_v33 = vpop.f32.mrb[42].mxu0 }
 0x14e   : > { %v809_v34 = vadd.f32 %v808_v60, %v1992_v22  ;;  %v922_v35 = vadd.f32 %v921_v33, %v1995_v23  ;;  %v810_v36 = vpop.f32.mrb[43].mxu1  ;;  %v923_v37 = vpop.f32.mrb[43].mxu0 }
 0x14f   : > { %v1517_v38 = vpack.c.bf16 %v807_v31, %v805_v27  ;;  %v1518_v39 = vpack.c.bf16 %v920_v32, %v918_v28  ;;  %v811_v40 = vadd.f32 %v810_v36, %v2000_v62  ;;  %v924_v41 = vadd.f32 %v923_v37, %v2003_v25 }
 0x151   : > { %1261 = vst [vmem:[%s1945_s4 + $0x128] sm:$0xff] %v1517_v38  ;;  %1262 = vst [vmem:[%s1945_s4 + $0x130] sm:$0xff] %v1518_v39  ;;  %v1520_v42 = vpack.c.bf16 %v811_v40, %v809_v34  ;;  %v1521_v43 = vpack.c.bf16 %v924_v41, %v922_v35 }
 0x153   : > { %1264 = vst [vmem:[%s1945_s4 + $0x140] sm:$0xff] %v1520_v42  ;;  %1265 = vst [vmem:[%s1945_s4 + $0x148] sm:$0xff] %v1521_v43  ;;  %v814_v44 = vpop.f32.mrb[44].mxu1  ;;  %v927_v45 = vpop.f32.mrb[44].mxu0 }
 0x154   : > { %v815_v46 = vadd.f32 %v814_v44, %v1992_v22  ;;  %v928_v47 = vadd.f32 %v927_v45, %v1995_v23  ;;  %v816_v48 = vpop.f32.mrb[45].mxu1  ;;  %v929_v49 = vpop.f32.mrb[45].mxu0 }
 0x155   : > { %v817_v50 = vadd.f32 %v816_v48, %v2000_v62  ;;  %v930_v51 = vadd.f32 %v929_v49, %v2003_v25  ;;  %v818_v52 = vpop.f32.mrb[46].mxu1  ;;  %v931_v53 = vpop.f32.mrb[46].mxu0 }
 0x156   : > { %v819_v54 = vadd.f32 %v818_v52, %v1992_v22  ;;  %v932_v55 = vadd.f32 %v931_v53, %v1995_v23  ;;  %v820_v56 = vpop.f32.mrb[47].mxu1  ;;  %v933_v57 = vpop.f32.mrb[47].mxu0 }
 0x157   : > { %v1523_v59 = vpack.c.bf16 %v817_v50, %v815_v46  ;;  %v1524_v61 = vpack.c.bf16 %v930_v51, %v928_v47  ;;  %v821_v0 = vadd.f32 %v820_v56, %v2000_v62  ;;  %v934_v1 = vadd.f32 %v933_v57, %v2003_v25 }
 0x159   : > { %1267 = vst [vmem:[%s1945_s4 + $0x158] sm:$0xff] %v1523_v59  ;;  %1268 = vst [vmem:[%s1945_s4 + $0x160] sm:$0xff] %v1524_v61  ;;  %v1526_v2 = vpack.c.bf16 %v821_v0, %v819_v54  ;;  %v1527_v3 = vpack.c.bf16 %v934_v1, %v932_v55 }
 0x15b   : > { %1270 = vst [vmem:[%s1945_s4 + $0x170] sm:$0xff] %v1526_v2  ;;  %1271 = vst [vmem:[%s1945_s4 + $0x178] sm:$0xff] %v1527_v3 }
 0x15c PF: > { %s13_s14 = sadd.s32 1, %s1672_s14   ;;  %s2116_s12 = smov %s1668_s13 }
 0x15d   : > { %p10_p5 = scmp.ge.s32.totalorder %s13_s14, 4   ;;  %s2117_s13 = smov %s2119_s15 }
 0x15f   :  { %12 = sbr.rel (!%p10_p5) target bundleno = 2 (0x2), region = 62 }

// kernel: bigbird_block_forward.5
= control target key start
LH: loop header
LB: loop body
LE: loop exit
PB: predicated region body
PF: predicated region fallthrough
CT: control target
= control target key end

     0   :  { %s4868_s0 = inlined_call_operand.vmem [shape: bf16[256,256], index: 0, kind: input, shape index: {}]   ;;  %s4869_s1 = inlined_call_operand.vmem [shape: bf16[256,128], index: 1, kind: input, shape index: {}]   ;;  %s4870_s2 = inlined_call_operand.vmem [shape: bf16[256,128], index: 2, kind: input, shape index: {}]   ;;  %s4871_s3 = inlined_call_operand.vmem [shape: f32[1,128], index: 3, kind: input, shape index: {}]   ;;  %s4872_s4 = inlined_call_operand.vmem [shape: f32[1,128], index: 4, kind: input, shape index: {}]   ;;  %s4873_s5 = inlined_call_operand.vmem [shape: f32[1,128], index: 5, kind: input, shape index: {}]   ;;  %s4874_s6 = inlined_call_operand.vmem [shape: bf16[128,256], index: 6, kind: input, shape index: {}]   ;;  %s4875_s7 = inlined_call_operand.vmem [shape: f32[1,256], index: 7, kind: input, shape index: {}]   ;;  %s4876_s8 = inlined_call_operand.vmem [shape: bf16[256,128], index: 8, kind: input, shape index: {}]   ;;  %s4877_s9 = inlined_call_operand.vmem [shape: f32[1,128], index: 9, kind: input, shape index: {}]   ;;  %s4878_s10 = inlined_call_operand.vmem [shape: f32[1,128], index: 10, kind: input, shape index: {}]   ;;  %s4879_s11 = inlined_call_operand.vmem [shape: f32[1,128], index: 11, kind: input, shape index: {}]   ;;  %s4880_s12 = inlined_call_operand.hbm [shape: f32[256,128], index: 12, kind: output, shape index: {}]  }
   0x1   :  { %v2942_v0 = vld [vmem:[%s4870_s2 + $0x40] sm:$0xff]   ;;  %v2944_v2 = vld [vmem:[%s4870_s2 + $0x48] sm:$0xff]   ;;  %v2946_v4 = vld [vmem:[%s4870_s2 + $0x50] sm:$0xff]  }
   0x2   :  { %v2943_v1 = vld [vmem:[%s4870_s2] sm:$0xff]   ;;  %2698 = vmatprep.subr.bf16.mxu0 %v2942_v0  ;;  %2922 = vmatprep.subr.bf16.mxu1 %v2942_v0  ;;  %v2945_v3 = vld [vmem:[%s4870_s2 + $0x8] sm:$0xff]   ;;  %v2947_v5 = vld [vmem:[%s4870_s2 + $0x10] sm:$0xff]  }
   0x3   :  { %2699 = vmatpush3.bf16.msra.mxu0 %v2943_v1  ;;  %2930 = vmatpush3.bf16.msra.mxu1 %v2943_v1  ;;  %v2948_v6 = vld [vmem:[%s4870_s2 + $0x58] sm:$0xff]   ;;  %v2950_v8 = vld [vmem:[%s4870_s2 + $0x60] sm:$0xff]   ;;  %v2952_v10 = vld [vmem:[%s4870_s2 + $0x68] sm:$0xff]  }
   0x4   :  { %2700 = vmatprep.subr.bf16.mxu0 %v2944_v2  ;;  %2923 = vmatprep.subr.bf16.mxu1 %v2944_v2  ;;  %v2949_v7 = vld [vmem:[%s4870_s2 + $0x18] sm:$0xff]   ;;  %v2951_v9 = vld [vmem:[%s4870_s2 + $0x20] sm:$0xff]   ;;  %v2953_v12 = vld [vmem:[%s4870_s2 + $0x28] sm:$0xff]  }
   0x5   :  { %v2960_v11 = vld [vmem:[%s4868_s0 + $0x4] ss:$8 sps:$4 sm:$0xff]   ;;  %v2954_v13 = vld [vmem:[%s4870_s2 + $0x70] sm:$0xff]   ;;  %v2956_v15 = vld [vmem:[%s4870_s2 + $0x78] sm:$0xff]  }
   0x6   :  { %402 = vmatprep.mubr.bf16.mxu0 %v2960_v11  ;;  %v2955_v14 = vld [vmem:[%s4870_s2 + $0x30] sm:$0xff]   ;;  %v2957_v16 = vld [vmem:[%s4870_s2 + $0x38] sm:$0xff]   ;;  %v2983_v17 = vld [vmem:[%s4868_s0 + $0x84] ss:$8 sps:$4 sm:$0xff]  }
   0x7   :  { %2701 = vmatpush3.bf16.msra.mxu0 %v2945_v3  ;;  %2931 = vmatpush3.bf16.msra.mxu1 %v2945_v3  ;;  %v2958_v18 = vld [vmem:[%s4868_s0] ss:$8 sps:$4 sm:$0xff]   ;;  %v2961_v19 = vld [vmem:[%s4868_s0 + $0x14] ss:$8 sps:$4 sm:$0xff]   ;;  %v2963_v22 = vld [vmem:[%s4868_s0 + $0x10] ss:$8 sps:$4 sm:$0xff]  }
   0x8   :  { %2702 = vmatprep.subr.bf16.mxu0 %v2946_v4  ;;  %2924 = vmatprep.subr.bf16.mxu1 %v2946_v4  ;;  %v2981_v20 = vld [vmem:[%s4868_s0 + $0x80] ss:$8 sps:$4 sm:$0xff]   ;;  %v2985_v21 = vld [vmem:[%s4868_s0 + $0x94] ss:$8 sps:$4 sm:$0xff]   ;;  %v2964_v23 = vld [vmem:[%s4868_s0 + $0x24] ss:$8 sps:$4 sm:$0xff]  }
   0x9   :  { %466 = vmatprep.mubr.bf16.mxu1 %v2983_v17  ;;  %v2987_v24 = vld [vmem:[%s4868_s0 + $0x90] ss:$8 sps:$4 sm:$0xff]   ;;  %v2988_v25 = vld [vmem:[%s4868_s0 + $0xa4] ss:$8 sps:$4 sm:$0xff]   ;;  %v2966_v26 = vld [vmem:[%s4868_s0 + $0x20] ss:$8 sps:$4 sm:$0xff]  }
   0xa   :  { %v2967_v27 = vld [vmem:[%s4868_s0 + $0x34] ss:$8 sps:$4 sm:$0xff]   ;;  %v2990_v28 = vld [vmem:[%s4868_s0 + $0xa0] ss:$8 sps:$4 sm:$0xff]  }
   0xb   :  { %2703 = vmatpush3.bf16.msra.mxu0 %v2947_v5  ;;  %2932 = vmatpush3.bf16.msra.mxu1 %v2947_v5  ;;  %v2991_v29 = vld [vmem:[%s4868_s0 + $0xb4] ss:$8 sps:$4 sm:$0xff]  }
   0xc   :  { %2704 = vmatprep.subr.bf16.mxu0 %v2948_v6  ;;  %2925 = vmatprep.subr.bf16.mxu1 %v2948_v6 }
   0xf   :  { %2705 = vmatpush3.bf16.msra.mxu0 %v2949_v7  ;;  %2933 = vmatpush3.bf16.msra.mxu1 %v2949_v7 }
  0x10   :  { %2706 = vmatprep.subr.bf16.mxu0 %v2950_v8  ;;  %2926 = vmatprep.subr.bf16.mxu1 %v2950_v8 }
  0x13   :  { %2707 = vmatpush3.bf16.msra.mxu0 %v2951_v9  ;;  %2934 = vmatpush3.bf16.msra.mxu1 %v2951_v9 }
  0x14   :  { %2708 = vmatprep.subr.bf16.mxu0 %v2952_v10  ;;  %2927 = vmatprep.subr.bf16.mxu1 %v2952_v10 }
  0x17   :  { %2709 = vmatpush3.bf16.msra.mxu0 %v2953_v12  ;;  %2935 = vmatpush3.bf16.msra.mxu1 %v2953_v12 }
  0x18   :  { %2710 = vmatprep.subr.bf16.mxu0 %v2954_v13  ;;  %2928 = vmatprep.subr.bf16.mxu1 %v2954_v13 }
  0x1b   :  { %2711 = vmatpush3.bf16.msra.mxu0 %v2955_v14  ;;  %2936 = vmatpush3.bf16.msra.mxu1 %v2955_v14 }
  0x1c   :  { %2712 = vmatprep.subr.bf16.mxu0 %v2956_v15  ;;  %2929 = vmatprep.subr.bf16.mxu1 %v2956_v15 }
  0x1f   :  { %2713 = vmatpush3.bf16.msra.mxu0 %v2957_v16  ;;  %2937 = vmatpush3.bf16.msra.mxu1 %v2957_v16 }
  0x22   :  { %403 = vmatmul.mubr.bf16.vlgmr.msra.gmra.mrb[0].mxu0 %v2958_v18  ;;  %467 = vmatmul.mubr.bf16.vlgmr.msra.gmra.mrb[0].mxu1 %v2981_v20 }
  0x23   :  { %410 = vmatprep.mubr.bf16.mxu0 %v2961_v19  ;;  %474 = vmatprep.mubr.bf16.mxu1 %v2985_v21 }
  0x2a   :  { %411 = vmatmul.mubr.bf16.gmra.mrb[4].mxu0 %v2963_v22  ;;  %475 = vmatmul.mubr.bf16.gmra.mrb[4].mxu1 %v2987_v24 }
  0x2b   :  { %418 = vmatprep.mubr.bf16.mxu0 %v2964_v23  ;;  %482 = vmatprep.mubr.bf16.mxu1 %v2988_v25 }
  0x32   :  { %419 = vmatmul.mubr.bf16.gmra.mrb[8].mxu0 %v2966_v26  ;;  %483 = vmatmul.mubr.bf16.gmra.mrb[8].mxu1 %v2990_v28 }
  0x33   :  { %426 = vmatprep.mubr.bf16.mxu0 %v2967_v27  ;;  %490 = vmatprep.mubr.bf16.mxu1 %v2991_v29 }
  0x34   :  { %17 = vsyncpa [#allocation3], 0  ;;  %v2969_v30 = vld [vmem:[%s4868_s0 + $0x30] ss:$8 sps:$4 sm:$0xff]   ;;  %v2970_v31 = vld [vmem:[%s4868_s0 + $0x44] ss:$8 sps:$4 sm:$0xff]  }
  0x35   :  { %v2993_v32 = vld [vmem:[%s4868_s0 + $0xb0] ss:$8 sps:$4 sm:$0xff]   ;;  %v2994_v33 = vld [vmem:[%s4868_s0 + $0xc4] ss:$8 sps:$4 sm:$0xff]   ;;  %v2972_v34 = vld [vmem:[%s4868_s0 + $0x40] ss:$8 sps:$4 sm:$0xff]  }
  0x36   :  { %v2973_v35 = vld [vmem:[%s4868_s0 + $0x54] ss:$8 sps:$4 sm:$0xff]   ;;  %v2996_v36 = vld [vmem:[%s4868_s0 + $0xc0] ss:$8 sps:$4 sm:$0xff]   ;;  %v2975_v38 = vld [vmem:[%s4868_s0 + $0x50] ss:$8 sps:$4 sm:$0xff]  }
  0x37   :  { %v2997_v37 = vld [vmem:[%s4868_s0 + $0xd4] ss:$8 sps:$4 sm:$0xff]   ;;  %v2976_v39 = vld [vmem:[%s4868_s0 + $0x64] ss:$8 sps:$4 sm:$0xff]   ;;  %v2999_v40 = vld [vmem:[%s4868_s0 + $0xd0] ss:$8 sps:$4 sm:$0xff]  }
  0x38   :  { %v3000_v41 = vld [vmem:[%s4868_s0 + $0xe4] ss:$8 sps:$4 sm:$0xff]   ;;  %v2978_v42 = vld [vmem:[%s4868_s0 + $0x60] ss:$8 sps:$4 sm:$0xff]   ;;  %v2979_v43 = vld [vmem:[%s4868_s0 + $0x74] ss:$8 sps:$4 sm:$0xff]  }
  0x39   :  { %v3002_v44 = vld [vmem:[%s4868_s0 + $0xe0] ss:$8 sps:$4 sm:$0xff]   ;;  %v3003_v45 = vld [vmem:[%s4868_s0 + $0xf4] ss:$8 sps:$4 sm:$0xff]   ;;  %v2984_v46 = vld [vmem:[%s4868_s0 + $0x70] ss:$8 sps:$4 sm:$0xff]  }
  0x3a   :  { %427 = vmatmul.mubr.bf16.gmra.mrb[12].mxu0 %v2969_v30  ;;  %491 = vmatmul.mubr.bf16.gmra.mrb[12].mxu1 %v2993_v32  ;;  %v3005_v47 = vld [vmem:[%s4868_s0 + $0xf0] ss:$8 sps:$4 sm:$0xff]   ;;  %v2620_v48 = vld [vmem:[%s4869_s1] sm:$0xff]   ;;  %v2683_v3 = vld [vmem:[%s4869_s1 + $0x8] sm:$0xff]  }
  0x3b   :  { %434 = vmatprep.mubr.bf16.mxu0 %v2970_v31  ;;  %498 = vmatprep.mubr.bf16.mxu1 %v2994_v33  ;;  %v3545_v50 = vld [vmem:[%s4871_s3] ss:$0 sm:$0xff]  ;;  %v2621_v55 = vunpack.c.l.bf16 %v2620_v48  ;;  %v2622_v2 = vunpack.c.h.bf16 %v2620_v48  ;;  %v2625_v10 = vunpack.c.l.bf16 %v2683_v3  ;;  %v2626_v21 = vunpack.c.h.bf16 %v2683_v3  ;;  %v2684_v22 = vld [vmem:[%s4869_s1 + $0x10] sm:$0xff]  }
  0x3c   :  { %v2629_v28 = vunpack.c.l.bf16 %v2684_v22  ;;  %v2630_v32 = vunpack.c.h.bf16 %v2684_v22 }
  0x42   :  { %435 = vmatmul.mubr.bf16.gmra.mrb[16].mxu0 %v2972_v34  ;;  %499 = vmatmul.mubr.bf16.gmra.mrb[16].mxu1 %v2996_v36  ;;  %v2685_v36 = vld [vmem:[%s4869_s1 + $0x18] sm:$0xff]  }
  0x43   :  { %442 = vmatprep.mubr.bf16.mxu0 %v2973_v35  ;;  %506 = vmatprep.mubr.bf16.mxu1 %v2997_v37 }
  0x4a   :  { %443 = vmatmul.mubr.bf16.gmra.mrb[20].mxu0 %v2975_v38  ;;  %507 = vmatmul.mubr.bf16.gmra.mrb[20].mxu1 %v2999_v40 }
  0x4b   :  { %450 = vmatprep.mubr.bf16.mxu0 %v2976_v39  ;;  %514 = vmatprep.mubr.bf16.mxu1 %v3000_v41 }
  0x52   :  { %451 = vmatmul.mubr.bf16.gmra.mrb[24].mxu0 %v2978_v42  ;;  %515 = vmatmul.mubr.bf16.gmra.mrb[24].mxu1 %v3002_v44 }
  0x53   :  { %458 = vmatprep.mubr.bf16.mxu0 %v2979_v43  ;;  %522 = vmatprep.mubr.bf16.mxu1 %v3003_v45  ;;  %v2633_v45 = vunpack.c.l.bf16 %v2685_v36 }
  0x5a   :  { %459 = vmatmul.mubr.bf16.gmra.mrb[28].mxu0 %v2984_v46  ;;  %523 = vmatmul.mubr.bf16.gmra.mrb[28].mxu1 %v3005_v47 }
  0xf5   :  { %v2714_v49 = vpop.f32.mrb[0].mxu0  ;;  %v2762_v52 = vpop.f32.mrb[0].mxu1 }
  0xf6   :  { %v2715_v51 = vpop.f32.mrb[1].mxu0  ;;  %v2763_v56 = vpop.f32.mrb[1].mxu1 }
  0xf7   :  { %v2716_v53 = vadd.f32 %v2715_v51, %v2714_v49  ;;  %v2717_v54 = vpop.f32.mrb[2].mxu0  ;;  %v3547_v58 = vadd.f32 %v2763_v56, %v2762_v52  ;;  %v2765_v59 = vpop.f32.mrb[2].mxu1  ;;  %v2634_v52 = vunpack.c.h.bf16 %v2685_v36  ;;  %v2686_v56 = vld [vmem:[%s4869_s1 + $0x20] sm:$0xff]  }
  0xf8   :  { %v2718_v57 = vpop.f32.mrb[3].mxu0  ;;  %v2766_v62 = vpop.f32.mrb[3].mxu1 }
  0xf9   :  { %v405_v60 = vadd.f32 %v2716_v53, %v3545_v50  ;;  %v2719_v61 = vadd.f32 %v2718_v57, %v2717_v54  ;;  %v3550_v63 = vadd.f32 %v2766_v62, %v2765_v59 }
  0xfb   :  { %v408_v0 = vadd.f32 %v2719_v61, %v3545_v50  ;;  %v3553_v1 = vadd.f32 %v2621_v55, %v405_v60 }
  0xfd   :  { %v2720_v4 = vpop.f32.mrb[4].mxu0  ;;  %629 = vadd.xlane.f32.xlu0 %v3553_v1  ;;  %v2768_v6 = vpop.f32.mrb[4].mxu1  ;;  %v3559_v9 = vadd.f32 %v2622_v2, %v408_v0 }
  0xfe   :  { %v2721_v5 = vpop.f32.mrb[5].mxu0  ;;  %v2769_v11 = vpop.f32.mrb[5].mxu1 }
  0xff   :  { %v2722_v7 = vadd.f32 %v2721_v5, %v2720_v4  ;;  %v2723_v8 = vpop.f32.mrb[6].mxu0  ;;  %v3561_v13 = vadd.f32 %v2769_v11, %v2768_v6  ;;  %v2771_v14 = vpop.f32.mrb[6].mxu1  ;;  %v2637_v4 = vunpack.c.l.bf16 %v2686_v56  ;;  %v2638_v11 = vunpack.c.h.bf16 %v2686_v56 }
 0x100   :  { %v2724_v12 = vpop.f32.mrb[7].mxu0  ;;  %v2772_v17 = vpop.f32.mrb[7].mxu1 }
 0x101   :  { %v413_v15 = vadd.f32 %v2722_v7, %v3545_v50  ;;  %v2725_v16 = vadd.f32 %v2724_v12, %v2723_v8  ;;  %631 = vadd.xlane.f32.xlu0 %v3559_v9  ;;  %v3565_v18 = vadd.f32 %v2772_v17, %v2771_v14 }
 0x103   :  { %v416_v19 = vadd.f32 %v2725_v16, %v3545_v50  ;;  %v3568_v20 = vadd.f32 %v2625_v10, %v413_v15  ;;  %v2687_v16 = vld [vmem:[%s4869_s1 + $0x28] sm:$0xff]  }
 0x105   :  { %v2726_v23 = vpop.f32.mrb[8].mxu0  ;;  %633 = vadd.xlane.f32.xlu1 %v3568_v20  ;;  %v3574_v27 = vadd.f32 %v2626_v21, %v416_v19  ;;  %v2774_v35 = vpop.f32.mrb[8].mxu1 }
 0x106   :  { %v2727_v24 = vpop.f32.mrb[9].mxu0  ;;  %v2775_v37 = vpop.f32.mrb[9].mxu1 }
 0x107   :  { %v2728_v25 = vadd.f32 %v2727_v24, %v2726_v23  ;;  %v2729_v26 = vpop.f32.mrb[10].mxu0  ;;  %v3587_v40 = vadd.f32 %v2775_v37, %v2774_v35  ;;  %v2777_v41 = vpop.f32.mrb[10].mxu1  ;;  %v2642_v35 = vunpack.c.h.bf16 %v2687_v16 }
 0x108   :  { %v2730_v29 = vpop.f32.mrb[11].mxu0  ;;  %v2778_v46 = vpop.f32.mrb[11].mxu1 }
 0x109   :  { %v421_v30 = vadd.f32 %v2728_v25, %v3545_v50  ;;  %v2731_v31 = vadd.f32 %v2730_v29, %v2729_v26  ;;  %635 = vadd.xlane.f32.xlu1 %v3574_v27  ;;  %v3590_v48 = vadd.f32 %v2778_v46, %v2777_v41  ;;  %v2688_v41 = vld [vmem:[%s4869_s1 + $0x30] sm:$0xff]  }
 0x10b   :  { %v424_v33 = vadd.f32 %v2731_v31, %v3545_v50  ;;  %v3579_v34 = vadd.f32 %v2629_v28, %v421_v30  ;;  %v2641_v28 = vunpack.c.l.bf16 %v2687_v16 }
 0x10d   :  { %v2732_v38 = vpop.f32.mrb[12].mxu0  ;;  %637 = vadd.xlane.f32.xlu0 %v3579_v34  ;;  %v3585_v39 = vadd.f32 %v2630_v32, %v424_v33  ;;  %v2780_v55 = vpop.f32.mrb[12].mxu1 }
 0x10e   :  { %v2733_v42 = vpop.f32.mrb[13].mxu0  ;;  %v2781_v57 = vpop.f32.mrb[13].mxu1 }
 0x10f   :  { %v2734_v43 = vadd.f32 %v2733_v42, %v2732_v38  ;;  %v2735_v44 = vpop.f32.mrb[14].mxu0  ;;  %639 = vadd.xlane.f32.xlu1 %v3585_v39  ;;  %v3602_v61 = vadd.f32 %v2781_v57, %v2780_v55  ;;  %v2783_v62 = vpop.f32.mrb[14].mxu1 }
 0x110   :  { %v2736_v47 = vpop.f32.mrb[15].mxu0  ;;  %v2784_v5 = vpop.f32.mrb[15].mxu1 }
 0x111   :  { %v429_v49 = vadd.f32 %v2734_v43, %v3545_v50  ;;  %v2737_v51 = vadd.f32 %v2736_v47, %v2735_v44  ;;  %v3605_v7 = vadd.f32 %v2784_v5, %v2783_v62  ;;  %v2646_v62 = vunpack.c.h.bf16 %v2688_v41 }
 0x113   :  { %v432_v53 = vadd.f32 %v2737_v51, %v3545_v50  ;;  %v3594_v54 = vadd.f32 %v2633_v45, %v429_v49 }
 0x115   :  { %v2738_v59 = vpop.f32.mrb[16].mxu0  ;;  %641 = vadd.xlane.f32.xlu0 %v3594_v54  ;;  %v3600_v60 = vadd.f32 %v2634_v52, %v432_v53  ;;  %v2786_v15 = vpop.f32.mrb[16].mxu1  ;;  %v2645_v52 = vunpack.c.l.bf16 %v2688_v41 }
 0x116   :  { %v2739_v0 = vpop.f32.mrb[17].mxu0  ;;  %v2787_v21 = vpop.f32.mrb[17].mxu1 }
 0x117   :  { %v2740_v2 = vadd.f32 %v2739_v0, %v2738_v59  ;;  %v2741_v3 = vpop.f32.mrb[18].mxu0  ;;  %643 = vadd.xlane.f32.xlu1 %v3600_v60  ;;  %v3617_v23 = vadd.f32 %v2787_v21, %v2786_v15  ;;  %v2789_v24 = vpop.f32.mrb[18].mxu1 }
 0x118   :  { %v2742_v6 = vpop.f32.mrb[19].mxu0  ;;  %v2790_v29 = vpop.f32.mrb[19].mxu1 }
 0x119   :  { %v437_v8 = vadd.f32 %v2740_v2, %v3545_v50  ;;  %v2743_v10 = vadd.f32 %v2742_v6, %v2741_v3  ;;  %v3620_v31 = vadd.f32 %v2790_v29, %v2789_v24 }
 0x11b   :  { %v440_v12 = vadd.f32 %v2743_v10, %v3545_v50  ;;  %v3609_v14 = vadd.f32 %v2637_v4, %v437_v8  ;;  %v2689_v4 = vld [vmem:[%s4869_s1 + $0x38] sm:$0xff]  }
 0x11c   :  { %v2649_v21 = vunpack.c.l.bf16 %v2689_v4 }
 0x11d   :  { %v2744_v17 = vpop.f32.mrb[20].mxu0  ;;  %645 = vadd.xlane.f32.xlu0 %v3609_v14  ;;  %v3615_v19 = vadd.f32 %v2638_v11, %v440_v12  ;;  %v2792_v38 = vpop.f32.mrb[20].mxu1  ;;  %v2690_v11 = vld [vmem:[%s4869_s1 + $0x40] sm:$0xff]  }
 0x11e   :  { %v2745_v22 = vpop.f32.mrb[21].mxu0  ;;  %v2793_v44 = vpop.f32.mrb[21].mxu1  ;;  %v2654_v41 = vunpack.c.h.bf16 %v2690_v11 }
 0x11f   :  { %v2746_v25 = vadd.f32 %v2745_v22, %v2744_v17  ;;  %v2747_v26 = vpop.f32.mrb[22].mxu0  ;;  %647 = vadd.xlane.f32.xlu1 %v3615_v19  ;;  %v3632_v46 = vadd.f32 %v2793_v44, %v2792_v38  ;;  %v2795_v47 = vpop.f32.mrb[22].mxu1  ;;  %v477_v44 = vadd.f32 %v3561_v13, %v3545_v50 }
 0x120   :  { %v2748_v30 = vpop.f32.mrb[23].mxu0  ;;  %v2796_v53 = vpop.f32.mrb[23].mxu1 }
 0x121   :  { %v445_v32 = vadd.f32 %v2746_v25, %v3545_v50  ;;  %v2749_v33 = vadd.f32 %v2748_v30, %v2747_v26  ;;  %v3635_v56 = vadd.f32 %v2796_v53, %v2795_v47  ;;  %v2650_v25 = vunpack.c.h.bf16 %v2689_v4  ;;  %v3009_v4 = vld [vmem:[%s4874_s6 + $0x10] ss:$8 sps:$4 sm:$0xff]  }
 0x122   :  { %v469_v30 = vadd.f32 %v3547_v58, %v3545_v50 }
 0x123   :  { %v448_v36 = vadd.f32 %v2749_v33, %v3545_v50  ;;  %v3624_v37 = vadd.f32 %v2641_v28, %v445_v32  ;;  %v2653_v32 = vunpack.c.l.bf16 %v2690_v11  ;;  %v2691_v33 = vld [vmem:[%s4869_s1 + $0x48] sm:$0xff]   ;;  %v485_v11 = vadd.f32 %v3587_v40, %v3545_v50  ;;  %v2693_v40 = vld [vmem:[%s4869_s1 + $0x58] sm:$0xff]  }
 0x124   :  { %v2657_v47 = vunpack.c.l.bf16 %v2691_v33 }
 0x125   :  { %v2750_v42 = vpop.f32.mrb[24].mxu0  ;;  %649 = vadd.xlane.f32.xlu0 %v3624_v37  ;;  %v3630_v43 = vadd.f32 %v2642_v35, %v448_v36  ;;  %v2798_v3 = vpop.f32.mrb[24].mxu1  ;;  %v472_v36 = vadd.f32 %v3550_v63, %v3545_v50  ;;  %v480_v63 = vadd.f32 %v3565_v18, %v3545_v50  ;;  %v3006_v18 = vld [vmem:[%s4874_s6] ss:$8 sps:$4 sm:$0xff]  }
 0x126   :  { %v2751_v45 = vpop.f32.mrb[25].mxu0  ;;  %v2799_v8 = vpop.f32.mrb[25].mxu1  ;;  %v3683_v13 = vadd.f32 %v2657_v47, %v477_v44 }
 0x127   :  { %v2752_v49 = vadd.f32 %v2751_v45, %v2750_v42  ;;  %v2753_v51 = vpop.f32.mrb[26].mxu0  ;;  %651 = vadd.xlane.f32.xlu1 %v3630_v43  ;;  %v3650_v12 = vadd.f32 %v2799_v8, %v2798_v3  ;;  %v2801_v15 = vpop.f32.mrb[26].mxu1  ;;  %v3671_v45 = vadd.f32 %v2653_v32, %v469_v30  ;;  %v3678_v53 = vadd.f32 %v2654_v41, %v472_v36  ;;  %v3011_v3 = vld [vmem:[%s4874_s6 + $0x14] ss:$8 sps:$4 sm:$0xff]  }
 0x128   :  { %v2754_v55 = vpop.f32.mrb[27].mxu0  ;;  %v2802_v22 = vpop.f32.mrb[27].mxu1  ;;  %v2692_v8 = vld [vmem:[%s4869_s1 + $0x50] sm:$0xff]  }
 0x129   :  { %v453_v57 = vadd.f32 %v2752_v49, %v3545_v50  ;;  %v2755_v59 = vadd.f32 %v2754_v55, %v2753_v51  ;;  %v3653_v26 = vadd.f32 %v2802_v22, %v2801_v15  ;;  %v2658_v55 = vunpack.c.h.bf16 %v2691_v33 }
 0x12a   :  { %v2662_v32 = vunpack.c.h.bf16 %v2692_v8  ;;  %v493_v33 = vadd.f32 %v3602_v61, %v3545_v50 }
 0x12b   :  { %v456_v0 = vadd.f32 %v2755_v59, %v3545_v50  ;;  %v3639_v2 = vadd.f32 %v2645_v52, %v453_v57 }
 0x12d   :  { %v2756_v5 = vpop.f32.mrb[28].mxu0  ;;  %653 = vadd.xlane.f32.xlu0 %v3639_v2  ;;  %v3645_v6 = vadd.f32 %v2646_v62, %v456_v0  ;;  %v2804_v42 = vpop.f32.mrb[28].mxu1  ;;  %v3686_v62 = vadd.f32 %v2658_v55, %v480_v63  ;;  %v3008_v0 = vld [vmem:[%s4874_s6 + $0x4] ss:$8 sps:$4 sm:$0xff]   ;;  %v2666_v55 = vunpack.c.h.bf16 %v2693_v40 }
 0x12e   :  { %v2757_v10 = vpop.f32.mrb[29].mxu0  ;;  %v2805_v49 = vpop.f32.mrb[29].mxu1  ;;  %1182 = vmatprep.subr.bf16.mxu1 %v3008_v0  ;;  %v501_v0 = vadd.f32 %v3617_v23, %v3545_v50 }
 0x12f   :  { %v2758_v16 = vadd.f32 %v2757_v10, %v2756_v5  ;;  %v2759_v17 = vpop.f32.mrb[30].mxu0  ;;  %655 = vadd.xlane.f32.xlu1 %v3645_v6  ;;  %v3673_v51 = vadd.f32 %v2805_v49, %v2804_v42  ;;  %v2807_v52 = vpop.f32.mrb[30].mxu1  ;;  %1183 = vmatpush1.bf16.msra.mxu1 %v3006_v18  ;;  %v496_v49 = vadd.f32 %v3605_v7, %v3545_v50 }
 0x130   :  { %v2760_v24 = vpop.f32.mrb[31].mxu0  ;;  %v2808_v57 = vpop.f32.mrb[31].mxu1  ;;  %1184 = vmatprep.subr.bf16.mxu1 %v3011_v3 }
 0x131   :  { %v461_v28 = vadd.f32 %v2758_v16, %v3545_v50  ;;  %v2761_v29 = vadd.f32 %v2760_v24, %v2759_v17  ;;  %v3680_v59 = vadd.f32 %v2808_v57, %v2807_v52  ;;  %v2661_v16 = vunpack.c.l.bf16 %v2692_v8  ;;  %v3014_v8 = vld [vmem:[%s4874_s6 + $0x24] ss:$8 sps:$4 sm:$0xff]  }
 0x133   :  { %v464_v35 = vadd.f32 %v2761_v29, %v3545_v50  ;;  %v3664_v38 = vadd.f32 %v2649_v21, %v461_v28  ;;  %1185 = vmatpush1.bf16.msra.mxu1 %v3009_v4  ;;  %v3712_v24 = vadd.f32 %v2661_v16, %v485_v11  ;;  %v3753_v4 = vadd.f32 %v2666_v55, %v496_v49  ;;  %v2695_v11 = vld [vmem:[%s4869_s1 + $0x68] sm:$0xff]  }
 0x134   :  { %1186 = vmatprep.subr.bf16.mxu1 %v3014_v8  ;;  %v2674_v49 = vunpack.c.h.bf16 %v2695_v11 }
 0x135   :  { %657 = vadd.xlane.f32.xlu0 %v3664_v38  ;;  %v3669_v58 = vadd.f32 %v2650_v25, %v464_v35  ;;  %v2665_v35 = vunpack.c.l.bf16 %v2693_v40 }
 0x137   :  { %659 = vadd.xlane.f32.xlu1 %v3669_v58  ;;  %v3735_v44 = vadd.f32 %v2665_v35, %v493_v33 }
 0x139   :  { %661 = vadd.xlane.f32.xlu0 %v3671_v45 }
 0x13b   :  { %663 = vadd.xlane.f32.xlu1 %v3678_v53 }
 0x13d   :  { %665 = vadd.xlane.f32.xlu0 %v3683_v13 }
 0x13f   :  { %667 = vadd.xlane.f32.xlu1 %v3686_v62 }
 0x18a   :  { %v630_v5 = vpop.xlane.xlu0 %629 }
 0x18b   :  { %v694_v10 = vmul.f32 0.0078125, %v630_v5 }
 0x18d   :  { %v3708_v15 = vsub.f32 %v3553_v1, %v694_v10  ;;  %v488_v1 = vadd.f32 %v3590_v48, %v3545_v50 }
 0x18e   :  { %v632_v17 = vpop.xlane.xlu0 %631 }
 0x18f   :  { %v695_v21 = vmul.f32 0.0078125, %v632_v17  ;;  %v758_v22 = vmul.f32 %v3708_v15, %v3708_v15  ;;  %v3732_v42 = vadd.f32 %v2662_v32, %v488_v1  ;;  %v509_v1 = vadd.f32 %v3632_v46, %v3545_v50 }
 0x191   :  { %790 = vadd.xlane.f32.xlu0 %v758_v22  ;;  %v3715_v25 = vsub.f32 %v3559_v9, %v695_v21 }
 0x192   :  { %v634_v28 = vpop.xlane.xlu1 %633 }
 0x193   :  { %v696_v29 = vmul.f32 0.0078125, %v634_v28  ;;  %v759_v30 = vmul.f32 %v3715_v25, %v3715_v25  ;;  %v3017_v28 = vld [vmem:[%s4874_s6 + $0x34] ss:$8 sps:$4 sm:$0xff]  }
 0x195   :  { %669 = vadd.xlane.f32.xlu0 %v3712_v24  ;;  %792 = vadd.xlane.f32.xlu1 %v759_v30  ;;  %v3728_v9 = vsub.f32 %v3568_v20, %v696_v29  ;;  %v2694_v20 = vld [vmem:[%s4869_s1 + $0x60] sm:$0xff]   ;;  %v2673_v29 = vunpack.c.l.bf16 %v2695_v11  ;;  %v3015_v30 = vld [vmem:[%s4874_s6 + $0x30] ss:$8 sps:$4 sm:$0xff]   ;;  %v520_v11 = vadd.f32 %v3653_v26, %v3545_v50 }
 0x196   :  { %v636_v36 = vpop.xlane.xlu1 %635  ;;  %v2669_v3 = vunpack.c.l.bf16 %v2694_v20  ;;  %v2670_v21 = vunpack.c.h.bf16 %v2694_v20 }
 0x197   :  { %v697_v41 = vmul.f32 0.0078125, %v636_v36  ;;  %v760_v48 = vmul.f32 %v3728_v9, %v3728_v9  ;;  %v3799_v46 = vadd.f32 %v2673_v29, %v509_v1  ;;  %v3018_v36 = vld [vmem:[%s4874_s6 + $0x40] ss:$8 sps:$4 sm:$0xff]   ;;  %v3027_v29 = vld [vmem:[%s4874_s6 + $0x70] ss:$8 sps:$4 sm:$0xff]  }
 0x198   :  { %v3764_v23 = vadd.f32 %v2669_v3, %v501_v0  ;;  %v3021_v0 = vld [vmem:[%s4874_s6 + $0x50] ss:$8 sps:$4 sm:$0xff]  }
 0x199   :  { %794 = vadd.xlane.f32.xlu0 %v760_v48  ;;  %671 = vadd.xlane.f32.xlu1 %v3732_v42  ;;  %v3738_v61 = vsub.f32 %v3574_v27, %v697_v41  ;;  %v512_v48 = vadd.f32 %v3635_v56, %v3545_v50 }
 0x19a   :  { %v638_v47 = vpop.xlane.xlu0 %637 }
 0x19b   :  { %v698_v52 = vmul.f32 0.0078125, %v638_v47  ;;  %v761_v63 = vmul.f32 %v3738_v61, %v3738_v61  ;;  %v3823_v3 = vadd.f32 %v2674_v49, %v512_v48 }
 0x19c   :  { %v640_v57 = vpop.xlane.xlu1 %639 }
 0x19d   :  { %v699_v18 = vmul.f32 0.0078125, %v640_v57  ;;  %673 = vadd.xlane.f32.xlu0 %v3735_v44  ;;  %796 = vadd.xlane.f32.xlu1 %v761_v63  ;;  %v3751_v27 = vsub.f32 %v3579_v34, %v698_v52  ;;  %v3012_v34 = vld [vmem:[%s4874_s6 + $0x20] ss:$8 sps:$4 sm:$0xff]   ;;  %v3023_v63 = vld [vmem:[%s4874_s6 + $0x54] ss:$8 sps:$4 sm:$0xff]   ;;  %v517_v57 = vadd.f32 %v3650_v12, %v3545_v50 }
 0x19e   :  { %1187 = vmatpush1.bf16.msra.mxu1 %v3012_v34  ;;  %v3024_v34 = vld [vmem:[%s4874_s6 + $0x60] ss:$8 sps:$4 sm:$0xff]  }
 0x19f   :  { %v762_v7 = vmul.f32 %v3751_v27, %v3751_v27  ;;  %v3758_v5 = vsub.f32 %v3585_v39, %v699_v18  ;;  %v504_v39 = vadd.f32 %v3620_v31, %v3545_v50  ;;  %1188 = vmatprep.subr.bf16.mxu1 %v3017_v28 }
 0x1a1   :  { %675 = vadd.xlane.f32.xlu1 %v3753_v4  ;;  %798 = vadd.xlane.f32.xlu0 %v762_v7  ;;  %v763_v17 = vmul.f32 %v3758_v5, %v3758_v5  ;;  %v3788_v32 = vadd.f32 %v2670_v21, %v504_v39 }
 0x1a2   :  { %v642_v10 = vpop.xlane.xlu0 %641  ;;  %1189 = vmatpush1.bf16.msra.mxu1 %v3015_v30 }
 0x1a3   :  { %v700_v16 = vmul.f32 0.0078125, %v642_v10 }
 0x1a4   :  { %v644_v22 = vpop.xlane.xlu1 %643 }
 0x1a5   :  { %v701_v40 = vmul.f32 0.0078125, %v644_v22  ;;  %800 = vadd.xlane.f32.xlu1 %v763_v17  ;;  %677 = vadd.xlane.f32.xlu0 %v3764_v23  ;;  %v3783_v31 = vsub.f32 %v3594_v54, %v700_v16  ;;  %v3020_v54 = vld [vmem:[%s4874_s6 + $0x44] ss:$8 sps:$4 sm:$0xff]   ;;  %v3029_v22 = vld [vmem:[%s4874_s6 + $0x74] ss:$8 sps:$4 sm:$0xff]  }
 0x1a6   :  { %1190 = vmatprep.subr.bf16.mxu1 %v3020_v54 }
 0x1a7   :  { %v764_v33 = vmul.f32 %v3783_v31, %v3783_v31  ;;  %v3793_v35 = vsub.f32 %v3600_v60, %v701_v40  ;;  %v2696_v60 = vld [vmem:[%s4869_s1 + $0x70] sm:$0xff]   ;;  %1191 = vmatpush1.bf16.msra.mxu1 %v3018_v36  ;;  %v525_v40 = vadd.f32 %v3673_v51, %v3545_v50  ;;  %v3326_v36 = vmov 0  }
 0x1a8   :  { %v2677_v18 = vunpack.c.l.bf16 %v2696_v60  ;;  %1192 = vmatprep.subr.bf16.mxu1 %v3023_v63  ;;  %v2678_v17 = vunpack.c.h.bf16 %v2696_v60  ;;  %1214 = vmatprep.mubr.bf16.mxu1 %v3326_v36 }
 0x1a9   :  { %679 = vadd.xlane.f32.xlu1 %v3788_v32  ;;  %802 = vadd.xlane.f32.xlu0 %v764_v33  ;;  %v765_v20 = vmul.f32 %v3793_v35, %v3793_v35 }
 0x1aa   :  { %v646_v41 = vpop.xlane.xlu0 %645  ;;  %v3834_v12 = vadd.f32 %v2677_v18, %v517_v57  ;;  %v3858_v30 = vadd.f32 %v2678_v17, %v520_v11 }
 0x1ab   :  { %v702_v47 = vmul.f32 0.0078125, %v646_v41  ;;  %1193 = vmatpush1.bf16.msra.mxu1 %v3021_v0  ;;  %v528_v41 = vadd.f32 %v3680_v59, %v3545_v50 }
 0x1ac   :  { %v648_v52 = vpop.xlane.xlu1 %647 }
 0x1ad   :  { %v703_v55 = vmul.f32 0.0078125, %v648_v52  ;;  %804 = vadd.xlane.f32.xlu1 %v765_v20  ;;  %681 = vadd.xlane.f32.xlu0 %v3799_v46  ;;  %v3818_v56 = vsub.f32 %v3609_v14, %v702_v47  ;;  %v3026_v14 = vld [vmem:[%s4874_s6 + $0x64] ss:$8 sps:$4 sm:$0xff]  }
 0x1ae   :  { %1194 = vmatprep.subr.bf16.mxu1 %v3026_v14 }
 0x1af   :  { %v766_v7 = vmul.f32 %v3818_v56, %v3818_v56  ;;  %v3828_v8 = vsub.f32 %v3615_v19, %v703_v55  ;;  %v2697_v19 = vld [vmem:[%s4869_s1 + $0x78] sm:$0xff]   ;;  %1195 = vmatpush1.bf16.msra.mxu1 %v3024_v34 }
 0x1b0   :  { %v2681_v1 = vunpack.c.l.bf16 %v2697_v19  ;;  %1196 = vmatprep.subr.bf16.mxu1 %v3029_v22  ;;  %v2682_v47 = vunpack.c.h.bf16 %v2697_v19 }
 0x1b1   :  { %683 = vadd.xlane.f32.xlu1 %v3823_v3  ;;  %806 = vadd.xlane.f32.xlu0 %v766_v7  ;;  %v767_v16 = vmul.f32 %v3828_v8, %v3828_v8 }
 0x1b2   :  { %v650_v10 = vpop.xlane.xlu0 %649  ;;  %v3877_v52 = vadd.f32 %v2682_v47, %v528_v41 }
 0x1b3   :  { %v704_v39 = vmul.f32 0.0078125, %v650_v10  ;;  %1197 = vmatpush1.bf16.msra.mxu1 %v3027_v29 }
 0x1b4   :  { %v652_v21 = vpop.xlane.xlu1 %651 }
 0x1b5   :  { %v705_v28 = vmul.f32 0.0078125, %v652_v21  ;;  %808 = vadd.xlane.f32.xlu1 %v767_v16  ;;  %685 = vadd.xlane.f32.xlu0 %v3834_v12  ;;  %v3853_v26 = vsub.f32 %v3624_v37, %v704_v39  ;;  %v3866_v37 = vadd.f32 %v2681_v1, %v525_v40 }
 0x1b7   :  { %v768_v33 = vmul.f32 %v3853_v26, %v3853_v26  ;;  %v3863_v54 = vsub.f32 %v3630_v43, %v705_v28 }
 0x1b9   :  { %687 = vadd.xlane.f32.xlu1 %v3858_v30  ;;  %810 = vadd.xlane.f32.xlu0 %v768_v33  ;;  %v769_v48 = vmul.f32 %v3863_v54, %v3863_v54 }
 0x1ba   :  { %v654_v51 = vpop.xlane.xlu0 %653 }
 0x1bb   :  { %v706_v60 = vmul.f32 0.0078125, %v654_v51 }
 0x1bc   :  { %v656_v43 = vpop.xlane.xlu1 %655 }
 0x1bd   :  { %v707_v20 = vmul.f32 0.0078125, %v656_v43  ;;  %812 = vadd.xlane.f32.xlu1 %v769_v48  ;;  %689 = vadd.xlane.f32.xlu0 %v3866_v37  ;;  %v3875_v49 = vsub.f32 %v3639_v2, %v706_v60 }
 0x1bf   :  { %v770_v63 = vmul.f32 %v3875_v49, %v3875_v49  ;;  %v3882_v50 = vsub.f32 %v3645_v6, %v707_v20 }
 0x1c1   :  { %691 = vadd.xlane.f32.xlu1 %v3877_v52  ;;  %814 = vadd.xlane.f32.xlu0 %v770_v63  ;;  %v771_v57 = vmul.f32 %v3882_v50, %v3882_v50 }
 0x1c2   :  { %v658_v59 = vpop.xlane.xlu0 %657 }
 0x1c3   :  { %v708_v55 = vmul.f32 0.0078125, %v658_v59 }
 0x1c4   :  { %v660_v18 = vpop.xlane.xlu1 %659 }
 0x1c5   :  { %v709_v0 = vmul.f32 0.0078125, %v660_v18  ;;  %816 = vadd.xlane.f32.xlu1 %v771_v57  ;;  %v3888_v2 = vsub.f32 %v3664_v38, %v708_v55 }
 0x1c6   :  { %v662_v7 = vpop.xlane.xlu0 %661 }
 0x1c7   :  { %v710_v14 = vmul.f32 0.0078125, %v662_v7  ;;  %v772_v6 = vmul.f32 %v3888_v2, %v3888_v2  ;;  %v3893_v34 = vsub.f32 %v3669_v58, %v709_v0 }
 0x1c8   :  { %v664_v10 = vpop.xlane.xlu1 %663 }
 0x1c9   :  { %v711_v19 = vmul.f32 0.0078125, %v664_v10  ;;  %818 = vadd.xlane.f32.xlu0 %v772_v6  ;;  %v773_v11 = vmul.f32 %v3893_v34, %v3893_v34  ;;  %v3898_v39 = vsub.f32 %v3671_v45, %v710_v14 }
 0x1ca   :  { %v666_v16 = vpop.xlane.xlu0 %665 }
 0x1cb   :  { %v712_v38 = vmul.f32 0.0078125, %v666_v16  ;;  %820 = vadd.xlane.f32.xlu1 %v773_v11  ;;  %v774_v17 = vmul.f32 %v3898_v39, %v3898_v39  ;;  %v3903_v21 = vsub.f32 %v3678_v53, %v711_v19 }
 0x1cc   :  { %v668_v58 = vpop.xlane.xlu1 %667 }
 0x1cd   :  { %v713_v22 = vmul.f32 0.0078125, %v668_v58  ;;  %822 = vadd.xlane.f32.xlu0 %v774_v17  ;;  %v775_v28 = vmul.f32 %v3903_v21, %v3903_v21  ;;  %v3908_v40 = vsub.f32 %v3683_v13, %v712_v38 }
 0x1cf   :  { %824 = vadd.xlane.f32.xlu1 %v775_v28  ;;  %v776_v45 = vmul.f32 %v3908_v40, %v3908_v40  ;;  %v3913_v1 = vsub.f32 %v3686_v62, %v713_v22 }
 0x1d1   :  { %826 = vadd.xlane.f32.xlu0 %v776_v45  ;;  %v777_v53 = vmul.f32 %v3913_v1, %v3913_v1 }
 0x1d3   :  { %828 = vadd.xlane.f32.xlu1 %v777_v53 }
 0x21e   :  { %v791_v29 = vpop.xlane.xlu0 %790 }
 0x21f   :  { %v854_v33 = vmul.f32 0.0078125, %v791_v29 }
 0x221   :  { %v886_v51 = vadd.f32 1e-05, %v854_v33 }
 0x222   :  { %v793_v41 = vpop.xlane.xlu1 %792  ;;  %v670_v60 = vpop.xlane.xlu0 %669 }
 0x223   :  { %3046 = vrsqrt.f32 %v886_v51  ;;  %v855_v13 = vmul.f32 0.0078125, %v793_v41  ;;  %v714_v48 = vmul.f32 0.0078125, %v670_v60 }
 0x225   :  { %v887_v47 = vadd.f32 1e-05, %v855_v13  ;;  %v3918_v43 = vsub.f32 %v3712_v24, %v714_v48  ;;  %v3948_v48 = vld [vmem:[%s4873_s5] ss:$0 sm:$0xff] }
 0x226   :  { %v672_v20 = vpop.xlane.xlu1 %671  ;;  %v795_v62 = vpop.xlane.xlu0 %794 }
 0x227   :  { %3048 = vrsqrt.f32 %v887_v47  ;;  %v715_v63 = vmul.f32 0.0078125, %v672_v20  ;;  %v856_v59 = vmul.f32 0.0078125, %v795_v62  ;;  %v778_v55 = vmul.f32 %v3918_v43, %v3918_v43 }
 0x229   :  { %v888_v57 = vadd.f32 1e-05, %v856_v59  ;;  %830 = vadd.xlane.f32.xlu0 %v778_v55  ;;  %v3923_v18 = vsub.f32 %v3732_v42, %v715_v63  ;;  %v3934_v42 = vld [vmem:[%s4872_s4] ss:$0 sm:$0xff] }
 0x22a   :  { %v797_v0 = vpop.xlane.xlu1 %796  ;;  %v674_v7 = vpop.xlane.xlu0 %673 }
 0x22b   :  { %3050 = vrsqrt.f32 %v888_v57  ;;  %v857_v14 = vmul.f32 0.0078125, %v797_v0  ;;  %v716_v6 = vmul.f32 0.0078125, %v674_v7  ;;  %v779_v24 = vmul.f32 %v3923_v18, %v3923_v18 }
 0x22d   :  { %v3047_v10 = vpop.eup %3046  ;;  %v889_v19 = vadd.f32 1e-05, %v857_v14  ;;  %832 = vadd.xlane.f32.xlu1 %v779_v24  ;;  %v3928_v11 = vsub.f32 %v3735_v44, %v716_v6 }
 0x22e   :  { %v950_v16 = vmul.f32 %v3047_v10, %v3708_v15  ;;  %v676_v38 = vpop.xlane.xlu1 %675  ;;  %v799_v17 = vpop.xlane.xlu0 %798 }
 0x22f   :  { %3052 = vrsqrt.f32 %v889_v19  ;;  %v717_v58 = vmul.f32 0.0078125, %v676_v38  ;;  %v858_v22 = vmul.f32 0.0078125, %v799_v17  ;;  %v780_v28 = vmul.f32 %v3928_v11, %v3928_v11 }
 0x230   :  { %v988_v15 = vmul.f32 %v3934_v42, %v950_v16 }
 0x231   :  { %v3049_v45 = vpop.eup %3048  ;;  %v890_v53 = vadd.f32 1e-05, %v858_v22  ;;  %834 = vadd.xlane.f32.xlu0 %v780_v28  ;;  %v3939_v44 = vsub.f32 %v3753_v4, %v717_v58 }
 0x232   :  { %v951_v29 = vmul.f32 %v3049_v45, %v3715_v25  ;;  %v801_v33 = vpop.xlane.xlu1 %800  ;;  %v678_v51 = vpop.xlane.xlu0 %677  ;;  %v3955_v59 = vadd.f32 %v3948_v48, %v988_v15 }
 0x233   :  { %3054 = vrsqrt.f32 %v890_v53  ;;  %v859_v41 = vmul.f32 0.0078125, %v801_v33  ;;  %v718_v60 = vmul.f32 0.0078125, %v678_v51  ;;  %v781_v13 = vmul.f32 %v3939_v44, %v3939_v44 }
 0x234   :  { %v989_v4 = vmul.f32 %v3934_v42, %v951_v29 }
 0x235   :  { %v3051_v47 = vpop.eup %3050  ;;  %v891_v20 = vadd.f32 1e-05, %v859_v41  ;;  %v3952_v62 = vsub.f32 %v3764_v23, %v718_v60  ;;  %836 = vadd.xlane.f32.xlu1 %v781_v13 }
 0x236   :  { %v680_v25 = vpop.xlane.xlu1 %679  ;;  %v803_v63 = vpop.xlane.xlu0 %802  ;;  %v3958_v55 = vadd.f32 %v3948_v48, %v989_v4  ;;  %v952_v57 = vmul.f32 %v3051_v47, %v3728_v9 }
 0x237   :  { %3056 = vrsqrt.f32 %v891_v20  ;;  %v719_v0 = vmul.f32 0.0078125, %v680_v25  ;;  %v860_v7 = vmul.f32 0.0078125, %v803_v63  ;;  %v782_v14 = vmul.f32 %v3952_v62, %v3952_v62 }
 0x238   :  { %v1058_v23 = vpack.c.bf16 %v3958_v55, %v3955_v59  ;;  %v990_v38 = vmul.f32 %v3934_v42, %v952_v57 }
 0x239   :  { %v3053_v6 = vpop.eup %3052  ;;  %v3966_v24 = vsub.f32 %v3788_v32, %v719_v0  ;;  %v892_v10 = vadd.f32 1e-05, %v860_v7  ;;  %838 = vadd.xlane.f32.xlu0 %v782_v14 }
 0x23a   :  { %v805_v19 = vpop.xlane.xlu1 %804  ;;  %1215 = vmatmul.mubr.bf16.vlgmr.msra.gmra.mrb[32].mxu1 %v1058_v23  ;;  %v682_v16 = vpop.xlane.xlu0 %681  ;;  %v953_v9 = vmul.f32 %v3053_v6, %v3738_v61  ;;  %v3978_v29 = vadd.f32 %v3948_v48, %v990_v38 }
 0x23b   :  { %3058 = vrsqrt.f32 %v892_v10  ;;  %v861_v17 = vmul.f32 0.0078125, %v805_v19  ;;  %v720_v58 = vmul.f32 0.0078125, %v682_v16  ;;  %v783_v22 = vmul.f32 %v3966_v24, %v3966_v24  ;;  %1224 = vmatprep.mubr.bf16.mxu1 %v3326_v36 }
 0x23c   :  { %v991_v32 = vmul.f32 %v3934_v42, %v953_v9 }
 0x23d   :  { %v3055_v28 = vpop.eup %3054  ;;  %v893_v45 = vadd.f32 1e-05, %v861_v17  ;;  %v3975_v53 = vsub.f32 %v3799_v46, %v720_v58  ;;  %840 = vadd.xlane.f32.xlu1 %v783_v22 }
 0x23e   :  { %v684_v15 = vpop.xlane.xlu1 %683  ;;  %v807_v61 = vpop.xlane.xlu0 %806  ;;  %v3981_v33 = vadd.f32 %v3948_v48, %v991_v32  ;;  %v954_v51 = vmul.f32 %v3055_v28, %v3751_v27 }
 0x23f   :  { %3060 = vrsqrt.f32 %v893_v45  ;;  %v721_v41 = vmul.f32 0.0078125, %v684_v15  ;;  %v862_v60 = vmul.f32 0.0078125, %v807_v61  ;;  %v784_v13 = vmul.f32 %v3975_v53, %v3975_v53 }
 0x240   :  { %v1059_v46 = vpack.c.bf16 %v3981_v33, %v3978_v29  ;;  %v992_v57 = vmul.f32 %v3934_v42, %v954_v51 }
 0x241   :  { %v3057_v4 = vpop.eup %3056  ;;  %v3989_v47 = vsub.f32 %v3823_v3, %v721_v41  ;;  %v894_v20 = vadd.f32 1e-05, %v862_v60  ;;  %842 = vadd.xlane.f32.xlu0 %v784_v13 }
 0x242   :  { %v809_v25 = vpop.xlane.xlu1 %808  ;;  %1225 = vmatmul.mubr.bf16.gmra.mrb[36].mxu1 %v1059_v46  ;;  %v686_v63 = vpop.xlane.xlu0 %685  ;;  %v955_v27 = vmul.f32 %v3057_v4, %v3758_v5  ;;  %v4001_v16 = vadd.f32 %v3948_v48, %v992_v57 }
 0x243   :  { %3062 = vrsqrt.f32 %v894_v20  ;;  %v863_v0 = vmul.f32 0.0078125, %v809_v25  ;;  %v722_v7 = vmul.f32 0.0078125, %v686_v63  ;;  %v785_v14 = vmul.f32 %v3989_v47, %v3989_v47  ;;  %1234 = vmatprep.mubr.bf16.mxu1 %v3326_v36 }
 0x244   :  { %v993_v3 = vmul.f32 %v3934_v42, %v955_v27 }
 0x245   :  { %v3059_v23 = vpop.eup %3058  ;;  %v895_v6 = vadd.f32 1e-05, %v863_v0  ;;  %v3998_v10 = vsub.f32 %v3834_v12, %v722_v7  ;;  %844 = vadd.xlane.f32.xlu1 %v785_v14 }
 0x246   :  { %v688_v19 = vpop.xlane.xlu1 %687  ;;  %v811_v5 = vpop.xlane.xlu0 %810  ;;  %v4004_v9 = vadd.f32 %v3948_v48, %v993_v3  ;;  %v956_v38 = vmul.f32 %v3059_v23, %v3783_v31 }
 0x247   :  { %3064 = vrsqrt.f32 %v895_v6  ;;  %v723_v17 = vmul.f32 0.0078125, %v688_v19  ;;  %v864_v58 = vmul.f32 0.0078125, %v811_v5  ;;  %v786_v22 = vmul.f32 %v3998_v10, %v3998_v10 }
 0x248   :  { %v1060_v12 = vpack.c.bf16 %v4004_v9, %v4001_v16  ;;  %v994_v51 = vmul.f32 %v3934_v42, %v956_v38 }
 0x249   :  { %v3061_v32 = vpop.eup %3060  ;;  %v4012_v28 = vsub.f32 %v3858_v30, %v723_v17  ;;  %v896_v45 = vadd.f32 1e-05, %v864_v58  ;;  %846 = vadd.xlane.f32.xlu0 %v786_v22 }
 0x24a   :  { %v813_v15 = vpop.xlane.xlu1 %812  ;;  %1235 = vmatmul.mubr.bf16.gmra.mrb[40].mxu1 %v1060_v12  ;;  %v690_v61 = vpop.xlane.xlu0 %689  ;;  %v957_v31 = vmul.f32 %v3061_v32, %v3793_v35  ;;  %v4024_v63 = vadd.f32 %v3948_v48, %v994_v51 }
 0x24b   :  { %3066 = vrsqrt.f32 %v896_v45  ;;  %v865_v41 = vmul.f32 0.0078125, %v813_v15  ;;  %v724_v60 = vmul.f32 0.0078125, %v690_v61  ;;  %v787_v13 = vmul.f32 %v4012_v28, %v4012_v28  ;;  %1244 = vmatprep.mubr.bf16.mxu1 %v3326_v36 }
 0x24c   :  { %v995_v30 = vmul.f32 %v3934_v42, %v957_v31 }
 0x24d   :  { %v3063_v46 = vpop.eup %3062  ;;  %v897_v4 = vadd.f32 1e-05, %v865_v41  ;;  %v4021_v20 = vsub.f32 %v3866_v37, %v724_v60  ;;  %848 = vadd.xlane.f32.xlu1 %v787_v13 }
 0x24e   :  { %v692_v25 = vpop.xlane.xlu1 %691  ;;  %v815_v35 = vpop.xlane.xlu0 %814  ;;  %v4027_v27 = vadd.f32 %v3948_v48, %v995_v30  ;;  %v958_v57 = vmul.f32 %v3063_v46, %v3818_v56 }
 0x24f   :  { %3068 = vrsqrt.f32 %v897_v4  ;;  %v725_v0 = vmul.f32 0.0078125, %v692_v25  ;;  %v866_v7 = vmul.f32 0.0078125, %v815_v35  ;;  %v788_v14 = vmul.f32 %v4021_v20, %v4021_v20 }
 0x250   :  { %v1061_v37 = vpack.c.bf16 %v4027_v27, %v4024_v63  ;;  %v996_v56 = vmul.f32 %v3934_v42, %v958_v57 }
 0x251   :  { %v3065_v3 = vpop.eup %3064  ;;  %v4035_v23 = vsub.f32 %v3877_v52, %v725_v0  ;;  %v898_v6 = vadd.f32 1e-05, %v866_v7  ;;  %850 = vadd.xlane.f32.xlu0 %v788_v14 }
 0x252   :  { %v817_v19 = vpop.xlane.xlu1 %816  ;;  %1245 = vmatmul.mubr.bf16.gmra.mrb[44].mxu1 %v1061_v37  ;;  %v959_v5 = vmul.f32 %v3065_v3, %v3828_v8  ;;  %v4044_v32 = vadd.f32 %v3948_v48, %v996_v56 }
 0x253   :  { %3070 = vrsqrt.f32 %v898_v6  ;;  %v867_v38 = vmul.f32 0.0078125, %v817_v19  ;;  %v789_v17 = vmul.f32 %v4035_v23, %v4035_v23  ;;  %1254 = vmatprep.mubr.bf16.mxu1 %v3326_v36 }
 0x254   :  { %v997_v58 = vmul.f32 %v3934_v42, %v959_v5 }
 0x255   :  { %v3067_v22 = vpop.eup %3066  ;;  %v899_v52 = vadd.f32 1e-05, %v867_v38  ;;  %852 = vadd.xlane.f32.xlu1 %v789_v17 }
 0x256   :  { %v819_v12 = vpop.xlane.xlu0 %818  ;;  %v4047_v8 = vadd.f32 %v3948_v48, %v997_v58  ;;  %v960_v45 = vmul.f32 %v3067_v22, %v3853_v26 }
 0x257   :  { %3072 = vrsqrt.f32 %v899_v52  ;;  %v868_v15 = vmul.f32 0.0078125, %v819_v12 }
 0x258   :  { %v821_v61 = vpop.xlane.xlu1 %820  ;;  %v1062_v31 = vpack.c.bf16 %v4047_v8, %v4044_v32  ;;  %v998_v46 = vmul.f32 %v3934_v42, %v960_v45 }
 0x259   :  { %v3069_v51 = vpop.eup %3068  ;;  %v900_v41 = vadd.f32 1e-05, %v868_v15  ;;  %v869_v60 = vmul.f32 0.0078125, %v821_v61 }
 0x25a   :  { %1255 = vmatmul.mubr.bf16.gmra.mrb[48].mxu1 %v1062_v31  ;;  %v823_v13 = vpop.xlane.xlu0 %822  ;;  %v961_v30 = vmul.f32 %v3069_v51, %v3863_v54  ;;  %v4057_v37 = vadd.f32 %v3948_v48, %v998_v46 }
 0x25b   :  { %3074 = vrsqrt.f32 %v900_v41  ;;  %v901_v4 = vadd.f32 1e-05, %v869_v60  ;;  %v870_v25 = vmul.f32 0.0078125, %v823_v13  ;;  %1264 = vmatprep.mubr.bf16.mxu1 %v3326_v36 }
 0x25c   :  { %v825_v26 = vpop.xlane.xlu1 %824  ;;  %v999_v35 = vmul.f32 %v3934_v42, %v961_v30 }
 0x25d   :  { %v3071_v57 = vpop.eup %3070  ;;  %3076 = vrsqrt.f32 %v901_v4  ;;  %v902_v0 = vadd.f32 1e-05, %v870_v25  ;;  %v871_v7 = vmul.f32 0.0078125, %v825_v26 }
 0x25e   :  { %v827_v14 = vpop.xlane.xlu0 %826  ;;  %v4060_v54 = vadd.f32 %v3948_v48, %v999_v35  ;;  %v962_v3 = vmul.f32 %v3071_v57, %v3875_v49 }
 0x25f   :  { %v903_v6 = vadd.f32 1e-05, %v871_v7  ;;  %3078 = vrsqrt.f32 %v902_v0  ;;  %v872_v38 = vmul.f32 0.0078125, %v827_v14 }
 0x260   :  { %v829_v19 = vpop.xlane.xlu1 %828  ;;  %v1063_v5 = vpack.c.bf16 %v4060_v54, %v4057_v37  ;;  %v1000_v22 = vmul.f32 %v3934_v42, %v962_v3 }
 0x261   :  { %v3073_v56 = vpop.eup %3072  ;;  %3080 = vrsqrt.f32 %v903_v6  ;;  %v873_v17 = vmul.f32 0.0078125, %v829_v19  ;;  %v904_v45 = vadd.f32 1e-05, %v872_v38 }
 0x262   :  { %1265 = vmatmul.mubr.bf16.gmra.mrb[52].mxu1 %v1063_v5  ;;  %v963_v58 = vmul.f32 %v3073_v56, %v3882_v50  ;;  %v4070_v15 = vadd.f32 %v3948_v48, %v1000_v22  ;;  %v3030_v56 = vld [vmem:[%s4876_s8 + $0x40] sm:$0xff]  }
 0x263   :  { %v905_v52 = vadd.f32 1e-05, %v873_v17  ;;  %1274 = vmatprep.mubr.bf16.mxu1 %v3326_v36  ;;  %2810 = vmatprep.subr.bf16.mxu0 %v3030_v56  ;;  %v3033_v17 = vld [vmem:[%s4876_s8 + $0x8] sm:$0xff]  }
 0x264   :  { %v1001_v49 = vmul.f32 %v3934_v42, %v963_v58 }
 0x265   :  { %v3075_v12 = vpop.eup %3074  ;;  %3082 = vrsqrt.f32 %v905_v52  ;;  %v3034_v52 = vld [vmem:[%s4876_s8 + $0x50] sm:$0xff]  }
 0x266   :  { %v4073_v61 = vadd.f32 %v3948_v48, %v1001_v49  ;;  %v964_v31 = vmul.f32 %v3075_v12, %v3888_v2  ;;  %3084 = vrsqrt.f32 %v904_v45  ;;  %v3035_v49 = vld [vmem:[%s4876_s8 + $0x10] sm:$0xff]   ;;  %v3036_v12 = vld [vmem:[%s4876_s8 + $0x58] sm:$0xff]  }
 0x267   :  { %v3077_v51 = vpop.eup %3076  ;;  %v3037_v45 = vld [vmem:[%s4876_s8 + $0x18] sm:$0xff]  }
 0x268   :  { %v1064_v50 = vpack.c.bf16 %v4073_v61, %v4070_v15  ;;  %v965_v41 = vmul.f32 %v3077_v51, %v3893_v34  ;;  %v1002_v13 = vmul.f32 %v3934_v42, %v964_v31  ;;  %v3038_v31 = vld [vmem:[%s4876_s8 + $0x60] sm:$0xff]  }
 0x269   :  { %v3079_v60 = vpop.eup %3078  ;;  %v3039_v51 = vld [vmem:[%s4876_s8 + $0x20] sm:$0xff]  }
 0x26a   :  { %1275 = vmatmul.mubr.bf16.gmra.mrb[56].mxu1 %v1064_v50  ;;  %v1003_v30 = vmul.f32 %v3934_v42, %v965_v41  ;;  %v4087_v25 = vadd.f32 %v3948_v48, %v1002_v13  ;;  %v966_v34 = vmul.f32 %v3079_v60, %v3898_v39  ;;  %v3040_v50 = vld [vmem:[%s4876_s8 + $0x68] sm:$0xff]   ;;  %v3042_v60 = vld [vmem:[%s4876_s8 + $0x70] sm:$0xff]  }
 0x26b   :  { %v3081_v46 = vpop.eup %3080  ;;  %1284 = vmatprep.mubr.bf16.mxu1 %v3326_v36  ;;  %v3041_v41 = vld [vmem:[%s4876_s8 + $0x28] sm:$0xff]   ;;  %v3043_v13 = vld [vmem:[%s4876_s8 + $0x30] sm:$0xff]  }
 0x26c   :  { %v4083_v4 = vadd.f32 %v3948_v48, %v1003_v30  ;;  %v967_v2 = vmul.f32 %v3081_v46, %v3903_v21  ;;  %v1004_v0 = vmul.f32 %v3934_v42, %v966_v34  ;;  %v3044_v30 = vld [vmem:[%s4876_s8 + $0x78] sm:$0xff]  }
 0x26d   :  { %v3045_v46 = vld [vmem:[%s4876_s8 + $0x38] sm:$0xff]  }
 0x26e   :  { %v1065_v26 = vpack.c.bf16 %v4083_v4, %v4087_v25  ;;  %v1005_v35 = vmul.f32 %v3934_v42, %v967_v2  ;;  %v4100_v3 = vadd.f32 %v3948_v48, %v1004_v0 }
 0x26f   :  { %v3083_v57 = vpop.eup %3082 }
 0x270   :  { %v3085_v7 = vpop.eup %3084  ;;  %v4096_v14 = vadd.f32 %v3948_v48, %v1005_v35  ;;  %v969_v21 = vmul.f32 %v3083_v57, %v3913_v1  ;;  %v3031_v1 = vld [vmem:[%s4876_s8] sm:$0xff]  }
 0x271   :  { %v968_v39 = vmul.f32 %v3085_v7, %v3908_v40  ;;  %v3032_v40 = vld [vmem:[%s4876_s8 + $0x48] sm:$0xff]   ;;  %2811 = vmatpush3.bf16.msra.mxu0 %v3031_v1 }
 0x272   :  { %1285 = vmatmul.mubr.bf16.gmra.mrb[60].mxu1 %v1065_v26  ;;  %v1066_v6 = vpack.c.bf16 %v4096_v14, %v4100_v3  ;;  %v1007_v19 = vmul.f32 %v3934_v42, %v969_v21  ;;  %2812 = vmatprep.subr.bf16.mxu0 %v3032_v40 }
 0x273   :  { %1294 = vmatprep.mubr.bf16.mxu1 %v3326_v36  ;;  %v1006_v5 = vmul.f32 %v3934_v42, %v968_v39 }
 0x274   :  { %v4118_v38 = vadd.f32 %v3948_v48, %v1007_v19 }
 0x275   :  { %v4124_v58 = vadd.f32 %v3948_v48, %v1006_v5  ;;  %2813 = vmatpush3.bf16.msra.mxu0 %v3033_v17 }
 0x276   :  { %2814 = vmatprep.subr.bf16.mxu0 %v3034_v52 }
 0x277   :  { %v1067_v22 = vpack.c.bf16 %v4118_v38, %v4124_v58 }
 0x279   :  { %2815 = vmatpush3.bf16.msra.mxu0 %v3035_v49 }
 0x27a   :  { %1295 = vmatmul.mubr.bf16.gmra.mrb[64].mxu1 %v1066_v6  ;;  %2816 = vmatprep.subr.bf16.mxu0 %v3036_v12 }
 0x27b   :  { %1304 = vmatprep.mubr.bf16.mxu1 %v3326_v36 }
 0x27d   :  { %2817 = vmatpush3.bf16.msra.mxu0 %v3037_v45 }
 0x27e   :  { %2818 = vmatprep.subr.bf16.mxu0 %v3038_v31 }
 0x281   :  { %2819 = vmatpush3.bf16.msra.mxu0 %v3039_v51 }
 0x282   :  { %1305 = vmatmul.mubr.bf16.gmra.mrb[68].mxu1 %v1067_v22  ;;  %2820 = vmatprep.subr.bf16.mxu0 %v3040_v50 }
 0x283   :  { %1314 = vmatprep.mubr.bf16.mxu1 %v3326_v36 }
 0x285   :  { %2821 = vmatpush3.bf16.msra.mxu0 %v3041_v41 }
 0x286   :  { %2822 = vmatprep.subr.bf16.mxu0 %v3042_v60 }
 0x289   :  { %2823 = vmatpush3.bf16.msra.mxu0 %v3043_v13 }
 0x28a   :  { %2824 = vmatprep.subr.bf16.mxu0 %v3044_v30 }
 0x28d   :  { %2825 = vmatpush3.bf16.msra.mxu0 %v3045_v46 }
 0x2b6   :  { %v831_v2 = vpop.xlane.xlu0 %830 }
 0x2b7   :  { %v874_v34 = vmul.f32 0.0078125, %v831_v2 }
 0x2b9   :  { %v906_v26 = vadd.f32 1e-05, %v874_v34 }
 0x2ba   :  { %v833_v35 = vpop.xlane.xlu1 %832 }
 0x2bb   :  { %3086 = vrsqrt.f32 %v906_v26  ;;  %v875_v57 = vmul.f32 0.0078125, %v833_v35 }
 0x2bd   :  { %v907_v0 = vadd.f32 1e-05, %v875_v57 }
 0x2be   :  { %v835_v7 = vpop.xlane.xlu0 %834 }
 0x2bf   :  { %3088 = vrsqrt.f32 %v907_v0  ;;  %v876_v21 = vmul.f32 0.0078125, %v835_v7 }
 0x2c1   :  { %v908_v39 = vadd.f32 1e-05, %v876_v21 }
 0x2c2   :  { %v837_v6 = vpop.xlane.xlu1 %836 }
 0x2c3   :  { %3090 = vrsqrt.f32 %v908_v39  ;;  %v877_v19 = vmul.f32 0.0078125, %v837_v6 }
 0x2c5   :  { %v3087_v5 = vpop.eup %3086  ;;  %v909_v56 = vadd.f32 1e-05, %v877_v19 }
 0x2c6   :  { %v839_v1 = vpop.xlane.xlu0 %838  ;;  %v970_v40 = vmul.f32 %v3087_v5, %v3918_v43 }
 0x2c7   :  { %3092 = vrsqrt.f32 %v909_v56  ;;  %v878_v17 = vmul.f32 0.0078125, %v839_v1 }
 0x2c8   :  { %v1008_v45 = vmul.f32 %v3934_v42, %v970_v40 }
 0x2c9   :  { %v3089_v22 = vpop.eup %3088  ;;  %v910_v52 = vadd.f32 1e-05, %v878_v17 }
 0x2ca   :  { %v841_v49 = vpop.xlane.xlu1 %840  ;;  %v971_v12 = vmul.f32 %v3089_v22, %v3923_v18  ;;  %v4170_v13 = vadd.f32 %v3948_v48, %v1008_v45 }
 0x2cb   :  { %3094 = vrsqrt.f32 %v910_v52  ;;  %v879_v31 = vmul.f32 0.0078125, %v841_v49 }
 0x2cc   :  { %v1009_v51 = vmul.f32 %v3934_v42, %v971_v12 }
 0x2cd   :  { %v3091_v50 = vpop.eup %3090  ;;  %v911_v41 = vadd.f32 1e-05, %v879_v31 }
 0x2ce   :  { %v843_v60 = vpop.xlane.xlu0 %842  ;;  %v4173_v43 = vadd.f32 %v3948_v48, %v1009_v51  ;;  %v972_v30 = vmul.f32 %v3091_v50, %v3928_v11 }
 0x2cf   :  { %3096 = vrsqrt.f32 %v911_v41  ;;  %v880_v46 = vmul.f32 0.0078125, %v843_v60 }
 0x2d0   :  { %v1068_v18 = vpack.c.bf16 %v4173_v43, %v4170_v13  ;;  %v1010_v57 = vmul.f32 %v3934_v42, %v972_v30 }
 0x2d1   :  { %v3093_v2 = vpop.eup %3092  ;;  %v912_v34 = vadd.f32 1e-05, %v880_v46 }
 0x2d2   :  { %v845_v26 = vpop.xlane.xlu1 %844  ;;  %1315 = vmatmul.mubr.bf16.gmra.mrb[72].mxu1 %v1068_v18  ;;  %v973_v35 = vmul.f32 %v3093_v2, %v3939_v44  ;;  %v4183_v6 = vadd.f32 %v3948_v48, %v1010_v57 }
 0x2d3   :  { %3098 = vrsqrt.f32 %v912_v34  ;;  %v881_v0 = vmul.f32 0.0078125, %v845_v26  ;;  %1324 = vmatprep.mubr.bf16.mxu1 %v3326_v36 }
 0x2d4   :  { %v1011_v7 = vmul.f32 %v3934_v42, %v973_v35 }
 0x2d5   :  { %v3095_v11 = vpop.eup %3094  ;;  %v913_v21 = vadd.f32 1e-05, %v881_v0 }
 0x2d6   :  { %v847_v39 = vpop.xlane.xlu0 %846  ;;  %v4186_v19 = vadd.f32 %v3948_v48, %v1011_v7  ;;  %v974_v5 = vmul.f32 %v3095_v11, %v3952_v62 }
 0x2d7   :  { %3100 = vrsqrt.f32 %v913_v21  ;;  %v882_v44 = vmul.f32 0.0078125, %v847_v39 }
 0x2d8   :  { %v1069_v56 = vpack.c.bf16 %v4186_v19, %v4183_v6  ;;  %v1012_v52 = vmul.f32 %v3934_v42, %v974_v5 }
 0x2d9   :  { %v3097_v1 = vpop.eup %3096  ;;  %v914_v40 = vadd.f32 1e-05, %v882_v44 }
 0x2da   :  { %v849_v17 = vpop.xlane.xlu1 %848  ;;  %1325 = vmatmul.mubr.bf16.gmra.mrb[76].mxu1 %v1069_v56  ;;  %v975_v22 = vmul.f32 %v3097_v1, %v3966_v24  ;;  %v4196_v51 = vadd.f32 %v3948_v48, %v1012_v52 }
 0x2db   :  { %3102 = vrsqrt.f32 %v914_v40  ;;  %v883_v49 = vmul.f32 0.0078125, %v849_v17  ;;  %1334 = vmatprep.mubr.bf16.mxu1 %v3326_v36 }
 0x2dc   :  { %v1013_v12 = vmul.f32 %v3934_v42, %v975_v22 }
 0x2dd   :  { %v3099_v62 = vpop.eup %3098  ;;  %v915_v45 = vadd.f32 1e-05, %v883_v49 }
 0x2de   :  { %v851_v31 = vpop.xlane.xlu0 %850  ;;  %v4199_v50 = vadd.f32 %v3948_v48, %v1013_v12  ;;  %v976_v41 = vmul.f32 %v3099_v62, %v3975_v53 }
 0x2df   :  { %3104 = vrsqrt.f32 %v915_v45  ;;  %v884_v24 = vmul.f32 0.0078125, %v851_v31  ;;  %v1092_v45 = vlaneseq }
 0x2e0   :  { %v1070_v60 = vpack.c.bf16 %v4199_v50, %v4196_v51  ;;  %v1014_v34 = vmul.f32 %v3934_v42, %v976_v41 }
 0x2e1   :  { %v3101_v30 = vpop.eup %3100  ;;  %v916_v46 = vadd.f32 1e-05, %v884_v24  ;;  %v1093_v31 = vshrl.u32 %v1092_v45, 7 }
 0x2e2   :  { %v853_v18 = vpop.xlane.xlu1 %852  ;;  %1335 = vmatmul.mubr.bf16.gmra.mrb[80].mxu1 %v1070_v60  ;;  %v977_v2 = vmul.f32 %v3101_v30, %v3989_v47  ;;  %v4209_v0 = vadd.f32 %v3948_v48, %v1014_v34 }
 0x2e3   :  { %3106 = vrsqrt.f32 %v916_v46  ;;  %v885_v26 = vmul.f32 0.0078125, %v853_v18  ;;  %1344 = vmatprep.mubr.bf16.mxu1 %v3326_v36  ;;  %v1094_v41 = vsub.s32 0, %v1093_v31 }
 0x2e4   :  { %v1015_v35 = vmul.f32 %v3934_v42, %v977_v2 }
 0x2e5   :  { %v3103_v53 = vpop.eup %3102  ;;  %v917_v57 = vadd.f32 1e-05, %v885_v26 }
 0x2e6   :  { %v4212_v7 = vadd.f32 %v3948_v48, %v1015_v35  ;;  %v978_v11 = vmul.f32 %v3103_v53, %v3998_v10 }
 0x2e7   :  { %3108 = vrsqrt.f32 %v917_v57 }
 0x2e8   :  { %v1071_v47 = vpack.c.bf16 %v4212_v7, %v4209_v0  ;;  %v1016_v5 = vmul.f32 %v3934_v42, %v978_v11 }
 0x2e9   :  { %v3105_v21 = vpop.eup %3104 }
 0x2ea   :  { %1345 = vmatmul.mubr.bf16.gmra.mrb[84].mxu1 %v1071_v47  ;;  %v979_v39 = vmul.f32 %v3105_v21, %v4012_v28  ;;  %v4222_v1 = vadd.f32 %v3948_v48, %v1016_v5 }
 0x2eb   :  { %1354 = vmatprep.mubr.bf16.mxu1 %v3326_v36 }
 0x2ec   :  { %v1017_v44 = vmul.f32 %v3934_v42, %v979_v39 }
 0x2ed   :  { %v3107_v56 = vpop.eup %3106 }
 0x2ee   :  { %v4225_v10 = vadd.f32 %v3948_v48, %v1017_v44  ;;  %v980_v40 = vmul.f32 %v3107_v56, %v4021_v20 }
 0x2f0   :  { %4884 = vst [vmem:[#allocation5_spill] sm:$0xff] %v4225_v10  ;;  %v1072_v17 = vpack.c.bf16 %v4225_v10, %v4222_v1  ;;  %v1018_v52 = vmul.f32 %v3934_v42, %v980_v40 }
 0x2f1   :  { %v3109_v22 = vpop.eup %3108 }
 0x2f2   :  { %1355 = vmatmul.mubr.bf16.gmra.mrb[88].mxu1 %v1072_v17  ;;  %v981_v28 = vmul.f32 %v3109_v22, %v4035_v23  ;;  %v4235_v12 = vadd.f32 %v3948_v48, %v1018_v52  ;;  %v1090_v23 = vld [vmem:[%s4875_s7] sm:$0x3] }
 0x2f3   :  { %1364 = vmatprep.mubr.bf16.mxu1 %v3326_v36  ;;  %v1098_v36 = vsub.s32 1, %v1093_v31  ;;  %v4245_v24 = vrot.slane %v1090_v23, %v1094_v41 }
 0x2f4   :  { %v1019_v49 = vmul.f32 %v3934_v42, %v981_v28  ;;  %4885 = vst [vmem:[#allocation6_spill] sm:$0xff] %v4235_v12 }
 0x2f5   :  { %v4247_v42 = vrot.slane %v1090_v23, %v1098_v36 }
 0x2f6   :  { %v4238_v62 = vadd.f32 %v3948_v48, %v1019_v49 }
 0x2f8   :  { %4886 = vst [vmem:[#allocation7_spill] sm:$0xff] %v4238_v62  ;;  %v1073_v20 = vpack.c.bf16 %v4238_v62, %v4235_v12 }
 0x2fa   :  { %1365 = vmatmul.mubr.bf16.gmra.mrb[92].mxu1 %v1073_v20 }
 0x30d   :  { %v1216_v60 = vpop.f32.mrb[32].mxu1 }
 0x30e   :  { %v1217_v48 = vadd.f32 %v1216_v60, %v4245_v24  ;;  %v1218_v30 = vpop.f32.mrb[33].mxu1 }
 0x30f   :  { %v1219_v46 = vadd.f32 %v1218_v30, %v4247_v42  ;;  %v1220_v18 = vpop.f32.mrb[34].mxu1 }
 0x310   :  { %v1439_v2 = vmul.f32 0.70710677, %v1217_v48  ;;  %v1221_v34 = vadd.f32 %v1220_v18, %v4245_v24  ;;  %v1222_v26 = vpop.f32.mrb[35].mxu1 }
 0x311   :  { %v1440_v35 = vmul.f32 0.70710677, %v1219_v46  ;;  %v1223_v53 = vadd.f32 %v1222_v26, %v4247_v42 }
 0x312   :  { %3110 = verf.f32 %v1439_v2  ;;  %v1441_v57 = vmul.f32 0.70710677, %v1221_v34  ;;  %v1375_v2 = vmul.f32 0.5, %v1217_v48  ;;  %v1377_v26 = vmul.f32 0.5, %v1221_v34 }
 0x313   :  { %3112 = verf.f32 %v1440_v35  ;;  %v1442_v11 = vmul.f32 0.70710677, %v1223_v53 }
 0x314   :  { %3114 = verf.f32 %v1441_v57 }
 0x315   :  { %3116 = verf.f32 %v1442_v11  ;;  %v1226_v47 = vpop.f32.mrb[36].mxu1 }
 0x316   :  { %v1227_v21 = vadd.f32 %v1226_v47, %v4245_v24  ;;  %v1228_v39 = vpop.f32.mrb[37].mxu1  ;;  %v1376_v47 = vmul.f32 0.5, %v1219_v46 }
 0x317   :  { %v1229_v5 = vadd.f32 %v1228_v39, %v4247_v42  ;;  %v1230_v44 = vpop.f32.mrb[38].mxu1  ;;  %v1378_v39 = vmul.f32 0.5, %v1223_v53 }
 0x318   :  { %v1443_v56 = vmul.f32 0.70710677, %v1227_v21  ;;  %v1231_v40 = vadd.f32 %v1230_v44, %v4245_v24  ;;  %v1232_v17 = vpop.f32.mrb[39].mxu1 }
 0x319   :  { %v1444_v22 = vmul.f32 0.70710677, %v1229_v5  ;;  %v1233_v28 = vadd.f32 %v1232_v17, %v4247_v42 }
 0x31a   :  { %3118 = verf.f32 %v1443_v56  ;;  %v1445_v52 = vmul.f32 0.70710677, %v1231_v40 }
 0x31b   :  { %3120 = verf.f32 %v1444_v22  ;;  %v1446_v49 = vmul.f32 0.70710677, %v1233_v28 }
 0x31c   :  { %v3111_v20 = vpop.eup %3110  ;;  %3122 = verf.f32 %v1445_v52 }
 0x31d   :  { %v3113_v45 = vpop.eup %3112  ;;  %v1567_v31 = vadd.f32 1.0, %v3111_v20  ;;  %3124 = verf.f32 %v1446_v49  ;;  %v1236_v41 = vpop.f32.mrb[40].mxu1 }
 0x31e   :  { %v3115_v23 = vpop.eup %3114  ;;  %v1568_v36 = vadd.f32 1.0, %v3113_v45  ;;  %v4258_v60 = vadd.f32 %v1236_v41, %v4245_v24  ;;  %v1238_v30 = vpop.f32.mrb[41].mxu1 }
 0x31f   :  { %v3117_v18 = vpop.eup %3116  ;;  %v1569_v35 = vadd.f32 1.0, %v3115_v23  ;;  %v4261_v57 = vadd.f32 %v1238_v30, %v4247_v42  ;;  %v1240_v11 = vpop.f32.mrb[42].mxu1  ;;  %v1631_v22 = vmul.f32 %v1567_v31, %v1375_v2 }
 0x320   :  { %v1570_v44 = vadd.f32 1.0, %v3117_v18  ;;  %v1447_v56 = vmul.f32 0.70710677, %v4258_v60  ;;  %v1242_v17 = vpop.f32.mrb[43].mxu1  ;;  %v1241_v20 = vadd.f32 %v1240_v11, %v4245_v24  ;;  %v1632_v45 = vmul.f32 %v1568_v36, %v1376_v47 }
 0x321   :  { %v1633_v52 = vmul.f32 %v1569_v35, %v1377_v26  ;;  %v1448_v49 = vmul.f32 0.70710677, %v4261_v57  ;;  %v1243_v34 = vadd.f32 %v1242_v17, %v4247_v42  ;;  %v1379_v47 = vmul.f32 0.5, %v1227_v21 }
 0x322   :  { %v1634_v48 = vmul.f32 %v1570_v44, %v1378_v39  ;;  %3126 = verf.f32 %v1447_v56  ;;  %v1449_v23 = vmul.f32 0.70710677, %v1241_v20  ;;  %v1381_v39 = vmul.f32 0.5, %v1231_v40 }
 0x323   :  { %v1695_v41 = vpack.c.bf16 %v1633_v52, %v1631_v22  ;;  %3128 = verf.f32 %v1448_v49  ;;  %v1450_v53 = vmul.f32 0.70710677, %v1243_v34  ;;  %v1380_v22 = vmul.f32 0.5, %v1229_v5 }
 0x324   :  { %v3119_v46 = vpop.eup %3118  ;;  %v1696_v30 = vpack.c.bf16 %v1634_v48, %v1632_v45  ;;  %3130 = verf.f32 %v1449_v23  ;;  %v1382_v52 = vmul.f32 0.5, %v1233_v28 }
 0x325   :  { %v3121_v18 = vpop.eup %3120  ;;  %v1571_v62 = vadd.f32 1.0, %v3119_v46  ;;  %v1246_v31 = vpop.f32.mrb[44].mxu1  ;;  %3132 = verf.f32 %v1450_v53 }
 0x326   :  { %v3123_v2 = vpop.eup %3122  ;;  %v1572_v26 = vadd.f32 1.0, %v3121_v18  ;;  %v4268_v35 = vadd.f32 %v1246_v31, %v4245_v24  ;;  %v1248_v36 = vpop.f32.mrb[45].mxu1  ;;  %1894 = vmatprep.mubr.bf16.mxu0 %v1696_v30 }
 0x327   :  { %v3125_v11 = vpop.eup %3124  ;;  %v1573_v44 = vadd.f32 1.0, %v3123_v2  ;;  %v4271_v56 = vadd.f32 %v1248_v36, %v4247_v42  ;;  %v1250_v17 = vpop.f32.mrb[46].mxu1  ;;  %1895 = vmatmul.mubr.bf16.vlgmr.msra.gmra.mrb[32].mxu0 %v1695_v41  ;;  %v1635_v23 = vmul.f32 %v1571_v62, %v1379_v47 }
 0x328   :  { %v1574_v49 = vadd.f32 1.0, %v3125_v11  ;;  %v1451_v45 = vmul.f32 0.70710677, %v4268_v35  ;;  %v1252_v48 = vpop.f32.mrb[47].mxu1  ;;  %v1251_v30 = vadd.f32 %v1250_v17, %v4245_v24  ;;  %v1636_v21 = vmul.f32 %v1572_v26, %v1380_v22 }
 0x329   :  { %v1637_v46 = vmul.f32 %v1573_v44, %v1381_v39  ;;  %v1452_v53 = vmul.f32 0.70710677, %v4271_v56  ;;  %v1253_v18 = vadd.f32 %v1252_v48, %v4247_v42  ;;  %v1383_v44 = vmul.f32 0.5, %v4258_v60 }
 0x32a   :  { %v1638_v40 = vmul.f32 %v1574_v49, %v1382_v52  ;;  %3134 = verf.f32 %v1451_v45  ;;  %v1453_v31 = vmul.f32 0.70710677, %v1251_v30  ;;  %v1384_v45 = vmul.f32 0.5, %v4261_v57 }
 0x32b   :  { %3136 = verf.f32 %v1452_v53  ;;  %v1697_v41 = vpack.c.bf16 %v1637_v46, %v1635_v23  ;;  %v1454_v28 = vmul.f32 0.70710677, %v1253_v18  ;;  %v1385_v48 = vmul.f32 0.5, %v1241_v20 }
 0x32c   :  { %v3127_v5 = vpop.eup %3126  ;;  %v1698_v2 = vpack.c.bf16 %v1638_v40, %v1636_v21  ;;  %3138 = verf.f32 %v1453_v31  ;;  %v1386_v21 = vmul.f32 0.5, %v1243_v34 }
 0x32d   :  { %v3129_v36 = vpop.eup %3128  ;;  %v1256_v11 = vpop.f32.mrb[48].mxu1  ;;  %v1575_v62 = vadd.f32 1.0, %v3127_v5  ;;  %3140 = verf.f32 %v1454_v28 }
 0x32e   :  { %v4278_v47 = vadd.f32 %v1256_v11, %v4245_v24  ;;  %v1258_v39 = vpop.f32.mrb[49].mxu1  ;;  %1902 = vmatprep.mubr.bf16.mxu0 %v1698_v2  ;;  %v3131_v26 = vpop.eup %3130  ;;  %v1576_v17 = vadd.f32 1.0, %v3129_v36 }
 0x32f   :  { %v4282_v22 = vadd.f32 %v1258_v39, %v4247_v42  ;;  %v1260_v52 = vpop.f32.mrb[50].mxu1  ;;  %1903 = vmatmul.mubr.bf16.gmra.mrb[36].mxu0 %v1697_v41  ;;  %v3133_v49 = vpop.eup %3132  ;;  %v1577_v23 = vadd.f32 1.0, %v3131_v26  ;;  %v1639_v5 = vmul.f32 %v1575_v62, %v1383_v44 }
 0x330   :  { %v1455_v46 = vmul.f32 0.70710677, %v4278_v47  ;;  %v1262_v53 = vpop.f32.mrb[51].mxu1  ;;  %v1578_v40 = vadd.f32 1.0, %v3133_v49  ;;  %v4288_v60 = vadd.f32 %v1260_v52, %v4245_v24  ;;  %v1640_v2 = vmul.f32 %v1576_v17, %v1384_v45 }
 0x331   :  { %v1456_v31 = vmul.f32 0.70710677, %v4282_v22  ;;  %v1641_v28 = vmul.f32 %v1577_v23, %v1385_v48  ;;  %v4291_v41 = vadd.f32 %v1262_v53, %v4247_v42  ;;  %v1387_v17 = vmul.f32 0.5, %v4268_v35 }
 0x332   :  { %3142 = verf.f32 %v1455_v46  ;;  %v1642_v57 = vmul.f32 %v1578_v40, %v1386_v21  ;;  %v1457_v20 = vmul.f32 0.70710677, %v4288_v60  ;;  %v1388_v21 = vmul.f32 0.5, %v4271_v56 }
 0x333   :  { %3144 = verf.f32 %v1456_v31  ;;  %v1458_v34 = vmul.f32 0.70710677, %v4291_v41  ;;  %v1699_v11 = vpack.c.bf16 %v1641_v28, %v1639_v5  ;;  %v1389_v40 = vmul.f32 0.5, %v1251_v30 }
 0x334   :  { %v3135_v36 = vpop.eup %3134  ;;  %3146 = verf.f32 %v1457_v20  ;;  %v1700_v52 = vpack.c.bf16 %v1642_v57, %v1640_v2  ;;  %v1390_v2 = vmul.f32 0.5, %v1253_v18 }
 0x335   :  { %v3137_v39 = vpop.eup %3136  ;;  %v1266_v26 = vpop.f32.mrb[52].mxu1  ;;  %v1579_v49 = vadd.f32 1.0, %v3135_v36  ;;  %3148 = verf.f32 %v1458_v34 }
 0x336   :  { %v4296_v62 = vadd.f32 %v1266_v26, %v4245_v24  ;;  %v1268_v44 = vpop.f32.mrb[53].mxu1  ;;  %v3139_v48 = vpop.eup %3138  ;;  %v1580_v45 = vadd.f32 1.0, %v3137_v39  ;;  %1910 = vmatprep.mubr.bf16.mxu0 %v1700_v52 }
 0x337   :  { %v4300_v23 = vadd.f32 %v1268_v44, %v4247_v42  ;;  %v1270_v46 = vpop.f32.mrb[54].mxu1  ;;  %v3141_v53 = vpop.eup %3140  ;;  %v1581_v31 = vadd.f32 1.0, %v3139_v48  ;;  %1911 = vmatmul.mubr.bf16.gmra.mrb[40].mxu0 %v1699_v11  ;;  %v1643_v36 = vmul.f32 %v1579_v49, %v1387_v17 }
 0x338   :  { %v1459_v5 = vmul.f32 0.70710677, %v4296_v62  ;;  %v1272_v28 = vpop.f32.mrb[55].mxu1  ;;  %v1582_v57 = vadd.f32 1.0, %v3141_v53  ;;  %v4306_v35 = vadd.f32 %v1270_v46, %v4245_v24  ;;  %v1644_v56 = vmul.f32 %v1580_v45, %v1388_v21 }
 0x339   :  { %v1460_v20 = vmul.f32 0.70710677, %v4300_v23  ;;  %v1645_v34 = vmul.f32 %v1581_v31, %v1389_v40  ;;  %v4309_v39 = vadd.f32 %v1272_v28, %v4247_v42  ;;  %v1391_v45 = vmul.f32 0.5, %v4278_v47 }
 0x33a   :  { %3150 = verf.f32 %v1459_v5  ;;  %v1646_v30 = vmul.f32 %v1582_v57, %v1390_v2  ;;  %v1461_v26 = vmul.f32 0.70710677, %v4306_v35  ;;  %v1392_v2 = vmul.f32 0.5, %v4282_v22 }
 0x33b   :  { %3152 = verf.f32 %v1460_v20  ;;  %v1462_v18 = vmul.f32 0.70710677, %v4309_v39  ;;  %v1701_v52 = vpack.c.bf16 %v1645_v34, %v1643_v36  ;;  %v1393_v57 = vmul.f32 0.5, %v4288_v60 }
 0x33c   :  { %v3143_v11 = vpop.eup %3142  ;;  %3154 = verf.f32 %v1461_v26  ;;  %v1702_v46 = vpack.c.bf16 %v1646_v30, %v1644_v56  ;;  %v1394_v56 = vmul.f32 0.5, %v4291_v41 }
 0x33d   :  { %v3145_v44 = vpop.eup %3144  ;;  %v1276_v48 = vpop.f32.mrb[56].mxu1  ;;  %v1583_v53 = vadd.f32 1.0, %v3143_v11  ;;  %3156 = verf.f32 %v1462_v18 }
 0x33e   :  { %v4314_v49 = vadd.f32 %v1276_v48, %v4245_v24  ;;  %v1278_v17 = vpop.f32.mrb[57].mxu1  ;;  %v3147_v40 = vpop.eup %3146  ;;  %v1584_v21 = vadd.f32 1.0, %v3145_v44  ;;  %1918 = vmatprep.mubr.bf16.mxu0 %v1702_v46 }
 0x33f   :  { %v4318_v31 = vadd.f32 %v1278_v17, %v4247_v42  ;;  %v1280_v5 = vpop.f32.mrb[58].mxu1  ;;  %v3149_v28 = vpop.eup %3148  ;;  %v1585_v20 = vadd.f32 1.0, %v3147_v40  ;;  %1919 = vmatmul.mubr.bf16.gmra.mrb[44].mxu0 %v1701_v52  ;;  %v1647_v11 = vmul.f32 %v1583_v53, %v1391_v45 }
 0x340   :  { %v1463_v36 = vmul.f32 0.70710677, %v4314_v49  ;;  %v1282_v34 = vpop.f32.mrb[59].mxu1  ;;  %v1586_v30 = vadd.f32 1.0, %v3149_v28  ;;  %v4326_v26 = vadd.f32 %v1280_v5, %v4245_v24  ;;  %v1648_v60 = vmul.f32 %v1584_v21, %v1392_v2 }
 0x341   :  { %v1464_v47 = vmul.f32 0.70710677, %v4318_v31  ;;  %v1649_v18 = vmul.f32 %v1585_v20, %v1393_v57  ;;  %v4329_v22 = vadd.f32 %v1282_v34, %v4247_v42  ;;  %v1395_v21 = vmul.f32 0.5, %v4296_v62 }
 0x342   :  { %3158 = verf.f32 %v1463_v36  ;;  %v1650_v44 = vmul.f32 %v1586_v30, %v1394_v56  ;;  %v1465_v52 = vmul.f32 0.70710677, %v4326_v26  ;;  %v1396_v56 = vmul.f32 0.5, %v4300_v23 }
 0x343   :  { %3160 = verf.f32 %v1464_v47  ;;  %v1466_v41 = vmul.f32 0.70710677, %v4329_v22  ;;  %v1703_v46 = vpack.c.bf16 %v1649_v18, %v1647_v11  ;;  %v1397_v30 = vmul.f32 0.5, %v4306_v35 }
 0x344   :  { %v3151_v48 = vpop.eup %3150  ;;  %3162 = verf.f32 %v1465_v52  ;;  %v1704_v5 = vpack.c.bf16 %v1650_v44, %v1648_v60  ;;  %v1398_v60 = vmul.f32 0.5, %v4309_v39 }
 0x345   :  { %v3153_v17 = vpop.eup %3152  ;;  %v1286_v40 = vpop.f32.mrb[60].mxu1  ;;  %v1587_v28 = vadd.f32 1.0, %v3151_v48  ;;  %3164 = verf.f32 %v1466_v41 }
 0x346   :  { %v4334_v53 = vadd.f32 %v1286_v40, %v4245_v24  ;;  %v1288_v45 = vpop.f32.mrb[61].mxu1  ;;  %v3155_v57 = vpop.eup %3154  ;;  %v1588_v2 = vadd.f32 1.0, %v3153_v17  ;;  %1926 = vmatprep.mubr.bf16.mxu0 %v1704_v5 }
 0x347   :  { %v4338_v20 = vadd.f32 %v1288_v45, %v4247_v42  ;;  %v1290_v36 = vpop.f32.mrb[62].mxu1  ;;  %v3157_v34 = vpop.eup %3156  ;;  %v1589_v47 = vadd.f32 1.0, %v3155_v57  ;;  %1927 = vmatmul.mubr.bf16.gmra.mrb[48].mxu0 %v1703_v46  ;;  %v1651_v48 = vmul.f32 %v1587_v28, %v1395_v21 }
 0x348   :  { %v1467_v11 = vmul.f32 0.70710677, %v4334_v53  ;;  %v1292_v18 = vpop.f32.mrb[63].mxu1  ;;  %v1590_v44 = vadd.f32 1.0, %v3157_v34  ;;  %v4346_v52 = vadd.f32 %v1290_v36, %v4245_v24  ;;  %v1652_v35 = vmul.f32 %v1588_v2, %v1396_v56 }
 0x349   :  { %v1468_v62 = vmul.f32 0.70710677, %v4338_v20  ;;  %v1653_v41 = vmul.f32 %v1589_v47, %v1397_v30  ;;  %v4349_v23 = vadd.f32 %v1292_v18, %v4247_v42  ;;  %v1399_v2 = vmul.f32 0.5, %v4314_v49 }
 0x34a   :  { %3166 = verf.f32 %v1467_v11  ;;  %v1654_v17 = vmul.f32 %v1590_v44, %v1398_v60  ;;  %v1469_v46 = vmul.f32 0.70710677, %v4346_v52  ;;  %v1400_v60 = vmul.f32 0.5, %v4318_v31 }
 0x34b   :  { %3168 = verf.f32 %v1468_v62  ;;  %v1470_v39 = vmul.f32 0.70710677, %v4349_v23  ;;  %v1705_v5 = vpack.c.bf16 %v1653_v41, %v1651_v48  ;;  %v1401_v44 = vmul.f32 0.5, %v4326_v26 }
 0x34c   :  { %v3159_v40 = vpop.eup %3158  ;;  %3170 = verf.f32 %v1469_v46  ;;  %v1706_v36 = vpack.c.bf16 %v1654_v17, %v1652_v35  ;;  %v1402_v35 = vmul.f32 0.5, %v4329_v22 }
 0x34d   :  { %v3161_v45 = vpop.eup %3160  ;;  %v1296_v57 = vpop.f32.mrb[64].mxu1  ;;  %v1591_v34 = vadd.f32 1.0, %v3159_v40  ;;  %3172 = verf.f32 %v1470_v39 }
 0x34e   :  { %v4354_v28 = vadd.f32 %v1296_v57, %v4245_v24  ;;  %v1298_v21 = vpop.f32.mrb[65].mxu1  ;;  %v3163_v30 = vpop.eup %3162  ;;  %v1592_v56 = vadd.f32 1.0, %v3161_v45  ;;  %1934 = vmatprep.mubr.bf16.mxu0 %v1706_v36 }
 0x34f   :  { %v4358_v47 = vadd.f32 %v1298_v21, %v4247_v42  ;;  %v1300_v11 = vpop.f32.mrb[66].mxu1  ;;  %v3165_v18 = vpop.eup %3164  ;;  %v1593_v62 = vadd.f32 1.0, %v3163_v30  ;;  %1935 = vmatmul.mubr.bf16.gmra.mrb[52].mxu0 %v1705_v5  ;;  %v1655_v40 = vmul.f32 %v1591_v34, %v1399_v2 }
 0x350   :  { %v1471_v48 = vmul.f32 0.70710677, %v4354_v28  ;;  %v1302_v41 = vpop.f32.mrb[67].mxu1  ;;  %v1594_v17 = vadd.f32 1.0, %v3165_v18  ;;  %v1301_v46 = vadd.f32 %v1300_v11, %v4245_v24  ;;  %v1656_v31 = vmul.f32 %v1592_v56, %v1400_v60 }
 0x351   :  { %v1472_v49 = vmul.f32 0.70710677, %v4358_v47  ;;  %v1657_v39 = vmul.f32 %v1593_v62, %v1401_v44  ;;  %v1303_v45 = vadd.f32 %v1302_v41, %v4247_v42  ;;  %v1403_v44 = vmul.f32 0.5, %v4334_v53 }
 0x352   :  { %3174 = verf.f32 %v1471_v48  ;;  %v1658_v57 = vmul.f32 %v1594_v17, %v1402_v35  ;;  %v1473_v26 = vmul.f32 0.70710677, %v1301_v46  ;;  %v1404_v41 = vmul.f32 0.5, %v4338_v20 }
 0x353   :  { %3176 = verf.f32 %v1472_v49  ;;  %v1474_v21 = vmul.f32 0.70710677, %v1303_v45  ;;  %v1707_v5 = vpack.c.bf16 %v1657_v39, %v1655_v40  ;;  %v1405_v35 = vmul.f32 0.5, %v4346_v52 }
 0x354   :  { %v3167_v36 = vpop.eup %3166  ;;  %3178 = verf.f32 %v1473_v26  ;;  %v1708_v18 = vpack.c.bf16 %v1658_v57, %v1656_v31  ;;  %v1406_v39 = vmul.f32 0.5, %v4349_v23 }
 0x355   :  { %v3169_v30 = vpop.eup %3168  ;;  %v1306_v22 = vpop.f32.mrb[68].mxu1  ;;  %v1595_v12 = vadd.f32 1.0, %v3167_v36  ;;  %3180 = verf.f32 %v1474_v21 }
 0x356   :  { %v1307_v11 = vadd.f32 %v1306_v22, %v4245_v24  ;;  %v1308_v34 = vpop.f32.mrb[69].mxu1  ;;  %v3171_v2 = vpop.eup %3170  ;;  %v1596_v62 = vadd.f32 1.0, %v3169_v30  ;;  %1942 = vmatprep.mubr.bf16.mxu0 %v1708_v18 }
 0x357   :  { %v1309_v56 = vadd.f32 %v1308_v34, %v4247_v42  ;;  %v1310_v60 = vpop.f32.mrb[70].mxu1  ;;  %v3173_v48 = vpop.eup %3172  ;;  %v1597_v17 = vadd.f32 1.0, %v3171_v2  ;;  %1943 = vmatmul.mubr.bf16.gmra.mrb[56].mxu0 %v1707_v5  ;;  %v1659_v26 = vmul.f32 %v1595_v12, %v1403_v44  ;;  %v1407_v44 = vmul.f32 0.5, %v4354_v28 }
 0x358   :  { %v1475_v49 = vmul.f32 0.70710677, %v1307_v11  ;;  %v1312_v40 = vpop.f32.mrb[71].mxu1  ;;  %v1598_v31 = vadd.f32 1.0, %v3173_v48  ;;  %v1311_v53 = vadd.f32 %v1310_v60, %v4245_v24  ;;  %v1660_v30 = vmul.f32 %v1596_v62, %v1404_v41 }
 0x359   :  { %v1476_v57 = vmul.f32 0.70710677, %v1309_v56  ;;  %v1661_v36 = vmul.f32 %v1597_v17, %v1405_v35  ;;  %v1313_v21 = vadd.f32 %v1312_v40, %v4247_v42  ;;  %v1409_v60 = vmul.f32 0.5, %v1301_v46 }
 0x35a   :  { %3182 = verf.f32 %v1475_v49  ;;  %v1662_v22 = vmul.f32 %v1598_v31, %v1406_v39  ;;  %v1477_v20 = vmul.f32 0.70710677, %v1311_v53  ;;  %v1408_v62 = vmul.f32 0.5, %v4358_v47 }
 0x35b   :  { %3184 = verf.f32 %v1476_v57  ;;  %v1478_v18 = vmul.f32 0.70710677, %v1313_v21  ;;  %v1709_v34 = vpack.c.bf16 %v1661_v36, %v1659_v26  ;;  %v1410_v41 = vmul.f32 0.5, %v1303_v45 }
 0x35c   :  { %v3175_v52 = vpop.eup %3174  ;;  %3186 = verf.f32 %v1477_v20  ;;  %v1710_v2 = vpack.c.bf16 %v1662_v22, %v1660_v30  ;;  %v1411_v46 = vmul.f32 0.5, %v1307_v11  ;;  %v1412_v47 = vmul.f32 0.5, %v1309_v56 }
 0x35d   :  { %v3177_v5 = vpop.eup %3176  ;;  %v1599_v23 = vadd.f32 1.0, %v3175_v52  ;;  %3188 = verf.f32 %v1478_v18  ;;  %v1413_v18 = vmul.f32 0.5, %v1311_v53  ;;  %v1414_v45 = vmul.f32 0.5, %v1313_v21 }
 0x35e   :  { %v3179_v48 = vpop.eup %3178  ;;  %v1600_v10 = vadd.f32 1.0, %v3177_v5  ;;  %1950 = vmatprep.mubr.bf16.mxu0 %v1710_v2 }
 0x35f   :  { %v3181_v12 = vpop.eup %3180  ;;  %v1601_v35 = vadd.f32 1.0, %v3179_v48  ;;  %1951 = vmatmul.mubr.bf16.gmra.mrb[60].mxu0 %v1709_v34  ;;  %v1663_v49 = vmul.f32 %v1599_v23, %v1407_v44 }
 0x360   :  { %v1602_v17 = vadd.f32 1.0, %v3181_v12  ;;  %v1664_v39 = vmul.f32 %v1600_v10, %v1408_v62 }
 0x361   :  { %v1665_v40 = vmul.f32 %v1601_v35, %v1409_v60 }
 0x362   :  { %v1666_v31 = vmul.f32 %v1602_v17, %v1410_v41 }
 0x363   :  { %v1711_v26 = vpack.c.bf16 %v1665_v40, %v1663_v49 }
 0x364   :  { %v3183_v57 = vpop.eup %3182  ;;  %v1712_v30 = vpack.c.bf16 %v1666_v31, %v1664_v39 }
 0x365   :  { %v3185_v36 = vpop.eup %3184  ;;  %v1603_v22 = vadd.f32 1.0, %v3183_v57 }
 0x366   :  { %v3187_v20 = vpop.eup %3186  ;;  %v1604_v52 = vadd.f32 1.0, %v3185_v36  ;;  %1958 = vmatprep.mubr.bf16.mxu0 %v1712_v30 }
 0x367   :  { %v3189_v28 = vpop.eup %3188  ;;  %v1605_v34 = vadd.f32 1.0, %v3187_v20  ;;  %1959 = vmatmul.mubr.bf16.gmra.mrb[64].mxu0 %v1711_v26  ;;  %v1667_v2 = vmul.f32 %v1603_v22, %v1411_v46 }
 0x368   :  { %v1606_v5 = vadd.f32 1.0, %v3189_v28  ;;  %v1668_v10 = vmul.f32 %v1604_v52, %v1412_v47 }
 0x369   :  { %v1669_v23 = vmul.f32 %v1605_v34, %v1413_v18 }
 0x36a   :  { %v1670_v48 = vmul.f32 %v1606_v5, %v1414_v45 }
 0x36b   :  { %v1713_v12 = vpack.c.bf16 %v1669_v23, %v1667_v2 }
 0x36c   :  { %v1714_v44 = vpack.c.bf16 %v1670_v48, %v1668_v10 }
 0x36e   :  { %1966 = vmatprep.mubr.bf16.mxu0 %v1714_v44 }
 0x36f   :  { %1967 = vmatmul.mubr.bf16.gmra.mrb[68].mxu0 %v1713_v12 }
 0x3a5   :  { %v1316_v60 = vpop.f32.mrb[72].mxu1 }
 0x3a6   :  { %v1317_v35 = vadd.f32 %v1316_v60, %v4245_v24  ;;  %v1318_v62 = vpop.f32.mrb[73].mxu1 }
 0x3a7   :  { %v1319_v11 = vadd.f32 %v1318_v62, %v4247_v42  ;;  %v1320_v53 = vpop.f32.mrb[74].mxu1 }
 0x3a8   :  { %v1479_v41 = vmul.f32 0.70710677, %v1317_v35  ;;  %v1321_v56 = vadd.f32 %v1320_v53, %v4245_v24  ;;  %v1322_v21 = vpop.f32.mrb[75].mxu1  ;;  %v1415_v60 = vmul.f32 0.5, %v1317_v35 }
 0x3a9   :  { %v1480_v17 = vmul.f32 0.70710677, %v1319_v11  ;;  %v1323_v49 = vadd.f32 %v1322_v21, %v4247_v42 }
 0x3aa   :  { %3190 = verf.f32 %v1479_v41  ;;  %v1481_v40 = vmul.f32 0.70710677, %v1321_v56  ;;  %v1417_v62 = vmul.f32 0.5, %v1321_v56 }
 0x3ab   :  { %3192 = verf.f32 %v1480_v17  ;;  %v1482_v39 = vmul.f32 0.70710677, %v1323_v49  ;;  %v1416_v17 = vmul.f32 0.5, %v1319_v11 }
 0x3ac   :  { %3194 = verf.f32 %v1481_v40  ;;  %v1418_v40 = vmul.f32 0.5, %v1323_v49 }
 0x3ad   :  { %3196 = verf.f32 %v1482_v39  ;;  %v1326_v31 = vpop.f32.mrb[76].mxu1 }
 0x3ae   :  { %v1327_v57 = vadd.f32 %v1326_v31, %v4245_v24  ;;  %v1328_v26 = vpop.f32.mrb[77].mxu1 }
 0x3af   :  { %v1329_v36 = vadd.f32 %v1328_v26, %v4247_v42  ;;  %v1330_v30 = vpop.f32.mrb[78].mxu1 }
 0x3b0   :  { %v1483_v22 = vmul.f32 0.70710677, %v1327_v57  ;;  %v1331_v20 = vadd.f32 %v1330_v30, %v4245_v24  ;;  %v1332_v52 = vpop.f32.mrb[79].mxu1 }
 0x3b1   :  { %v1484_v28 = vmul.f32 0.70710677, %v1329_v36  ;;  %v1333_v46 = vadd.f32 %v1332_v52, %v4247_v42 }
 0x3b2   :  { %3198 = verf.f32 %v1483_v22  ;;  %v1485_v18 = vmul.f32 0.70710677, %v1331_v20 }
 0x3b3   :  { %3200 = verf.f32 %v1484_v28  ;;  %v1486_v34 = vmul.f32 0.70710677, %v1333_v46 }
 0x3b4   :  { %v3191_v47 = vpop.eup %3190  ;;  %3202 = verf.f32 %v1485_v18 }
 0x3b5   :  { %v3193_v45 = vpop.eup %3192  ;;  %v1607_v5 = vadd.f32 1.0, %v3191_v47  ;;  %3204 = verf.f32 %v1486_v34  ;;  %v1336_v2 = vpop.f32.mrb[80].mxu1 }
 0x3b6   :  { %v3195_v23 = vpop.eup %3194  ;;  %v1608_v10 = vadd.f32 1.0, %v3193_v45  ;;  %v4386_v48 = vadd.f32 %v1336_v2, %v4245_v24  ;;  %v1338_v12 = vpop.f32.mrb[81].mxu1 }
 0x3b7   :  { %v3197_v44 = vpop.eup %3196  ;;  %v1609_v53 = vadd.f32 1.0, %v3195_v23  ;;  %v4389_v41 = vadd.f32 %v1338_v12, %v4247_v42  ;;  %v1340_v21 = vpop.f32.mrb[82].mxu1  ;;  %v1671_v30 = vmul.f32 %v1607_v5, %v1415_v60 }
 0x3b8   :  { %v1610_v39 = vadd.f32 1.0, %v3197_v44  ;;  %v1487_v31 = vmul.f32 0.70710677, %v4386_v48  ;;  %v1342_v26 = vpop.f32.mrb[83].mxu1  ;;  %v1341_v28 = vadd.f32 %v1340_v21, %v4245_v24  ;;  %v1672_v18 = vmul.f32 %v1608_v10, %v1416_v17 }
 0x3b9   :  { %v1673_v22 = vmul.f32 %v1609_v53, %v1417_v62  ;;  %v1488_v52 = vmul.f32 0.70710677, %v4389_v41  ;;  %v1343_v56 = vadd.f32 %v1342_v26, %v4247_v42  ;;  %v1419_v53 = vmul.f32 0.5, %v1327_v57 }
 0x3ba   :  { %v1674_v35 = vmul.f32 %v1610_v39, %v1418_v40  ;;  %3206 = verf.f32 %v1487_v31  ;;  %v1489_v34 = vmul.f32 0.70710677, %v1341_v28  ;;  %v1421_v21 = vmul.f32 0.5, %v1331_v20 }
 0x3bb   :  { %3208 = verf.f32 %v1488_v52  ;;  %v1715_v47 = vpack.c.bf16 %v1673_v22, %v1671_v30  ;;  %v1490_v49 = vmul.f32 0.70710677, %v1343_v56  ;;  %v1420_v31 = vmul.f32 0.5, %v1329_v36 }
 0x3bc   :  { %v3199_v11 = vpop.eup %3198  ;;  %v1716_v45 = vpack.c.bf16 %v1674_v35, %v1672_v18  ;;  %3210 = verf.f32 %v1489_v34  ;;  %v1422_v26 = vmul.f32 0.5, %v1333_v46 }
 0x3bd   :  { %v3201_v2 = vpop.eup %3200  ;;  %v1611_v23 = vadd.f32 1.0, %v3199_v11  ;;  %v1346_v5 = vpop.f32.mrb[84].mxu1  ;;  %3212 = verf.f32 %v1490_v49 }
 0x3be   :  { %v3203_v12 = vpop.eup %3202  ;;  %v1612_v44 = vadd.f32 1.0, %v3201_v2  ;;  %v4396_v60 = vadd.f32 %v1346_v5, %v4245_v24  ;;  %v1348_v10 = vpop.f32.mrb[85].mxu1  ;;  %1974 = vmatprep.mubr.bf16.mxu0 %v1716_v45 }
 0x3bf   :  { %v3205_v62 = vpop.eup %3204  ;;  %v1613_v17 = vadd.f32 1.0, %v3203_v12  ;;  %v4399_v40 = vadd.f32 %v1348_v10, %v4247_v42  ;;  %v1350_v39 = vpop.f32.mrb[86].mxu1  ;;  %1975 = vmatmul.mubr.bf16.gmra.mrb[72].mxu0 %v1715_v47  ;;  %v1675_v18 = vmul.f32 %v1611_v23, %v1419_v53  ;;  %v1423_v53 = vmul.f32 0.5, %v4386_v48 }
 0x3c0   :  { %v1614_v30 = vadd.f32 1.0, %v3205_v62  ;;  %v1491_v22 = vmul.f32 0.70710677, %v4396_v60  ;;  %v1352_v52 = vpop.f32.mrb[87].mxu1  ;;  %v1351_v11 = vadd.f32 %v1350_v39, %v4245_v24  ;;  %v1676_v57 = vmul.f32 %v1612_v44, %v1420_v31 }
 0x3c1   :  { %v1677_v35 = vmul.f32 %v1613_v17, %v1421_v21  ;;  %v1492_v34 = vmul.f32 0.70710677, %v4399_v40  ;;  %v1353_v49 = vadd.f32 %v1352_v52, %v4247_v42 }
 0x3c2   :  { %v1678_v20 = vmul.f32 %v1614_v30, %v1422_v26  ;;  %3214 = verf.f32 %v1491_v22  ;;  %v1493_v45 = vmul.f32 0.70710677, %v1351_v11  ;;  %v1424_v26 = vmul.f32 0.5, %v4389_v41 }
 0x3c3   :  { %3216 = verf.f32 %v1492_v34  ;;  %v1717_v47 = vpack.c.bf16 %v1677_v35, %v1675_v18  ;;  %v1494_v46 = vmul.f32 0.70710677, %v1353_v49  ;;  %v1425_v30 = vmul.f32 0.5, %v1341_v28 }
 0x3c4   :  { %v3207_v36 = vpop.eup %3206  ;;  %v1718_v2 = vpack.c.bf16 %v1678_v20, %v1676_v57  ;;  %3218 = verf.f32 %v1493_v45  ;;  %v1426_v35 = vmul.f32 0.5, %v1343_v56 }
 0x3c5   :  { %v3209_v5 = vpop.eup %3208  ;;  %v1356_v12 = vpop.f32.mrb[88].mxu1  ;;  %v1615_v23 = vadd.f32 1.0, %v3207_v36  ;;  %3220 = verf.f32 %v1494_v46 }
 0x3c6   :  { %v4406_v10 = vadd.f32 %v1356_v12, %v4245_v24  ;;  %v1358_v62 = vpop.f32.mrb[89].mxu1  ;;  %1982 = vmatprep.mubr.bf16.mxu0 %v1718_v2  ;;  %v3211_v44 = vpop.eup %3210  ;;  %v1616_v21 = vadd.f32 1.0, %v3209_v5 }
 0x3c7   :  { %v4410_v17 = vadd.f32 %v1358_v62, %v4247_v42  ;;  %v1360_v39 = vpop.f32.mrb[90].mxu1  ;;  %1983 = vmatmul.mubr.bf16.gmra.mrb[76].mxu0 %v1717_v47  ;;  %v3213_v31 = vpop.eup %3212  ;;  %v1617_v22 = vadd.f32 1.0, %v3211_v44  ;;  %v1679_v20 = vmul.f32 %v1615_v23, %v1423_v53 }
 0x3c8   :  { %v1495_v52 = vmul.f32 0.70710677, %v4406_v10  ;;  %v1362_v18 = vpop.f32.mrb[91].mxu1  ;;  %v1618_v34 = vadd.f32 1.0, %v3213_v31  ;;  %v1361_v48 = vadd.f32 %v1360_v39, %v4245_v24  ;;  %v1680_v47 = vmul.f32 %v1616_v21, %v1424_v26 }
 0x3c9   :  { %v1496_v57 = vmul.f32 0.70710677, %v4410_v17  ;;  %v1681_v45 = vmul.f32 %v1617_v22, %v1425_v30  ;;  %v1363_v36 = vadd.f32 %v1362_v18, %v4247_v42  ;;  %v1427_v31 = vmul.f32 0.5, %v4396_v60 }
 0x3ca   :  { %3222 = verf.f32 %v1495_v52  ;;  %v1682_v46 = vmul.f32 %v1618_v34, %v1426_v35  ;;  %v1497_v41 = vmul.f32 0.70710677, %v1361_v48  ;;  %v1428_v52 = vmul.f32 0.5, %v4399_v40 }
 0x3cb   :  { %3224 = verf.f32 %v1496_v57  ;;  %v1498_v2 = vmul.f32 0.70710677, %v1363_v36  ;;  %v1719_v5 = vpack.c.bf16 %v1681_v45, %v1679_v20  ;;  %v1429_v18 = vmul.f32 0.5, %v1351_v11 }
 0x3cc   :  { %v3215_v28 = vpop.eup %3214  ;;  %3226 = verf.f32 %v1497_v41  ;;  %v1720_v62 = vpack.c.bf16 %v1682_v46, %v1680_v47  ;;  %v1430_v20 = vmul.f32 0.5, %v1353_v49 }
 0x3cd   :  { %v3217_v12 = vpop.eup %3216  ;;  %v1366_v56 = vpop.f32.mrb[92].mxu1  ;;  %v1619_v44 = vadd.f32 1.0, %v3215_v28  ;;  %3228 = verf.f32 %v1498_v2 }
 0x3ce   :  { %v1367_v39 = vadd.f32 %v1366_v56, %v4245_v24  ;;  %v1368_v23 = vpop.f32.mrb[93].mxu1  ;;  %v3219_v53 = vpop.eup %3218  ;;  %v1620_v30 = vadd.f32 1.0, %v3217_v12  ;;  %1990 = vmatprep.mubr.bf16.mxu0 %v1720_v62 }
 0x3cf   :  { %v1369_v21 = vadd.f32 %v1368_v23, %v4247_v42  ;;  %v1370_v26 = vpop.f32.mrb[94].mxu1  ;;  %v3221_v22 = vpop.eup %3220  ;;  %v1621_v35 = vadd.f32 1.0, %v3219_v53  ;;  %1991 = vmatmul.mubr.bf16.gmra.mrb[80].mxu0 %v1719_v5  ;;  %v1683_v41 = vmul.f32 %v1619_v44, %v1427_v31  ;;  %v1431_v44 = vmul.f32 0.5, %v4406_v10 }
 0x3d0   :  { %v1499_v34 = vmul.f32 0.70710677, %v1367_v39  ;;  %v1372_v57 = vpop.f32.mrb[95].mxu1  ;;  %v1622_v45 = vadd.f32 1.0, %v3221_v22  ;;  %v1371_v46 = vadd.f32 %v1370_v26, %v4245_v24  ;;  %v1684_v2 = vmul.f32 %v1620_v30, %v1428_v52 }
 0x3d1   :  { %v1500_v47 = vmul.f32 0.70710677, %v1369_v21  ;;  %v1685_v60 = vmul.f32 %v1621_v35, %v1429_v18  ;;  %v1373_v28 = vadd.f32 %v1372_v57, %v4247_v42  ;;  %v1433_v31 = vmul.f32 0.5, %v1361_v48 }
 0x3d2   :  { %3230 = verf.f32 %v1499_v34  ;;  %v1686_v12 = vmul.f32 %v1622_v45, %v1430_v20  ;;  %v1501_v56 = vmul.f32 0.70710677, %v1371_v46  ;;  %v1432_v30 = vmul.f32 0.5, %v4410_v17 }
 0x3d3   :  { %3232 = verf.f32 %v1500_v47  ;;  %v1502_v11 = vmul.f32 0.70710677, %v1373_v28  ;;  %v1721_v62 = vpack.c.bf16 %v1685_v60, %v1683_v41  ;;  %v1434_v26 = vmul.f32 0.5, %v1363_v36 }
 0x3d4   :  { %v3223_v40 = vpop.eup %3222  ;;  %3234 = verf.f32 %v1501_v56  ;;  %v1722_v5 = vpack.c.bf16 %v1686_v12, %v1684_v2  ;;  %v1435_v48 = vmul.f32 0.5, %v1367_v39  ;;  %v1437_v56 = vmul.f32 0.5, %v1371_v46 }
 0x3d5   :  { %v3225_v23 = vpop.eup %3224  ;;  %v1623_v49 = vadd.f32 1.0, %v3223_v40  ;;  %3236 = verf.f32 %v1502_v11  ;;  %v1436_v17 = vmul.f32 0.5, %v1369_v21  ;;  %v1438_v36 = vmul.f32 0.5, %v1373_v28 }
 0x3d6   :  { %v3227_v53 = vpop.eup %3226  ;;  %v1624_v22 = vadd.f32 1.0, %v3225_v23  ;;  %1998 = vmatprep.mubr.bf16.mxu0 %v1722_v5 }
 0x3d7   :  { %v3229_v24 = vpop.eup %3228  ;;  %v1625_v42 = vadd.f32 1.0, %v3227_v53  ;;  %1999 = vmatmul.mubr.bf16.gmra.mrb[84].mxu0 %v1721_v62  ;;  %v1687_v18 = vmul.f32 %v1623_v49, %v1431_v44  ;;  %v4428_v44 = vld [vmem:[%s4877_s9] ss:$0 sm:$0xff] }
 0x3d8   :  { %v1626_v52 = vadd.f32 1.0, %v3229_v24  ;;  %v1688_v34 = vmul.f32 %v1624_v22, %v1432_v30 }
 0x3d9   :  { %v1689_v35 = vmul.f32 %v1625_v42, %v1433_v31 }
 0x3da   :  { %v1690_v57 = vmul.f32 %v1626_v52, %v1434_v26 }
 0x3db   :  { %v1723_v45 = vpack.c.bf16 %v1689_v35, %v1687_v18 }
 0x3dc   :  { %v3231_v20 = vpop.eup %3230  ;;  %v1724_v41 = vpack.c.bf16 %v1690_v57, %v1688_v34 }
 0x3dd   :  { %v3233_v47 = vpop.eup %3232  ;;  %v1627_v60 = vadd.f32 1.0, %v3231_v20 }
 0x3de   :  { %v3235_v2 = vpop.eup %3234  ;;  %v1628_v12 = vadd.f32 1.0, %v3233_v47  ;;  %2006 = vmatprep.mubr.bf16.mxu0 %v1724_v41 }
 0x3df   :  { %v3237_v10 = vpop.eup %3236  ;;  %v1629_v40 = vadd.f32 1.0, %v3235_v2  ;;  %2007 = vmatmul.mubr.bf16.gmra.mrb[88].mxu0 %v1723_v45  ;;  %v1691_v62 = vmul.f32 %v1627_v60, %v1435_v48 }
 0x3e0   :  { %v1630_v11 = vadd.f32 1.0, %v3237_v10  ;;  %v1692_v5 = vmul.f32 %v1628_v12, %v1436_v17 }
 0x3e1   :  { %v1693_v23 = vmul.f32 %v1629_v40, %v1437_v56 }
 0x3e2   :  { %v1694_v49 = vmul.f32 %v1630_v11, %v1438_v36 }
 0x3e3   :  { %v1725_v53 = vpack.c.bf16 %v1693_v23, %v1691_v62 }
 0x3e4   :  { %v1726_v22 = vpack.c.bf16 %v1694_v49, %v1692_v5 }
 0x3e6   :  { %2014 = vmatprep.mubr.bf16.mxu0 %v1726_v22 }
 0x3e7   :  { %2015 = vmatmul.mubr.bf16.gmra.mrb[92].mxu0 %v1725_v53 }
 0x3fa   :  { %v2826_v24 = vpop.f32.mrb[32].mxu0 }
 0x3fb   :  { %v2827_v39 = vpop.f32.mrb[33].mxu0 }
 0x3fc   :  { %v2828_v46 = vadd.f32 %v2827_v39, %v2826_v24  ;;  %v2829_v31 = vpop.f32.mrb[34].mxu0 }
 0x3fd   :  { %v2830_v21 = vpop.f32.mrb[35].mxu0 }
 0x3fe   :  { %v1897_v28 = vadd.f32 %v2828_v46, %v4428_v44  ;;  %v2831_v42 = vadd.f32 %v2830_v21, %v2829_v31 }
 0x400   :  { %v1900_v30 = vadd.f32 %v2831_v42, %v4428_v44  ;;  %v4433_v26 = vadd.f32 %v1897_v28, %v3955_v59 }
 0x402   :  { %v2832_v52 = vpop.f32.mrb[36].mxu0  ;;  %2057 = vadd.xlane.f32.xlu0 %v4433_v26  ;;  %v4437_v18 = vadd.f32 %v1900_v30, %v3958_v55 }
 0x403   :  { %v2833_v35 = vpop.f32.mrb[37].mxu0 }
 0x404   :  { %v2834_v34 = vadd.f32 %v2833_v35, %v2832_v52  ;;  %2059 = vadd.xlane.f32.xlu1 %v4437_v18  ;;  %v2835_v57 = vpop.f32.mrb[38].mxu0 }
 0x405   :  { %v2836_v20 = vpop.f32.mrb[39].mxu0 }
 0x406   :  { %v1905_v45 = vadd.f32 %v2834_v34, %v4428_v44  ;;  %v2837_v47 = vadd.f32 %v2836_v20, %v2835_v57 }
 0x408   :  { %v1908_v41 = vadd.f32 %v2837_v47, %v4428_v44  ;;  %v4443_v59 = vadd.f32 %v1905_v45, %v3978_v29 }
 0x40a   :  { %2061 = vadd.xlane.f32.xlu0 %v4443_v59  ;;  %v4447_v60 = vadd.f32 %v1908_v41, %v3981_v33  ;;  %v2838_v55 = vpop.f32.mrb[40].mxu0 }
 0x40b   :  { %v2839_v2 = vpop.f32.mrb[41].mxu0 }
 0x40c   :  { %2063 = vadd.xlane.f32.xlu1 %v4447_v60  ;;  %v2840_v12 = vadd.f32 %v2839_v2, %v2838_v55  ;;  %v2841_v10 = vpop.f32.mrb[42].mxu0 }
 0x40d   :  { %v2842_v48 = vpop.f32.mrb[43].mxu0 }
 0x40e   :  { %v1913_v56 = vadd.f32 %v2840_v12, %v4428_v44  ;;  %v2843_v40 = vadd.f32 %v2842_v48, %v2841_v10 }
 0x410   :  { %v1916_v17 = vadd.f32 %v2843_v40, %v4428_v44  ;;  %v4453_v29 = vadd.f32 %v1913_v56, %v4001_v16 }
 0x412   :  { %v2844_v36 = vpop.f32.mrb[44].mxu0  ;;  %2065 = vadd.xlane.f32.xlu0 %v4453_v29  ;;  %v4457_v33 = vadd.f32 %v1916_v17, %v4004_v9 }
 0x413   :  { %v2845_v11 = vpop.f32.mrb[45].mxu0 }
 0x414   :  { %v2846_v62 = vadd.f32 %v2845_v11, %v2844_v36  ;;  %2067 = vadd.xlane.f32.xlu1 %v4457_v33  ;;  %v2847_v23 = vpop.f32.mrb[46].mxu0 }
 0x415   :  { %v2848_v5 = vpop.f32.mrb[47].mxu0 }
 0x416   :  { %v1921_v49 = vadd.f32 %v2846_v62, %v4428_v44  ;;  %v2849_v53 = vadd.f32 %v2848_v5, %v2847_v23 }
 0x418   :  { %v1924_v22 = vadd.f32 %v2849_v53, %v4428_v44  ;;  %v4463_v16 = vadd.f32 %v1921_v49, %v4024_v63 }
 0x41a   :  { %v2850_v24 = vpop.f32.mrb[48].mxu0  ;;  %2069 = vadd.xlane.f32.xlu0 %v4463_v16  ;;  %v4467_v9 = vadd.f32 %v1924_v22, %v4027_v27 }
 0x41b   :  { %v2851_v39 = vpop.f32.mrb[49].mxu0 }
 0x41c   :  { %v2852_v46 = vadd.f32 %v2851_v39, %v2850_v24  ;;  %2071 = vadd.xlane.f32.xlu1 %v4467_v9  ;;  %v2853_v31 = vpop.f32.mrb[50].mxu0 }
 0x41d   :  { %v2854_v21 = vpop.f32.mrb[51].mxu0 }
 0x41e   :  { %v1929_v28 = vadd.f32 %v2852_v46, %v4428_v44  ;;  %v2855_v42 = vadd.f32 %v2854_v21, %v2853_v31 }
 0x420   :  { %v1932_v30 = vadd.f32 %v2855_v42, %v4428_v44  ;;  %v4473_v63 = vadd.f32 %v1929_v28, %v4044_v32 }
 0x422   :  { %v2856_v52 = vpop.f32.mrb[52].mxu0  ;;  %2073 = vadd.xlane.f32.xlu0 %v4473_v63  ;;  %v4477_v27 = vadd.f32 %v1932_v30, %v4047_v8 }
 0x423   :  { %v2857_v35 = vpop.f32.mrb[53].mxu0 }
 0x424   :  { %v2858_v34 = vadd.f32 %v2857_v35, %v2856_v52  ;;  %2075 = vadd.xlane.f32.xlu1 %v4477_v27  ;;  %v2859_v57 = vpop.f32.mrb[54].mxu0 }
 0x425   :  { %v2860_v20 = vpop.f32.mrb[55].mxu0 }
 0x426   :  { %v1937_v45 = vadd.f32 %v2858_v34, %v4428_v44  ;;  %v2861_v47 = vadd.f32 %v2860_v20, %v2859_v57 }
 0x428   :  { %v1940_v41 = vadd.f32 %v2861_v47, %v4428_v44  ;;  %v4483_v32 = vadd.f32 %v1937_v45, %v4057_v37 }
 0x42a   :  { %2077 = vadd.xlane.f32.xlu0 %v4483_v32  ;;  %v2862_v55 = vpop.f32.mrb[56].mxu0  ;;  %v4487_v8 = vadd.f32 %v1940_v41, %v4060_v54 }
 0x42b   :  { %v2863_v2 = vpop.f32.mrb[57].mxu0 }
 0x42c   :  { %v2864_v12 = vadd.f32 %v2863_v2, %v2862_v55  ;;  %2079 = vadd.xlane.f32.xlu1 %v4487_v8  ;;  %v2865_v10 = vpop.f32.mrb[58].mxu0 }
 0x42d   :  { %v2866_v48 = vpop.f32.mrb[59].mxu0 }
 0x42e   :  { %v1945_v56 = vadd.f32 %v2864_v12, %v4428_v44  ;;  %v2867_v40 = vadd.f32 %v2866_v48, %v2865_v10 }
 0x430   :  { %v1948_v17 = vadd.f32 %v2867_v40, %v4428_v44  ;;  %v4493_v37 = vadd.f32 %v1945_v56, %v4070_v15 }
 0x432   :  { %2081 = vadd.xlane.f32.xlu0 %v4493_v37  ;;  %v2868_v36 = vpop.f32.mrb[60].mxu0  ;;  %v4497_v54 = vadd.f32 %v1948_v17, %v4073_v61 }
 0x433   :  { %v2869_v11 = vpop.f32.mrb[61].mxu0 }
 0x434   :  { %v2870_v62 = vadd.f32 %v2869_v11, %v2868_v36  ;;  %2083 = vadd.xlane.f32.xlu1 %v4497_v54  ;;  %v2871_v23 = vpop.f32.mrb[62].mxu0 }
 0x435   :  { %v2872_v5 = vpop.f32.mrb[63].mxu0 }
 0x436   :  { %v1953_v49 = vadd.f32 %v2870_v62, %v4428_v44  ;;  %v2873_v53 = vadd.f32 %v2872_v5, %v2871_v23 }
 0x438   :  { %v1956_v22 = vadd.f32 %v2873_v53, %v4428_v44  ;;  %v4503_v15 = vadd.f32 %v1953_v49, %v4087_v25 }
 0x43a   :  { %2085 = vadd.xlane.f32.xlu0 %v4503_v15  ;;  %v2874_v24 = vpop.f32.mrb[64].mxu0  ;;  %v4507_v61 = vadd.f32 %v1956_v22, %v4083_v4 }
 0x43b   :  { %v2875_v39 = vpop.f32.mrb[65].mxu0 }
 0x43c   :  { %v2876_v46 = vadd.f32 %v2875_v39, %v2874_v24  ;;  %2087 = vadd.xlane.f32.xlu1 %v4507_v61  ;;  %v2877_v31 = vpop.f32.mrb[66].mxu0 }
 0x43d   :  { %v2878_v21 = vpop.f32.mrb[67].mxu0 }
 0x43e   :  { %v1961_v28 = vadd.f32 %v2876_v46, %v4428_v44  ;;  %v2879_v42 = vadd.f32 %v2878_v21, %v2877_v31 }
 0x440   :  { %v1964_v30 = vadd.f32 %v2879_v42, %v4428_v44  ;;  %v4513_v25 = vadd.f32 %v1961_v28, %v4100_v3 }
 0x442   :  { %2089 = vadd.xlane.f32.xlu0 %v4513_v25  ;;  %v2880_v52 = vpop.f32.mrb[68].mxu0  ;;  %v4517_v4 = vadd.f32 %v1964_v30, %v4096_v14 }
 0x443   :  { %v2881_v35 = vpop.f32.mrb[69].mxu0 }
 0x444   :  { %v2882_v34 = vadd.f32 %v2881_v35, %v2880_v52  ;;  %2091 = vadd.xlane.f32.xlu1 %v4517_v4  ;;  %v2883_v57 = vpop.f32.mrb[70].mxu0 }
 0x445   :  { %v2884_v20 = vpop.f32.mrb[71].mxu0 }
 0x446   :  { %v1969_v45 = vadd.f32 %v2882_v34, %v4428_v44  ;;  %v2885_v47 = vadd.f32 %v2884_v20, %v2883_v57 }
 0x448   :  { %v1972_v41 = vadd.f32 %v2885_v47, %v4428_v44  ;;  %v4523_v3 = vadd.f32 %v1969_v45, %v4124_v58 }
 0x44a   :  { %2093 = vadd.xlane.f32.xlu0 %v4523_v3  ;;  %v4527_v55 = vadd.f32 %v1972_v41, %v4118_v38 }
 0x44c   :  { %2095 = vadd.xlane.f32.xlu1 %v4527_v55 }
 0x492   :  { %v2886_v14 = vpop.f32.mrb[72].mxu0 }
 0x493   :  { %v2887_v2 = vpop.f32.mrb[73].mxu0 }
 0x494   :  { %v2888_v12 = vadd.f32 %v2887_v2, %v2886_v14  ;;  %v2889_v10 = vpop.f32.mrb[74].mxu0 }
 0x495   :  { %v2890_v48 = vpop.f32.mrb[75].mxu0 }
 0x496   :  { %v1977_v56 = vadd.f32 %v2888_v12, %v4428_v44  ;;  %v2891_v40 = vadd.f32 %v2890_v48, %v2889_v10 }
 0x498   :  { %v1980_v17 = vadd.f32 %v2891_v40, %v4428_v44  ;;  %v4533_v58 = vadd.f32 %v1977_v56, %v4170_v13 }
 0x49a   :  { %2097 = vadd.xlane.f32.xlu0 %v4533_v58  ;;  %v2892_v36 = vpop.f32.mrb[76].mxu0  ;;  %v4537_v38 = vadd.f32 %v1980_v17, %v4173_v43 }
 0x49b   :  { %v2893_v11 = vpop.f32.mrb[77].mxu0 }
 0x49c   :  { %v2894_v62 = vadd.f32 %v2893_v11, %v2892_v36  ;;  %2099 = vadd.xlane.f32.xlu1 %v4537_v38  ;;  %v2895_v23 = vpop.f32.mrb[78].mxu0  ;;  %v2058_v36 = vpop.xlane.xlu0 %2057 }
 0x49d   :  { %v2896_v5 = vpop.f32.mrb[79].mxu0 }
 0x49e   :  { %v1985_v49 = vadd.f32 %v2894_v62, %v4428_v44  ;;  %v2897_v53 = vadd.f32 %v2896_v5, %v2895_v23  ;;  %v2060_v23 = vpop.xlane.xlu1 %2059 }
 0x4a0   :  { %v1988_v22 = vadd.f32 %v2897_v53, %v4428_v44  ;;  %v4543_v13 = vadd.f32 %v1985_v49, %v4183_v6  ;;  %v2121_v49 = vmul.f32 0.0078125, %v2058_v36 }
 0x4a2   :  { %2101 = vadd.xlane.f32.xlu0 %v4543_v13  ;;  %v4547_v24 = vadd.f32 %v1988_v22, %v4186_v19  ;;  %v2898_v43 = vpop.f32.mrb[80].mxu0 }
 0x4a3   :  { %v2899_v39 = vpop.f32.mrb[81].mxu0 }
 0x4a4   :  { %2103 = vadd.xlane.f32.xlu1 %v4547_v24  ;;  %v2900_v46 = vadd.f32 %v2899_v39, %v2898_v43  ;;  %v2901_v31 = vpop.f32.mrb[82].mxu0  ;;  %v2062_v43 = vpop.xlane.xlu0 %2061 }
 0x4a5   :  { %v2902_v21 = vpop.f32.mrb[83].mxu0 }
 0x4a6   :  { %v1993_v28 = vadd.f32 %v2900_v46, %v4428_v44  ;;  %v2903_v42 = vadd.f32 %v2902_v21, %v2901_v31  ;;  %v2122_v46 = vmul.f32 0.0078125, %v2060_v23  ;;  %v2064_v21 = vpop.xlane.xlu1 %2063 }
 0x4a8   :  { %v1996_v30 = vadd.f32 %v2903_v42, %v4428_v44  ;;  %v4553_v6 = vadd.f32 %v1993_v28, %v4196_v51  ;;  %v4582_v28 = vsub.f32 %v4433_v26, %v2121_v49  ;;  %v2123_v42 = vmul.f32 0.0078125, %v2062_v43 }
 0x4aa   :  { %2105 = vadd.xlane.f32.xlu0 %v4553_v6  ;;  %v2904_v52 = vpop.f32.mrb[84].mxu0  ;;  %v4557_v19 = vadd.f32 %v1996_v30, %v4199_v50  ;;  %v4596_v26 = vsub.f32 %v4443_v59, %v2123_v42 }
 0x4ab   :  { %v2905_v35 = vpop.f32.mrb[85].mxu0 }
 0x4ac   :  { %v2906_v34 = vadd.f32 %v2905_v35, %v2904_v52  ;;  %2107 = vadd.xlane.f32.xlu1 %v4557_v19  ;;  %v2907_v57 = vpop.f32.mrb[86].mxu0  ;;  %v4888_v52 = vld [vmem:[#allocation6_spill] sm:$0xff] }
 0x4ad   :  { %v2908_v20 = vpop.f32.mrb[87].mxu0 }
 0x4ae   :  { %v2001_v45 = vadd.f32 %v2906_v34, %v4428_v44  ;;  %v2909_v47 = vadd.f32 %v2908_v20, %v2907_v57  ;;  %v2066_v34 = vpop.xlane.xlu0 %2065  ;;  %v4589_v57 = vsub.f32 %v4437_v18, %v2122_v46  ;;  %v2124_v20 = vmul.f32 0.0078125, %v2064_v21 }
 0x4b0   :  { %v2004_v41 = vadd.f32 %v2909_v47, %v4428_v44  ;;  %v4563_v51 = vadd.f32 %v2001_v45, %v4209_v0  ;;  %v4889_v45 = vld [vmem:[#allocation7_spill] sm:$0xff]  ;;  %v4602_v18 = vsub.f32 %v4447_v60, %v2124_v20 }
 0x4b2   :  { %2109 = vadd.xlane.f32.xlu0 %v4563_v51  ;;  %v2910_v14 = vpop.f32.mrb[88].mxu0  ;;  %v4567_v50 = vadd.f32 %v2004_v41, %v4212_v7  ;;  %v4887_v7 = vld [vmem:[#allocation5_spill] sm:$0xff]  ;;  %v2068_v41 = vpop.xlane.xlu1 %2067 }
 0x4b3   :  { %v2911_v2 = vpop.f32.mrb[89].mxu0 }
 0x4b4   :  { %v2912_v12 = vadd.f32 %v2911_v2, %v2910_v14  ;;  %2111 = vadd.xlane.f32.xlu1 %v4567_v50  ;;  %v2913_v10 = vpop.f32.mrb[90].mxu0  ;;  %v2125_v14 = vmul.f32 0.0078125, %v2066_v34  ;;  %v2070_v2 = vpop.xlane.xlu0 %2069 }
 0x4b5   :  { %v2914_v48 = vpop.f32.mrb[91].mxu0  ;;  %v2127_v59 = vmul.f32 0.0078125, %v2070_v2 }
 0x4b6   :  { %v2009_v56 = vadd.f32 %v2912_v12, %v4428_v44  ;;  %v2915_v40 = vadd.f32 %v2914_v48, %v2913_v10  ;;  %v2126_v12 = vmul.f32 0.0078125, %v2068_v41  ;;  %v2186_v10 = vmul.f32 %v4589_v57, %v4589_v57  ;;  %v2072_v48 = vpop.xlane.xlu1 %2071 }
 0x4b7   :  { %v2128_v60 = vmul.f32 0.0078125, %v2072_v48  ;;  %v4617_v23 = vsub.f32 %v4463_v16, %v2127_v59 }
 0x4b8   :  { %v2012_v17 = vadd.f32 %v2915_v40, %v4428_v44  ;;  %v4573_v0 = vadd.f32 %v2009_v56, %v4222_v1  ;;  %v4607_v56 = vsub.f32 %v4453_v29, %v2125_v14  ;;  %v2187_v40 = vmul.f32 %v4596_v26, %v4596_v26 }
 0x4b9   :  { %v4612_v36 = vsub.f32 %v4457_v33, %v2126_v12  ;;  %v2191_v46 = vmul.f32 %v4617_v23, %v4617_v23 }
 0x4ba   :  { %2113 = vadd.xlane.f32.xlu0 %v4573_v0  ;;  %v2916_v11 = vpop.f32.mrb[92].mxu0  ;;  %v4577_v62 = vadd.f32 %v2012_v17, %v4887_v7  ;;  %v2074_v17 = vpop.xlane.xlu0 %2073 }
 0x4bb   :  { %v2917_v5 = vpop.f32.mrb[93].mxu0  ;;  %v2076_v7 = vpop.xlane.xlu1 %2075  ;;  %v2129_v29 = vmul.f32 0.0078125, %v2074_v17 }
 0x4bc   :  { %v2918_v53 = vadd.f32 %v2917_v5, %v2916_v11  ;;  %2115 = vadd.xlane.f32.xlu1 %v4577_v62  ;;  %v2919_v22 = vpop.f32.mrb[94].mxu0  ;;  %v2188_v11 = vmul.f32 %v4602_v18, %v4602_v18  ;;  %v2189_v5 = vmul.f32 %v4607_v56, %v4607_v56  ;;  %v2130_v33 = vmul.f32 0.0078125, %v2076_v7 }
 0x4bd   :  { %v2920_v39 = vpop.f32.mrb[95].mxu0 }
 0x4be   :  { %v2017_v1 = vadd.f32 %v2918_v53, %v4428_v44  ;;  %v2921_v31 = vadd.f32 %v2920_v39, %v2919_v22  ;;  %v2078_v49 = vpop.xlane.xlu0 %2077  ;;  %v4622_v53 = vsub.f32 %v4467_v9, %v2128_v60  ;;  %v2190_v22 = vmul.f32 %v4612_v36, %v4612_v36 }
 0x4bf   :  { %v2080_v43 = vpop.xlane.xlu1 %2079  ;;  %v4627_v39 = vsub.f32 %v4473_v63, %v2129_v29  ;;  %v2131_v16 = vmul.f32 0.0078125, %v2078_v49 }
 0x4c0   :  { %v2020_v30 = vadd.f32 %v2921_v31, %v4428_v44  ;;  %v4586_v35 = vadd.f32 %v2017_v1, %v4888_v52  ;;  %v2185_v44 = vmul.f32 %v4582_v28, %v4582_v28  ;;  %v4632_v31 = vsub.f32 %v4477_v27, %v2130_v33 }
 0x4c1   :  { %v2132_v9 = vmul.f32 0.0078125, %v2080_v43  ;;  %v2192_v21 = vmul.f32 %v4622_v53, %v4622_v53  ;;  %v2193_v52 = vmul.f32 %v4627_v39, %v4627_v39 }
 0x4c2   :  { %2117 = vadd.xlane.f32.xlu0 %v4586_v35  ;;  %v4593_v47 = vadd.f32 %v2020_v30, %v4889_v45  ;;  %v2082_v1 = vpop.xlane.xlu0 %2081  ;;  %v4637_v30 = vsub.f32 %v4483_v32, %v2131_v16  ;;  %v2194_v45 = vmul.f32 %v4632_v31, %v4632_v31 }
 0x4c3   :  { %v2084_v42 = vpop.xlane.xlu1 %2083  ;;  %v2133_v63 = vmul.f32 0.0078125, %v2082_v1  ;;  %v4642_v20 = vsub.f32 %v4487_v8, %v2132_v9 }
 0x4c4   :  { %2119 = vadd.xlane.f32.xlu1 %v4593_v47  ;;  %v2134_v27 = vmul.f32 0.0078125, %v2084_v42 }
 0x4c5   :  { %v4647_v14 = vsub.f32 %v4493_v37, %v2133_v63 }
 0x4c6   :  { %2217 = vadd.xlane.f32.xlu0 %v2185_v44  ;;  %v2195_v44 = vmul.f32 %v4637_v30, %v4637_v30  ;;  %v4652_v12 = vsub.f32 %v4497_v54, %v2134_v27 }
 0x4c7   :  { %v2086_v34 = vpop.xlane.xlu0 %2085 }
 0x4c8   :  { %2219 = vadd.xlane.f32.xlu1 %v2186_v10  ;;  %v2135_v32 = vmul.f32 0.0078125, %v2086_v34  ;;  %v2196_v10 = vmul.f32 %v4642_v20, %v4642_v20 }
 0x4c9   :  { %v2088_v41 = vpop.xlane.xlu1 %2087 }
 0x4ca   :  { %2221 = vadd.xlane.f32.xlu0 %v2187_v40  ;;  %v2136_v8 = vmul.f32 0.0078125, %v2088_v41  ;;  %v4657_v59 = vsub.f32 %v4503_v15, %v2135_v32  ;;  %v2197_v40 = vmul.f32 %v4647_v14, %v4647_v14 }
 0x4cc   :  { %2223 = vadd.xlane.f32.xlu1 %v2188_v11  ;;  %v4662_v60 = vsub.f32 %v4507_v61, %v2136_v8  ;;  %v2198_v11 = vmul.f32 %v4652_v12, %v4652_v12 }
 0x4ce   :  { %2225 = vadd.xlane.f32.xlu0 %v2189_v5  ;;  %v2199_v5 = vmul.f32 %v4657_v59, %v4657_v59  ;;  %v2200_v61 = vmul.f32 %v4662_v60, %v4662_v60 }
 0x4cf   :  { %v2090_v2 = vpop.xlane.xlu0 %2089 }
 0x4d0   :  { %2227 = vadd.xlane.f32.xlu1 %v2190_v22  ;;  %v2137_v37 = vmul.f32 0.0078125, %v2090_v2 }
 0x4d1   :  { %v2092_v48 = vpop.xlane.xlu1 %2091 }
 0x4d2   :  { %2229 = vadd.xlane.f32.xlu0 %v2191_v46  ;;  %v2138_v54 = vmul.f32 0.0078125, %v2092_v48  ;;  %v4667_v29 = vsub.f32 %v4513_v25, %v2137_v37 }
 0x4d4   :  { %2231 = vadd.xlane.f32.xlu1 %v2192_v21  ;;  %v4672_v49 = vsub.f32 %v4517_v4, %v2138_v54  ;;  %v2201_v25 = vmul.f32 %v4667_v29, %v4667_v29 }
 0x4d6   :  { %2233 = vadd.xlane.f32.xlu0 %v2193_v52  ;;  %v2202_v4 = vmul.f32 %v4672_v49, %v4672_v49 }
 0x4d7   :  { %v2094_v17 = vpop.xlane.xlu0 %2093 }
 0x4d8   :  { %2235 = vadd.xlane.f32.xlu1 %v2194_v45  ;;  %v2139_v15 = vmul.f32 0.0078125, %v2094_v17 }
 0x4d9   :  { %v2096_v7 = vpop.xlane.xlu1 %2095 }
 0x4da   :  { %2237 = vadd.xlane.f32.xlu0 %v2195_v44  ;;  %v2140_v33 = vmul.f32 0.0078125, %v2096_v7  ;;  %v4677_v22 = vsub.f32 %v4523_v3, %v2139_v15 }
 0x4dc   :  { %2239 = vadd.xlane.f32.xlu1 %v2196_v10  ;;  %v4682_v43 = vsub.f32 %v4527_v55, %v2140_v33  ;;  %v2203_v16 = vmul.f32 %v4677_v22, %v4677_v22 }
 0x4de   :  { %2241 = vadd.xlane.f32.xlu0 %v2197_v40  ;;  %v2204_v3 = vmul.f32 %v4682_v43, %v4682_v43 }
 0x4e0   :  { %2243 = vadd.xlane.f32.xlu1 %v2198_v11 }
 0x4e2   :  { %2245 = vadd.xlane.f32.xlu0 %v2199_v5 }
 0x4e4   :  { %2247 = vadd.xlane.f32.xlu1 %v2200_v61 }
 0x4e6   :  { %2249 = vadd.xlane.f32.xlu0 %v2201_v25 }
 0x4e8   :  { %2251 = vadd.xlane.f32.xlu1 %v2202_v4 }
 0x4ea   :  { %2253 = vadd.xlane.f32.xlu0 %v2203_v16 }
 0x4ec   :  { %2255 = vadd.xlane.f32.xlu1 %v2204_v3 }
 0x527   :  { %v2098_v46 = vpop.xlane.xlu0 %2097 }
 0x528   :  { %v2141_v1 = vmul.f32 0.0078125, %v2098_v46 }
 0x529   :  { %v2100_v9 = vpop.xlane.xlu1 %2099 }
 0x52a   :  { %v4691_v21 = vsub.f32 %v4533_v58, %v2141_v1  ;;  %v2142_v55 = vmul.f32 0.0078125, %v2100_v9 }
 0x52c   :  { %v4694_v42 = vsub.f32 %v4537_v38, %v2142_v55  ;;  %v2205_v63 = vmul.f32 %v4691_v21, %v4691_v21 }
 0x52e   :  { %2257 = vadd.xlane.f32.xlu0 %v2205_v63  ;;  %v2206_v52 = vmul.f32 %v4694_v42, %v4694_v42 }
 0x52f   :  { %v2102_v34 = vpop.xlane.xlu0 %2101 }
 0x530   :  { %v2143_v27 = vmul.f32 0.0078125, %v2102_v34  ;;  %2259 = vadd.xlane.f32.xlu1 %v2206_v52 }
 0x531   :  { %v2104_v45 = vpop.xlane.xlu1 %2103 }
 0x532   :  { %v4701_v41 = vsub.f32 %v4543_v13, %v2143_v27  ;;  %v2144_v58 = vmul.f32 0.0078125, %v2104_v45 }
 0x534   :  { %v4704_v32 = vsub.f32 %v4547_v24, %v2144_v58  ;;  %v2207_v38 = vmul.f32 %v4701_v41, %v4701_v41 }
 0x536   :  { %2261 = vadd.xlane.f32.xlu0 %v2207_v38  ;;  %v2208_v44 = vmul.f32 %v4704_v32, %v4704_v32 }
 0x537   :  { %v2106_v2 = vpop.xlane.xlu0 %2105 }
 0x538   :  { %2263 = vadd.xlane.f32.xlu1 %v2208_v44  ;;  %v2145_v8 = vmul.f32 0.0078125, %v2106_v2 }
 0x539   :  { %v2108_v10 = vpop.xlane.xlu1 %2107 }
 0x53a   :  { %v4711_v48 = vsub.f32 %v4553_v6, %v2145_v8  ;;  %v2146_v13 = vmul.f32 0.0078125, %v2108_v10 }
 0x53c   :  { %v4714_v37 = vsub.f32 %v4557_v19, %v2146_v13  ;;  %v2209_v24 = vmul.f32 %v4711_v48, %v4711_v48 }
 0x53e   :  { %2265 = vadd.xlane.f32.xlu0 %v2209_v24  ;;  %v2210_v40 = vmul.f32 %v4714_v37, %v4714_v37 }
 0x53f   :  { %v2110_v17 = vpop.xlane.xlu0 %2109 }
 0x540   :  { %v2147_v54 = vmul.f32 0.0078125, %v2110_v17  ;;  %2267 = vadd.xlane.f32.xlu1 %v2210_v40 }
 0x541   :  { %v2112_v11 = vpop.xlane.xlu1 %2111 }
 0x542   :  { %v4721_v7 = vsub.f32 %v4563_v51, %v2147_v54  ;;  %v2148_v6 = vmul.f32 0.0078125, %v2112_v11 }
 0x544   :  { %v4724_v15 = vsub.f32 %v4567_v50, %v2148_v6  ;;  %v2211_v19 = vmul.f32 %v4721_v7, %v4721_v7 }
 0x546   :  { %2269 = vadd.xlane.f32.xlu0 %v2211_v19  ;;  %v2212_v5 = vmul.f32 %v4724_v15, %v4724_v15 }
 0x547   :  { %v2114_v33 = vpop.xlane.xlu0 %2113 }
 0x548   :  { %v2149_v61 = vmul.f32 0.0078125, %v2114_v33  ;;  %2271 = vadd.xlane.f32.xlu1 %v2212_v5 }
 0x549   :  { %v2116_v25 = vpop.xlane.xlu1 %2115 }
 0x54a   :  { %v4731_v4 = vsub.f32 %v4573_v0, %v2149_v61  ;;  %v2150_v51 = vmul.f32 0.0078125, %v2116_v25  ;;  %v4753_v25 = vld [vmem:[%s4878_s10] ss:$0 sm:$0xff]  ;;  %s3327_s10 = smov [#allocation2]  }
 0x54c   :  { %v4734_v16 = vsub.f32 %v4577_v62, %v2150_v51  ;;  %v2213_v50 = vmul.f32 %v4731_v4, %v4731_v4 }
 0x54e   :  { %2273 = vadd.xlane.f32.xlu0 %v2213_v50  ;;  %v2214_v3 = vmul.f32 %v4734_v16, %v4734_v16 }
 0x54f   :  { %v2118_v46 = vpop.xlane.xlu0 %2117 }
 0x550   :  { %v2151_v1 = vmul.f32 0.0078125, %v2118_v46  ;;  %2275 = vadd.xlane.f32.xlu1 %v2214_v3 }
 0x551   :  { %v2120_v9 = vpop.xlane.xlu1 %2119 }
 0x552   :  { %v4741_v55 = vsub.f32 %v4586_v35, %v2151_v1  ;;  %v2152_v0 = vmul.f32 0.0078125, %v2120_v9  ;;  %v4759_v9 = vld [vmem:[%s4879_s11] ss:$0 sm:$0xff]  ;;  %s2522_s11 = sshll.u32 %s3327_s10, 4  ;;  %s2523_s11 = int_to_ptr.vmem [resolvable:$true] %s2522_s11 }
 0x553   :  { %v2218_v63 = vpop.xlane.xlu0 %2217  ;;  %s3302_s18 = scalar_lea.vmem %s2523_s11, 4096  ;;  %p3307_p1 = scmp.lt.s32.totalorder %s2523_s11, %s2523_s11 }
 0x554   :  { %v4744_v52 = vsub.f32 %v4593_v47, %v2152_v0  ;;  %v2281_v62 = vmul.f32 0.0078125, %v2218_v63  ;;  %v2215_v34 = vmul.f32 %v4741_v55, %v4741_v55  ;;  %p3303_p0 = scmp.ne.s32.totalorder %s2523_s11, %s3302_s18  ;;  %p3308_p2 = scmp.lt.s32.totalorder %s3302_s18, %s3302_s18 }
 0x555   :  { %v2220_v27 = vpop.xlane.xlu1 %2219 }
 0x556   :  { %v2313_v45 = vadd.f32 1e-05, %v2281_v62  ;;  %v2282_v58 = vmul.f32 0.0078125, %v2220_v27  ;;  %2277 = vadd.xlane.f32.xlu0 %v2215_v34  ;;  %v2216_v38 = vmul.f32 %v4744_v52, %v4744_v52  ;;  %p3309_p3 = por %p3308_p2, %p3307_p1 }
 0x557   :  { %v2222_v44 = vpop.xlane.xlu0 %2221 }
 0x558   :  { %3238 = vrsqrt.f32 %v2313_v45  ;;  %v2314_v35 = vadd.f32 1e-05, %v2282_v58  ;;  %v2283_v2 = vmul.f32 0.0078125, %v2222_v44  ;;  %2279 = vadd.xlane.f32.xlu1 %v2216_v38  ;;  %p3310_p4 = pnand %p3309_p3, %p3303_p0 }
 0x559   :  { %v2224_v8 = vpop.xlane.xlu1 %2223 }
 0x55a   :  { %3240 = vrsqrt.f32 %v2314_v35  ;;  %v2315_v47 = vadd.f32 1e-05, %v2283_v2  ;;  %v2284_v10 = vmul.f32 0.0078125, %v2224_v8 }
 0x55b   :  { %v2226_v13 = vpop.xlane.xlu0 %2225 }
 0x55c   :  { %3242 = vrsqrt.f32 %v2315_v47  ;;  %v2316_v24 = vadd.f32 1e-05, %v2284_v10  ;;  %v2285_v40 = vmul.f32 0.0078125, %v2226_v13 }
 0x55d   :  { %v2228_v17 = vpop.xlane.xlu1 %2227 }
 0x55e   :  { %3244 = vrsqrt.f32 %v2316_v24  ;;  %v2317_v54 = vadd.f32 1e-05, %v2285_v40  ;;  %v2286_v11 = vmul.f32 0.0078125, %v2228_v17 }
 0x55f   :  { %v2230_v6 = vpop.xlane.xlu0 %2229 }
 0x560   :  { %3246 = vrsqrt.f32 %v2317_v54  ;;  %v2318_v19 = vadd.f32 1e-05, %v2286_v11  ;;  %v2287_v5 = vmul.f32 0.0078125, %v2230_v6 }
 0x561   :  { %v2232_v33 = vpop.xlane.xlu1 %2231 }
 0x562   :  { %v3239_v61 = vpop.eup %3238  ;;  %3248 = vrsqrt.f32 %v2318_v19  ;;  %v2319_v51 = vadd.f32 1e-05, %v2287_v5  ;;  %v2288_v50 = vmul.f32 0.0078125, %v2232_v33 }
 0x563   :  { %v2377_v3 = vmul.f32 %v3239_v61, %v4582_v28  ;;  %v2234_v46 = vpop.xlane.xlu0 %2233 }
 0x564   :  { %v3241_v1 = vpop.eup %3240  ;;  %3250 = vrsqrt.f32 %v2319_v51  ;;  %v2320_v0 = vadd.f32 1e-05, %v2288_v50  ;;  %v2289_v63 = vmul.f32 0.0078125, %v2234_v46 }
 0x565   :  { %v2415_v62 = vmul.f32 %v4753_v25, %v2377_v3  ;;  %v2378_v34 = vmul.f32 %v3241_v1, %v4589_v57  ;;  %v2236_v27 = vpop.xlane.xlu1 %2235 }
 0x566   :  { %v3243_v45 = vpop.eup %3242  ;;  %3252 = vrsqrt.f32 %v2320_v0  ;;  %v2321_v58 = vadd.f32 1e-05, %v2289_v63  ;;  %v2290_v38 = vmul.f32 0.0078125, %v2236_v27 }
 0x567   :  { %v2453_v28 = vadd.f32 %v4759_v9, %v2415_v62  ;;  %v2416_v44 = vmul.f32 %v4753_v25, %v2378_v34  ;;  %v2379_v35 = vmul.f32 %v3243_v45, %v4596_v26  ;;  %v2238_v2 = vpop.xlane.xlu0 %2237 }
 0x568   :  { %v3245_v8 = vpop.eup %3244  ;;  %3254 = vrsqrt.f32 %v2321_v58  ;;  %v2322_v47 = vadd.f32 1e-05, %v2290_v38  ;;  %v2291_v10 = vmul.f32 0.0078125, %v2238_v2 }
 0x569   :  { %2485 = vst [vmem:[#allocation2] sm:$0xff] %v2453_v28  ;;  %v2454_v13 = vadd.f32 %v4759_v9, %v2416_v44  ;;  %v2417_v57 = vmul.f32 %v4753_v25, %v2379_v35  ;;  %v2380_v24 = vmul.f32 %v3245_v8, %v4602_v18  ;;  %v2240_v40 = vpop.xlane.xlu1 %2239 }
 0x56a   :  { %v3247_v17 = vpop.eup %3246  ;;  %3256 = vrsqrt.f32 %v2322_v47  ;;  %v2323_v54 = vadd.f32 1e-05, %v2291_v10  ;;  %v2292_v11 = vmul.f32 0.0078125, %v2240_v40 }
 0x56b   :  { %2486 = vst [vmem:[#allocation2 + $0x8] sm:$0xff] %v2454_v13  ;;  %v2455_v26 = vadd.f32 %v4759_v9, %v2417_v57  ;;  %v2418_v6 = vmul.f32 %v4753_v25, %v2380_v24  ;;  %v2381_v19 = vmul.f32 %v3247_v17, %v4607_v56  ;;  %v2242_v5 = vpop.xlane.xlu0 %2241 }
 0x56c   :  { %v3249_v33 = vpop.eup %3248  ;;  %3258 = vrsqrt.f32 %v2323_v54  ;;  %v2324_v61 = vadd.f32 1e-05, %v2292_v11  ;;  %v2293_v51 = vmul.f32 0.0078125, %v2242_v5 }
 0x56d   :  { %2487 = vst [vmem:[#allocation2 + $0x10] sm:$0xff] %v2455_v26  ;;  %v2456_v18 = vadd.f32 %v4759_v9, %v2418_v6  ;;  %v2419_v50 = vmul.f32 %v4753_v25, %v2381_v19  ;;  %v2382_v3 = vmul.f32 %v3249_v33, %v4612_v36  ;;  %v2244_v46 = vpop.xlane.xlu1 %2243 }
 0x56e   :  { %v3251_v1 = vpop.eup %3250  ;;  %3260 = vrsqrt.f32 %v2324_v61  ;;  %v2325_v0 = vadd.f32 1e-05, %v2293_v51  ;;  %v2294_v63 = vmul.f32 0.0078125, %v2244_v46 }
 0x56f   :  { %2488 = vst [vmem:[#allocation2 + $0x18] sm:$0xff] %v2456_v18  ;;  %v2457_v56 = vadd.f32 %v4759_v9, %v2419_v50  ;;  %v2420_v62 = vmul.f32 %v4753_v25, %v2382_v3  ;;  %v2383_v34 = vmul.f32 %v3251_v1, %v4617_v23  ;;  %v2246_v27 = vpop.xlane.xlu0 %2245 }
 0x570   :  { %v3253_v45 = vpop.eup %3252  ;;  %3262 = vrsqrt.f32 %v2325_v0  ;;  %v2326_v58 = vadd.f32 1e-05, %v2294_v63  ;;  %v2295_v38 = vmul.f32 0.0078125, %v2246_v27 }
 0x571   :  { %2489 = vst [vmem:[#allocation2 + $0x20] sm:$0xff] %v2457_v56  ;;  %v2458_v36 = vadd.f32 %v4759_v9, %v2420_v62  ;;  %v2421_v28 = vmul.f32 %v4753_v25, %v2383_v34  ;;  %v2384_v44 = vmul.f32 %v3253_v45, %v4622_v53  ;;  %v2248_v35 = vpop.xlane.xlu1 %2247 }
 0x572   :  { %v3255_v2 = vpop.eup %3254  ;;  %3264 = vrsqrt.f32 %v2326_v58  ;;  %v2327_v8 = vadd.f32 1e-05, %v2295_v38  ;;  %v2296_v47 = vmul.f32 0.0078125, %v2248_v35 }
 0x573   :  { %2490 = vst [vmem:[#allocation2 + $0x28] sm:$0xff] %v2458_v36  ;;  %v2459_v23 = vadd.f32 %v4759_v9, %v2421_v28  ;;  %v2422_v10 = vmul.f32 %v4753_v25, %v2384_v44  ;;  %v2385_v13 = vmul.f32 %v3255_v2, %v4627_v39  ;;  %v2250_v57 = vpop.xlane.xlu0 %2249 }
 0x574   :  { %v3257_v24 = vpop.eup %3256  ;;  %3266 = vrsqrt.f32 %v2327_v8  ;;  %v2328_v40 = vadd.f32 1e-05, %v2296_v47  ;;  %v2297_v17 = vmul.f32 0.0078125, %v2250_v57 }
 0x575   :  { %2491 = vst [vmem:[#allocation2 + $0x30] sm:$0xff] %v2459_v23  ;;  %v2460_v53 = vadd.f32 %v4759_v9, %v2422_v10  ;;  %v2423_v54 = vmul.f32 %v4753_v25, %v2385_v13  ;;  %v2386_v11 = vmul.f32 %v3257_v24, %v4632_v31  ;;  %v2252_v26 = vpop.xlane.xlu1 %2251 }
 0x576   :  { %v3259_v6 = vpop.eup %3258  ;;  %3268 = vrsqrt.f32 %v2328_v40  ;;  %v2329_v19 = vadd.f32 1e-05, %v2297_v17  ;;  %v2298_v5 = vmul.f32 0.0078125, %v2252_v26 }
 0x577   :  { %2492 = vst [vmem:[#allocation2 + $0x38] sm:$0xff] %v2460_v53  ;;  %v2461_v39 = vadd.f32 %v4759_v9, %v2423_v54  ;;  %v2424_v33 = vmul.f32 %v4753_v25, %v2386_v11  ;;  %v2387_v61 = vmul.f32 %v3259_v6, %v4637_v30  ;;  %v2254_v51 = vpop.xlane.xlu0 %2253 }
 0x578   :  { %v3261_v18 = vpop.eup %3260  ;;  %3270 = vrsqrt.f32 %v2329_v19  ;;  %v2330_v50 = vadd.f32 1e-05, %v2298_v5  ;;  %v2299_v3 = vmul.f32 0.0078125, %v2254_v51 }
 0x579   :  { %2493 = vst [vmem:[#allocation2 + $0x40] sm:$0xff] %v2461_v39  ;;  %v2462_v31 = vadd.f32 %v4759_v9, %v2424_v33  ;;  %v2425_v46 = vmul.f32 %v4753_v25, %v2387_v61  ;;  %v2388_v1 = vmul.f32 %v3261_v18, %v4642_v20  ;;  %v2256_v0 = vpop.xlane.xlu1 %2255 }
 0x57a   :  { %v3263_v63 = vpop.eup %3262  ;;  %3272 = vrsqrt.f32 %v2330_v50  ;;  %v2331_v56 = vadd.f32 1e-05, %v2299_v3  ;;  %v2300_v62 = vmul.f32 0.0078125, %v2256_v0 }
 0x57b   :  { %2494 = vst [vmem:[#allocation2 + $0x48] sm:$0xff] %v2462_v31  ;;  %v2463_v30 = vadd.f32 %v4759_v9, %v2425_v46  ;;  %v2426_v34 = vmul.f32 %v4753_v25, %v2388_v1  ;;  %v2389_v27 = vmul.f32 %v3263_v63, %v4647_v14 }
 0x57c   :  { %v3265_v45 = vpop.eup %3264  ;;  %3274 = vrsqrt.f32 %v2331_v56  ;;  %v2332_v58 = vadd.f32 1e-05, %v2300_v62 }
 0x57d   :  { %2495 = vst [vmem:[#allocation2 + $0x50] sm:$0xff] %v2463_v30  ;;  %v2464_v38 = vadd.f32 %v4759_v9, %v2426_v34  ;;  %v2427_v20 = vmul.f32 %v4753_v25, %v2389_v27  ;;  %v2390_v36 = vmul.f32 %v3265_v45, %v4652_v12 }
 0x57e   :  { %v3267_v28 = vpop.eup %3266  ;;  %3276 = vrsqrt.f32 %v2332_v58 }
 0x57f   :  { %2496 = vst [vmem:[#allocation2 + $0x58] sm:$0xff] %v2464_v38  ;;  %v2465_v44 = vadd.f32 %v4759_v9, %v2427_v20  ;;  %v2428_v35 = vmul.f32 %v4753_v25, %v2390_v36  ;;  %v2391_v2 = vmul.f32 %v3267_v28, %v4657_v59 }
 0x580   :  { %v3269_v14 = vpop.eup %3268 }
 0x581   :  { %2497 = vst [vmem:[#allocation2 + $0x60] sm:$0xff] %v2465_v44  ;;  %v2466_v8 = vadd.f32 %v4759_v9, %v2428_v35  ;;  %v2429_v47 = vmul.f32 %v4753_v25, %v2391_v2  ;;  %v2392_v23 = vmul.f32 %v3269_v14, %v4662_v60 }
 0x582   :  { %v3271_v10 = vpop.eup %3270 }
 0x583   :  { %2498 = vst [vmem:[#allocation2 + $0x68] sm:$0xff] %v2466_v8  ;;  %v2467_v12 = vadd.f32 %v4759_v9, %v2429_v47  ;;  %v2430_v13 = vmul.f32 %v4753_v25, %v2392_v23  ;;  %v2393_v57 = vmul.f32 %v3271_v10, %v4667_v29 }
 0x584   :  { %v3273_v24 = vpop.eup %3272 }
 0x585   :  { %2499 = vst [vmem:[#allocation2 + $0x70] sm:$0xff] %v2467_v12  ;;  %v2468_v59 = vadd.f32 %v4759_v9, %v2430_v13  ;;  %v2431_v40 = vmul.f32 %v4753_v25, %v2393_v57  ;;  %v2394_v17 = vmul.f32 %v3273_v24, %v4672_v49 }
 0x586   :  { %v3275_v53 = vpop.eup %3274 }
 0x587   :  { %2500 = vst [vmem:[#allocation2 + $0x78] sm:$0xff] %v2468_v59  ;;  %v2469_v60 = vadd.f32 %v4759_v9, %v2431_v40  ;;  %v2432_v54 = vmul.f32 %v4753_v25, %v2394_v17  ;;  %v2395_v11 = vmul.f32 %v3275_v53, %v4677_v22 }
 0x588   :  { %v3277_v26 = vpop.eup %3276 }
 0x589   :  { %2501 = vst [vmem:[#allocation2 + $0x80] sm:$0xff] %v2469_v60  ;;  %v2470_v29 = vadd.f32 %v4759_v9, %v2432_v54  ;;  %v2433_v6 = vmul.f32 %v4753_v25, %v2395_v11  ;;  %v2396_v19 = vmul.f32 %v3277_v26, %v4682_v43 }
 0x58b   :  { %2502 = vst [vmem:[#allocation2 + $0x88] sm:$0xff] %v2470_v29  ;;  %v2471_v5 = vadd.f32 %v4759_v9, %v2433_v6  ;;  %v2434_v49 = vmul.f32 %v4753_v25, %v2396_v19 }
 0x58d   :  { %2503 = vst [vmem:[#allocation2 + $0x90] sm:$0xff] %v2471_v5  ;;  %v2472_v39 = vadd.f32 %v4759_v9, %v2434_v49 }
 0x58f   :  { %2504 = vst [vmem:[#allocation2 + $0x98] sm:$0xff] %v2472_v39 }
 0x5bb   :  { %v2258_v33 = vpop.xlane.xlu0 %2257 }
 0x5bc   :  { %v2301_v61 = vmul.f32 0.0078125, %v2258_v33 }
 0x5bd   :  { %v2260_v22 = vpop.xlane.xlu1 %2259 }
 0x5be   :  { %v2333_v51 = vadd.f32 1e-05, %v2301_v61  ;;  %v2302_v18 = vmul.f32 0.0078125, %v2260_v22 }
 0x5c0   :  { %3278 = vrsqrt.f32 %v2333_v51  ;;  %v2334_v50 = vadd.f32 1e-05, %v2302_v18 }
 0x5c2   :  { %3280 = vrsqrt.f32 %v2334_v50 }
 0x5c3   :  { %v2262_v3 = vpop.xlane.xlu0 %2261 }
 0x5c4   :  { %v2303_v31 = vmul.f32 0.0078125, %v2262_v3 }
 0x5c5   :  { %v2264_v43 = vpop.xlane.xlu1 %2263 }
 0x5c6   :  { %v2335_v46 = vadd.f32 1e-05, %v2303_v31  ;;  %v2304_v1 = vmul.f32 0.0078125, %v2264_v43 }
 0x5c8   :  { %3282 = vrsqrt.f32 %v2335_v46  ;;  %v2336_v0 = vadd.f32 1e-05, %v2304_v1 }
 0x5ca   :  { %v3279_v63 = vpop.eup %3278  ;;  %3284 = vrsqrt.f32 %v2336_v0 }
 0x5cb   :  { %v2397_v56 = vmul.f32 %v3279_v63, %v4691_v21  ;;  %v2266_v30 = vpop.xlane.xlu0 %2265 }
 0x5cc   :  { %v3281_v62 = vpop.eup %3280  ;;  %v2305_v45 = vmul.f32 0.0078125, %v2266_v30 }
 0x5cd   :  { %v2435_v34 = vmul.f32 %v4753_v25, %v2397_v56  ;;  %v2398_v27 = vmul.f32 %v3281_v62, %v4694_v42  ;;  %v2268_v58 = vpop.xlane.xlu1 %2267 }
 0x5ce   :  { %v2337_v36 = vadd.f32 1e-05, %v2305_v45  ;;  %v2306_v28 = vmul.f32 0.0078125, %v2268_v58 }
 0x5cf   :  { %v2473_v38 = vadd.f32 %v4759_v9, %v2435_v34  ;;  %v2436_v20 = vmul.f32 %v4753_v25, %v2398_v27 }
 0x5d0   :  { %3286 = vrsqrt.f32 %v2337_v36  ;;  %v2338_v35 = vadd.f32 1e-05, %v2306_v28 }
 0x5d1   :  { %2505 = vst [vmem:[#allocation2 + $0xa0] sm:$0xff] %v2473_v38  ;;  %v2474_v44 = vadd.f32 %v4759_v9, %v2436_v20 }
 0x5d2   :  { %v3283_v21 = vpop.eup %3282  ;;  %3288 = vrsqrt.f32 %v2338_v35 }
 0x5d3   :  { %2506 = vst [vmem:[#allocation2 + $0xa8] sm:$0xff] %v2474_v44  ;;  %v2399_v2 = vmul.f32 %v3283_v21, %v4701_v41  ;;  %v2270_v42 = vpop.xlane.xlu0 %2269 }
 0x5d4   :  { %v3285_v14 = vpop.eup %3284  ;;  %v2307_v23 = vmul.f32 0.0078125, %v2270_v42 }
 0x5d5   :  { %v2437_v8 = vmul.f32 %v4753_v25, %v2399_v2  ;;  %v2400_v47 = vmul.f32 %v3285_v14, %v4704_v32  ;;  %v2272_v10 = vpop.xlane.xlu1 %2271 }
 0x5d6   :  { %v2339_v57 = vadd.f32 1e-05, %v2307_v23  ;;  %v2308_v24 = vmul.f32 0.0078125, %v2272_v10 }
 0x5d7   :  { %v2475_v12 = vadd.f32 %v4759_v9, %v2437_v8  ;;  %v2438_v13 = vmul.f32 %v4753_v25, %v2400_v47 }
 0x5d8   :  { %3290 = vrsqrt.f32 %v2339_v57  ;;  %v2340_v41 = vadd.f32 1e-05, %v2308_v24 }
 0x5d9   :  { %2507 = vst [vmem:[#allocation2 + $0xb0] sm:$0xff] %v2475_v12  ;;  %v2476_v59 = vadd.f32 %v4759_v9, %v2438_v13 }
 0x5da   :  { %v3287_v40 = vpop.eup %3286  ;;  %3292 = vrsqrt.f32 %v2340_v41 }
 0x5db   :  { %2508 = vst [vmem:[#allocation2 + $0xb8] sm:$0xff] %v2476_v59  ;;  %v2401_v17 = vmul.f32 %v3287_v40, %v4711_v48  ;;  %v2274_v53 = vpop.xlane.xlu0 %2273 }
 0x5dc   :  { %v3289_v32 = vpop.eup %3288  ;;  %v2309_v60 = vmul.f32 0.0078125, %v2274_v53 }
 0x5dd   :  { %v2439_v54 = vmul.f32 %v4753_v25, %v2401_v17  ;;  %v2402_v11 = vmul.f32 %v3289_v32, %v4714_v37  ;;  %v2276_v26 = vpop.xlane.xlu1 %2275 }
 0x5de   :  { %v2341_v29 = vadd.f32 1e-05, %v2309_v60  ;;  %v2310_v6 = vmul.f32 0.0078125, %v2276_v26 }
 0x5df   :  { %v2477_v19 = vadd.f32 %v4759_v9, %v2439_v54  ;;  %v2440_v5 = vmul.f32 %v4753_v25, %v2402_v11 }
 0x5e0   :  { %3294 = vrsqrt.f32 %v2341_v29  ;;  %v2342_v49 = vadd.f32 1e-05, %v2310_v6 }
 0x5e1   :  { %2509 = vst [vmem:[#allocation2 + $0xc0] sm:$0xff] %v2477_v19  ;;  %v2478_v39 = vadd.f32 %v4759_v9, %v2440_v5 }
 0x5e2   :  { %v3291_v48 = vpop.eup %3290  ;;  %3296 = vrsqrt.f32 %v2342_v49 }
 0x5e3   :  { %2510 = vst [vmem:[#allocation2 + $0xc8] sm:$0xff] %v2478_v39  ;;  %v2403_v33 = vmul.f32 %v3291_v48, %v4721_v7  ;;  %v2278_v61 = vpop.xlane.xlu0 %2277 }
 0x5e4   :  { %v3293_v22 = vpop.eup %3292  ;;  %v2311_v37 = vmul.f32 0.0078125, %v2278_v61 }
 0x5e5   :  { %v2441_v51 = vmul.f32 %v4753_v25, %v2403_v33  ;;  %v2404_v18 = vmul.f32 %v3293_v22, %v4724_v15  ;;  %v2280_v50 = vpop.xlane.xlu1 %2279 }
 0x5e6   :  { %v2343_v3 = vadd.f32 1e-05, %v2311_v37  ;;  %v2312_v31 = vmul.f32 0.0078125, %v2280_v50 }
 0x5e7   :  { %v2479_v43 = vadd.f32 %v4759_v9, %v2441_v51  ;;  %v2442_v46 = vmul.f32 %v4753_v25, %v2404_v18 }
 0x5e8   :  { %3298 = vrsqrt.f32 %v2343_v3  ;;  %v2344_v1 = vadd.f32 1e-05, %v2312_v31 }
 0x5e9   :  { %2511 = vst [vmem:[#allocation2 + $0xd0] sm:$0xff] %v2479_v43  ;;  %v2480_v0 = vadd.f32 %v4759_v9, %v2442_v46 }
 0x5ea   :  { %v3295_v7 = vpop.eup %3294  ;;  %3300 = vrsqrt.f32 %v2344_v1 }
 0x5eb   :  { %2512 = vst [vmem:[#allocation2 + $0xd8] sm:$0xff] %v2480_v0  ;;  %v2405_v63 = vmul.f32 %v3295_v7, %v4731_v4 }
 0x5ec   :  { %v3297_v56 = vpop.eup %3296 }
 0x5ed   :  { %v2443_v15 = vmul.f32 %v4753_v25, %v2405_v63  ;;  %v2406_v62 = vmul.f32 %v3297_v56, %v4734_v16 }
 0x5ef   :  { %v2481_v30 = vadd.f32 %v4759_v9, %v2443_v15  ;;  %v2444_v34 = vmul.f32 %v4753_v25, %v2406_v62 }
 0x5f1   :  { %2513 = vst [vmem:[#allocation2 + $0xe0] sm:$0xff] %v2481_v30  ;;  %v2482_v27 = vadd.f32 %v4759_v9, %v2444_v34 }
 0x5f2   :  { %v3299_v45 = vpop.eup %3298 }
 0x5f3   :  { %2514 = vst [vmem:[#allocation2 + $0xe8] sm:$0xff] %v2482_v27  ;;  %v2407_v58 = vmul.f32 %v3299_v45, %v4741_v55 }
 0x5f4   :  { %v3301_v38 = vpop.eup %3300 }
 0x5f5   :  { %v2445_v20 = vmul.f32 %v4753_v25, %v2407_v58  ;;  %v2408_v4 = vmul.f32 %v3301_v38, %v4744_v52 }
 0x5f7   :  { %v2483_v16 = vadd.f32 %v4759_v9, %v2445_v20  ;;  %v2446_v36 = vmul.f32 %v4753_v25, %v2408_v4 }
 0x5f9   :  { %2515 = vst [vmem:[#allocation2 + $0xf0] sm:$0xff] %v2483_v16  ;;  %v2484_v28 = vadd.f32 %v4759_v9, %v2446_v36 }
 0x5fb   :  { %2516 = vst [vmem:[#allocation2 + $0xf8] sm:$0xff] %v2484_v28 }
 0x5fc   :  { %3313 = shalt.err (!%p3310_p4)
}
 0x5fd   :  { %s3314_s21 = scalar_lea.hbm %s4880_s12, 4096 }
 0x5fe   :  { %p3315_p5 = scmp.ne.s32.totalorder %s4880_s12, %s3314_s21  ;;  %p3318_p6 = scmp.lt.u32.totalorder %s3314_s21, %s4880_s12 }
 0x600   :  { %p3320_p7 = pnand %p3318_p6, %p3315_p5 }
 0x602   :  { %3323 = shalt.err (!%p3320_p7)
}
 0x603   :  { %s3328_s25 = smov 128   ;;  %s3329_s6 = smov 8  }
 0x604   :  { %2528 = dma.vmem_to_hbm [thread:$0]  %s2523_s11, 4096, %s4880_s12, [#allocation3], %s3328_s25, %s3328_s25, %s3329_s6  }
 0x605   :  { %3324 = dma.done.wait [#allocation3], 4096  }
 0x606   :  { %3325 = vsyncadd [#allocation3], 4294963200 }
 0x607   :  { %2532 = vsyncpa [#allocation3], 1 }

</bundles_post_ra>
